<compile_context>
chip_gen: v7x
topology: tpu7x:2x2x1
jax: 0.10.0
libtpu: 0.0.40
codegen_flags: <defaults>
</compile_context>

<pallas_src>
import functools

import numpy as np
import jax
import jax.numpy as jnp
from jax.experimental import pallas as pl
from jax.experimental.pallas import tpu as pltpu

NEG_SLOPE = 0.01      # nn.LeakyReLU default negative slope
CLAMP = 0.08
N_FILT = 32           # config['NN_models']['filters_per_layer']


# ----------------------------- Pallas kernel --------------------------------

def _policy_kernel(x_ref, m_ref, w1_ref, b1_ref, w2_ref, b2_ref, w3_ref,
                   b3_ref, gt_ref, ft_ref, g_ref, o_ref, *, width):
    """Whole ConvPolicyFast forward for one batch image.

    Layout: activations are (C, H*W) with the spatial axis on lanes.
      x_ref  : (1, Cin, HW)        input features for this batch element
      m_ref  : (9, 1, HW)          0/1 border mask per 3x3 tap
      w*_ref : (9, Cout, Cin)      conv weights, one (Cout, Cin) slab per tap
      b*_ref : (Cout, 1)           conv bias
      gt_ref : (HW, n_valid)       one-hot gather matrix  G^T
      ft_ref : (n_valid, n_valid)  F^T
      g_ref  : (n_valid, HW)       one-hot scatter matrix G
      o_ref  : (1, 1, HW)          output map (clamped, F applied on valid actuators)
    """
    hw = x_ref.shape[-1]

    def conv3x3(act, w_ref, b_ref):
        # 3x3 same-padded conv = 9 accumulated MXU matmuls; the im2col taps are
        # built on-chip with lane rolls + precomputed border masks.
        cout = w_ref.shape[1]
        acc = jnp.zeros((cout, hw), jnp.float32)
        for t in range(9):
            ky, kx = t // 3 - 1, t % 3 - 1
            off = ky * width + kx                      # tap[p] = act[p + off]
            if off == 0:
                tap = act
            else:
                tap = pltpu.roll(act, (-off) % hw, 1) * m_ref[t]
            acc = acc + jnp.dot(w_ref[t], tap,
                                preferred_element_type=jnp.float32)
        return acc + b_ref[...]

    def leaky(h):
        return jnp.where(h >= 0, h, NEG_SLOPE * h)

    x = x_ref[0]                                                   # (Cin, HW)
    h1 = leaky(conv3x3(x, w1_ref, b1_ref))                         # (32, HW)
    h2 = leaky(conv3x3(h1, w2_ref, b2_ref))                        # (32, HW)
    o3 = jnp.clip(conv3x3(h2, w3_ref, b3_ref), -CLAMP, CLAMP)      # (1, HW)

    # out[:, valid] = F @ out[:, valid]  as gather -> F -> scatter-set matmuls.
    vals = jnp.dot(o3, gt_ref[...], preferred_element_type=jnp.float32)          # (1, nv)
    proj = jnp.dot(vals, ft_ref[...], preferred_element_type=jnp.float32)        # (1, nv)
    scat = jnp.dot(proj - vals, g_ref[...], preferred_element_type=jnp.float32)  # (1, HW)
    o_ref[0] = o3 + scat


# ------------------------------ wrapper --------------------------------------

def _prep_conv_weight(w):
    """PyTorch (Cout, Cin, 3, 3) -> (9, Cout, Cin), tap index t = dy*3 + dx."""
    cout, cin = int(w.shape[0]), int(w.shape[1])
    return jnp.transpose(w, (2, 3, 0, 1)).reshape(9, cout, cin).astype(jnp.float32)


def _tap_masks(height, width):
    """(9, 1, H*W) 0/1 masks: which output pixels see a real (non-pad) input for each tap."""
    yy, xx = np.meshgrid(np.arange(height), np.arange(width), indexing="ij")
    m = np.zeros((9, 1, height * width), np.float32)
    for t in range(9):
        ky, kx = t // 3 - 1, t % 3 - 1
        valid = ((yy + ky >= 0) & (yy + ky < height) &
                 (xx + kx >= 0) & (xx + kx < width))
        m[t, 0] = valid.reshape(-1)
    return m


@jax.jit
def conv_policy_fast_forward(params, xvalid, yvalid, state, history=None):
    """Mirrors ConvPolicyFast.forward (the sigma argument is unused there)."""
    if state.ndim == 3:
        state = state[None]
    if state.ndim == 2:
        state = state[None, None]
    feats = jnp.concatenate([state, history], axis=1) if history is not None else state

    B, cin, H, W = feats.shape
    hw = H * W
    nf = int(params["w1"].shape[0])
    n_valid = int(xvalid.shape[0])

    x = feats.reshape(B, cin, hw).astype(jnp.float32)
    masks = jnp.asarray(_tap_masks(H, W))

    w1 = _prep_conv_weight(params["w1"])
    w2 = _prep_conv_weight(params["w2"])
    w3 = _prep_conv_weight(params["w3"])
    b1 = params["b1"].reshape(-1, 1).astype(jnp.float32)
    b2 = params["b2"].reshape(-1, 1).astype(jnp.float32)
    b3 = params["b3"].reshape(-1, 1).astype(jnp.float32)

    # Static one-hot gather/scatter matrices for the valid actuators: the
    # data-dependent indexing becomes tiny MXU matmuls inside the kernel.
    pos = xvalid.astype(jnp.int32) * W + yvalid.astype(jnp.int32)    # (n_valid,)
    hw_iota = jnp.arange(hw, dtype=jnp.int32)
    G = (pos[:, None] == hw_iota[None, :]).astype(jnp.float32)       # (nv, HW)
    GT = (hw_iota[:, None] == pos[None, :]).astype(jnp.float32)      # (HW, nv)
    FT = jnp.transpose(params["F"]).astype(jnp.float32)              # (nv, nv)

    out = pl.pallas_call(
        functools.partial(_policy_kernel, width=W),
        grid=(B,),
        out_shape=jax.ShapeDtypeStruct((B, 1, hw), jnp.float32),
        in_specs=[
            pl.BlockSpec((1, cin, hw), lambda b: (b, 0, 0)),        # x (per batch image)
            pl.BlockSpec((9, 1, hw), lambda b: (0, 0, 0)),          # tap border masks
            pl.BlockSpec((9, nf, cin), lambda b: (0, 0, 0)),        # w1
            pl.BlockSpec((nf, 1), lambda b: (0, 0)),                # b1
            pl.BlockSpec((9, nf, nf), lambda b: (0, 0, 0)),         # w2
            pl.BlockSpec((nf, 1), lambda b: (0, 0)),                # b2
            pl.BlockSpec((9, 1, nf), lambda b: (0, 0, 0)),          # w3
            pl.BlockSpec((1, 1), lambda b: (0, 0)),                 # b3
            pl.BlockSpec((hw, n_valid), lambda b: (0, 0)),          # G^T (gather)
            pl.BlockSpec((n_valid, n_valid), lambda b: (0, 0)),     # F^T
            pl.BlockSpec((n_valid, hw), lambda b: (0, 0)),          # G (scatter)
        ],
        out_specs=pl.BlockSpec((1, 1, hw), lambda b: (b, 0, 0)),
        compiler_params=pltpu.CompilerParams(
            dimension_semantics=("parallel",)),
    )(x, masks, w1, b1, w2, b2, w3, b3, GT, FT, G)

    return out.reshape(B, 1, H, W)


# --------------------------- pure-JAX reference ------------------------------

def _conv_ref(x, w, b):
    y = jax.lax.conv_general_dilated(
        x, w, window_strides=(1, 1), padding=((1, 1), (1, 1)),
        dimension_numbers=("NCHW", "OIHW", "NCHW"),
        precision=jax.lax.Precision.HIGHEST)
    return y + b[None, :, None, None]


def reference_forward(params, xvalid, yvalid, state, history=None):
    feats = jnp.concatenate([state, history], axis=1) if history is not None else state
    h = _conv_ref(feats, params["w1"], params["b1"])
    h = jnp.where(h >= 0, h, NEG_SLOPE * h)
    h = _conv_ref(h, params["w2"], params["b2"])
    h = jnp.where(h >= 0, h, NEG_SLOPE * h)
    out = _conv_ref(h, params["w3"], params["b3"])
    out = jnp.clip(out, -CLAMP, CLAMP)
    vals = out[:, 0, xvalid, yvalid]
    proj = jnp.einsum("ij,bj->bi", params["F"], vals,
                      precision=jax.lax.Precision.HIGHEST)
    return out.at[:, 0, xvalid, yvalid].set(proj)


# ------------------------------------ main -----------------------------------

if __name__ == "__main__":
    H = W = 16
    n_history = 2
    B = 2
    c_in = n_history * 2 - 1   # 3 = state (n_history ch) + history (n_history-1 ch)

    # Deterministic valid-actuator aperture (static index arrays, like the buffers).
    yy, xx = np.meshgrid(np.arange(H), np.arange(W), indexing="ij")
    rr = np.sqrt((yy - (H - 1) / 2) ** 2 + (xx - (W - 1) / 2) ** 2)
    mask = rr <= (H / 2 - 0.5)
    xvalid = jnp.asarray(np.nonzero(mask)[0], dtype=jnp.int32)
    yvalid = jnp.asarray(np.nonzero(mask)[1], dtype=jnp.int32)
    n_valid = int(xvalid.shape[0])

    key = jax.random.PRNGKey(0)
    ks = jax.random.split(key, 9)

    def winit(k, shape):
        fan_in = shape[1] * shape[2] * shape[3]
        return jax.random.normal(k, shape, jnp.float32) / np.sqrt(fan_in)

    params = {
        "w1": winit(ks[0], (N_FILT, c_in, 3, 3)),
        "b1": 0.01 * jax.random.normal(ks[1], (N_FILT,), jnp.float32),
        "w2": winit(ks[2], (N_FILT, N_FILT, 3, 3)),
        "b2": 0.01 * jax.random.normal(ks[3], (N_FILT,), jnp.float32),
        "w3": winit(ks[4], (1, N_FILT, 3, 3)),
        "b3": 0.01 * jax.random.normal(ks[5], (1,), jnp.float32),
        "F": jax.random.normal(ks[6], (n_valid, n_valid), jnp.float32) / np.sqrt(n_valid),
    }

    state = jax.random.normal(ks[7], (B, n_history, H, W), jnp.float32)
    history = jax.random.normal(ks[8], (B, n_history - 1, H, W), jnp.float32)

    out = conv_policy_fast_forward(params, xvalid, yvalid, state, history)
    out = jax.block_until_ready(out)
    assert out.shape == (B, 1, H, W)
    assert bool(jnp.all(jnp.isfinite(out)))

    ref = reference_forward(params, xvalid, yvalid, state, history)
    np.testing.assert_allclose(np.asarray(out), np.asarray(ref), rtol=2e-2, atol=2e-3)

    print("KERNEL_OK")
</pallas_src>

<mosaic_0001>
module attributes {stable_mosaic.version = 11 : i64} {
  func.func @_policy_kernel(%arg0: i32, %arg1: memref<1x3x256xf32, #tpu.memory_space<vmem>>, %arg2: memref<9x1x256xf32, #tpu.memory_space<vmem>>, %arg3: memref<9x32x3xf32, #tpu.memory_space<vmem>>, %arg4: memref<32x1xf32, #tpu.memory_space<vmem>>, %arg5: memref<9x32x32xf32, #tpu.memory_space<vmem>>, %arg6: memref<32x1xf32, #tpu.memory_space<vmem>>, %arg7: memref<9x1x32xf32, #tpu.memory_space<vmem>>, %arg8: memref<1x1xf32, #tpu.memory_space<vmem>>, %arg9: memref<256x172xf32, #tpu.memory_space<vmem>>, %arg10: memref<172x172xf32, #tpu.memory_space<vmem>>, %arg11: memref<172x256xf32, #tpu.memory_space<vmem>>, %arg12: memref<1x1x256xf32, #tpu.memory_space<vmem>>) attributes {dimension_semantics = [#tpu.dimension_semantics<parallel>], iteration_bounds = array<i64: 2>, scalar_prefetch = 0 : i64, scratch_operands = 0 : i64, tpu.core_type = #tpu.core_type<tc>, window_params = [{transform_indices = @transform_0, window_bounds = array<i64: 1, 3, 256>}, {pipeline_mode = #tpu.pipeline_mode<synchronous>, transform_indices = @transform_1, window_bounds = array<i64: 9, 1, 256>}, {pipeline_mode = #tpu.pipeline_mode<synchronous>, transform_indices = @transform_2, window_bounds = array<i64: 9, 32, 3>}, {pipeline_mode = #tpu.pipeline_mode<synchronous>, transform_indices = @transform_3, window_bounds = array<i64: 32, 1>}, {pipeline_mode = #tpu.pipeline_mode<synchronous>, transform_indices = @transform_4, window_bounds = array<i64: 9, 32, 32>}, {pipeline_mode = #tpu.pipeline_mode<synchronous>, transform_indices = @transform_5, window_bounds = array<i64: 32, 1>}, {pipeline_mode = #tpu.pipeline_mode<synchronous>, transform_indices = @transform_6, window_bounds = array<i64: 9, 1, 32>}, {pipeline_mode = #tpu.pipeline_mode<synchronous>, transform_indices = @transform_7, window_bounds = array<i64: 1, 1>}, {pipeline_mode = #tpu.pipeline_mode<synchronous>, transform_indices = @transform_8, window_bounds = array<i64: 256, 172>}, {pipeline_mode = #tpu.pipeline_mode<synchronous>, transform_indices = @transform_9, window_bounds = array<i64: 172, 172>}, {pipeline_mode = #tpu.pipeline_mode<synchronous>, transform_indices = @transform_10, window_bounds = array<i64: 172, 256>}, {transform_indices = @transform_11, window_bounds = array<i64: 1, 1, 256>}]} {
    %c0 = arith.constant 0 : index
    %c0_0 = arith.constant 0 : index
    %c0_1 = arith.constant 0 : index
    %0 = vector.load %arg1[%c0, %c0_0, %c0_1] : memref<1x3x256xf32, #tpu.memory_space<vmem>>, vector<1x3x256xf32>
    %1 = vector.shape_cast %0 : vector<1x3x256xf32> to vector<3x256xf32>
    %cst = arith.constant 0.000000e+00 : f32
    %2 = vector.broadcast %cst : f32 to vector<32x256xf32>
    %c17_i32 = arith.constant 17 : i32
    %3 = tpu.dynamic_rotate %1 by %c17_i32 dim 1 : vector<3x256xf32>, i32 -> vector<3x256xf32>
    %c0_2 = arith.constant 0 : index
    %c0_3 = arith.constant 0 : index
    %c0_4 = arith.constant 0 : index
    %4 = vector.load %arg2[%c0_2, %c0_3, %c0_4] : memref<9x1x256xf32, #tpu.memory_space<vmem>>, vector<1x1x256xf32>
    %5 = vector.shape_cast %4 : vector<1x1x256xf32> to vector<1x256xf32>
    %6 = vector.broadcast %5 : vector<1x256xf32> to vector<3x256xf32>
    %7 = arith.mulf %3, %6 : vector<3x256xf32>
    %c0_5 = arith.constant 0 : index
    %c0_6 = arith.constant 0 : index
    %c0_7 = arith.constant 0 : index
    %8 = vector.load %arg3[%c0_5, %c0_6, %c0_7] : memref<9x32x3xf32, #tpu.memory_space<vmem>>, vector<1x32x3xf32>
    %9 = vector.shape_cast %8 : vector<1x32x3xf32> to vector<32x3xf32>
    %cst_8 = arith.constant dense<0.000000e+00> : vector<32x256xf32>
    %10 = tpu.matmul %9, %7, %cst_8 {dimension_numbers = #tpu.dot_dimension_numbers<[1], [0], [0], [1], [0, 0, 1, 1], [], []>} : vector<32x3xf32>, vector<3x256xf32>, vector<32x256xf32> -> vector<32x256xf32>
    %11 = arith.addf %2, %10 : vector<32x256xf32>
    %c16_i32 = arith.constant 16 : i32
    %12 = tpu.dynamic_rotate %1 by %c16_i32 dim 1 : vector<3x256xf32>, i32 -> vector<3x256xf32>
    %c1 = arith.constant 1 : index
    %c0_9 = arith.constant 0 : index
    %c0_10 = arith.constant 0 : index
    %13 = vector.load %arg2[%c1, %c0_9, %c0_10] : memref<9x1x256xf32, #tpu.memory_space<vmem>>, vector<1x1x256xf32>
    %14 = vector.shape_cast %13 : vector<1x1x256xf32> to vector<1x256xf32>
    %15 = vector.broadcast %14 : vector<1x256xf32> to vector<3x256xf32>
    %16 = arith.mulf %12, %15 : vector<3x256xf32>
    %c1_11 = arith.constant 1 : index
    %c0_12 = arith.constant 0 : index
    %c0_13 = arith.constant 0 : index
    %17 = vector.load %arg3[%c1_11, %c0_12, %c0_13] : memref<9x32x3xf32, #tpu.memory_space<vmem>>, vector<1x32x3xf32>
    %18 = vector.shape_cast %17 : vector<1x32x3xf32> to vector<32x3xf32>
    %cst_14 = arith.constant dense<0.000000e+00> : vector<32x256xf32>
    %19 = tpu.matmul %18, %16, %cst_14 {dimension_numbers = #tpu.dot_dimension_numbers<[1], [0], [0], [1], [0, 0, 1, 1], [], []>} : vector<32x3xf32>, vector<3x256xf32>, vector<32x256xf32> -> vector<32x256xf32>
    %20 = arith.addf %11, %19 : vector<32x256xf32>
    %c15_i32 = arith.constant 15 : i32
    %21 = tpu.dynamic_rotate %1 by %c15_i32 dim 1 : vector<3x256xf32>, i32 -> vector<3x256xf32>
    %c2 = arith.constant 2 : index
    %c0_15 = arith.constant 0 : index
    %c0_16 = arith.constant 0 : index
    %22 = vector.load %arg2[%c2, %c0_15, %c0_16] : memref<9x1x256xf32, #tpu.memory_space<vmem>>, vector<1x1x256xf32>
    %23 = vector.shape_cast %22 : vector<1x1x256xf32> to vector<1x256xf32>
    %24 = vector.broadcast %23 : vector<1x256xf32> to vector<3x256xf32>
    %25 = arith.mulf %21, %24 : vector<3x256xf32>
    %c2_17 = arith.constant 2 : index
    %c0_18 = arith.constant 0 : index
    %c0_19 = arith.constant 0 : index
    %26 = vector.load %arg3[%c2_17, %c0_18, %c0_19] : memref<9x32x3xf32, #tpu.memory_space<vmem>>, vector<1x32x3xf32>
    %27 = vector.shape_cast %26 : vector<1x32x3xf32> to vector<32x3xf32>
    %cst_20 = arith.constant dense<0.000000e+00> : vector<32x256xf32>
    %28 = tpu.matmul %27, %25, %cst_20 {dimension_numbers = #tpu.dot_dimension_numbers<[1], [0], [0], [1], [0, 0, 1, 1], [], []>} : vector<32x3xf32>, vector<3x256xf32>, vector<32x256xf32> -> vector<32x256xf32>
    %29 = arith.addf %20, %28 : vector<32x256xf32>
    %c1_i32 = arith.constant 1 : i32
    %30 = tpu.dynamic_rotate %1 by %c1_i32 dim 1 : vector<3x256xf32>, i32 -> vector<3x256xf32>
    %c3 = arith.constant 3 : index
    %c0_21 = arith.constant 0 : index
    %c0_22 = arith.constant 0 : index
    %31 = vector.load %arg2[%c3, %c0_21, %c0_22] : memref<9x1x256xf32, #tpu.memory_space<vmem>>, vector<1x1x256xf32>
    %32 = vector.shape_cast %31 : vector<1x1x256xf32> to vector<1x256xf32>
    %33 = vector.broadcast %32 : vector<1x256xf32> to vector<3x256xf32>
    %34 = arith.mulf %30, %33 : vector<3x256xf32>
    %c3_23 = arith.constant 3 : index
    %c0_24 = arith.constant 0 : index
    %c0_25 = arith.constant 0 : index
    %35 = vector.load %arg3[%c3_23, %c0_24, %c0_25] : memref<9x32x3xf32, #tpu.memory_space<vmem>>, vector<1x32x3xf32>
    %36 = vector.shape_cast %35 : vector<1x32x3xf32> to vector<32x3xf32>
    %cst_26 = arith.constant dense<0.000000e+00> : vector<32x256xf32>
    %37 = tpu.matmul %36, %34, %cst_26 {dimension_numbers = #tpu.dot_dimension_numbers<[1], [0], [0], [1], [0, 0, 1, 1], [], []>} : vector<32x3xf32>, vector<3x256xf32>, vector<32x256xf32> -> vector<32x256xf32>
    %38 = arith.addf %29, %37 : vector<32x256xf32>
    %c4 = arith.constant 4 : index
    %c0_27 = arith.constant 0 : index
    %c0_28 = arith.constant 0 : index
    %39 = vector.load %arg3[%c4, %c0_27, %c0_28] : memref<9x32x3xf32, #tpu.memory_space<vmem>>, vector<1x32x3xf32>
    %40 = vector.shape_cast %39 : vector<1x32x3xf32> to vector<32x3xf32>
    %cst_29 = arith.constant dense<0.000000e+00> : vector<32x256xf32>
    %41 = tpu.matmul %40, %1, %cst_29 {dimension_numbers = #tpu.dot_dimension_numbers<[1], [0], [0], [1], [0, 0, 1, 1], [], []>} : vector<32x3xf32>, vector<3x256xf32>, vector<32x256xf32> -> vector<32x256xf32>
    %42 = arith.addf %38, %41 : vector<32x256xf32>
    %c255_i32 = arith.constant 255 : i32
    %43 = tpu.dynamic_rotate %1 by %c255_i32 dim 1 : vector<3x256xf32>, i32 -> vector<3x256xf32>
    %c5 = arith.constant 5 : index
    %c0_30 = arith.constant 0 : index
    %c0_31 = arith.constant 0 : index
    %44 = vector.load %arg2[%c5, %c0_30, %c0_31] : memref<9x1x256xf32, #tpu.memory_space<vmem>>, vector<1x1x256xf32>
    %45 = vector.shape_cast %44 : vector<1x1x256xf32> to vector<1x256xf32>
    %46 = vector.broadcast %45 : vector<1x256xf32> to vector<3x256xf32>
    %47 = arith.mulf %43, %46 : vector<3x256xf32>
    %c5_32 = arith.constant 5 : index
    %c0_33 = arith.constant 0 : index
    %c0_34 = arith.constant 0 : index
    %48 = vector.load %arg3[%c5_32, %c0_33, %c0_34] : memref<9x32x3xf32, #tpu.memory_space<vmem>>, vector<1x32x3xf32>
    %49 = vector.shape_cast %48 : vector<1x32x3xf32> to vector<32x3xf32>
    %cst_35 = arith.constant dense<0.000000e+00> : vector<32x256xf32>
    %50 = tpu.matmul %49, %47, %cst_35 {dimension_numbers = #tpu.dot_dimension_numbers<[1], [0], [0], [1], [0, 0, 1, 1], [], []>} : vector<32x3xf32>, vector<3x256xf32>, vector<32x256xf32> -> vector<32x256xf32>
    %51 = arith.addf %42, %50 : vector<32x256xf32>
    %c241_i32 = arith.constant 241 : i32
    %52 = tpu.dynamic_rotate %1 by %c241_i32 dim 1 : vector<3x256xf32>, i32 -> vector<3x256xf32>
    %c6 = arith.constant 6 : index
    %c0_36 = arith.constant 0 : index
    %c0_37 = arith.constant 0 : index
    %53 = vector.load %arg2[%c6, %c0_36, %c0_37] : memref<9x1x256xf32, #tpu.memory_space<vmem>>, vector<1x1x256xf32>
    %54 = vector.shape_cast %53 : vector<1x1x256xf32> to vector<1x256xf32>
    %55 = vector.broadcast %54 : vector<1x256xf32> to vector<3x256xf32>
    %56 = arith.mulf %52, %55 : vector<3x256xf32>
    %c6_38 = arith.constant 6 : index
    %c0_39 = arith.constant 0 : index
    %c0_40 = arith.constant 0 : index
    %57 = vector.load %arg3[%c6_38, %c0_39, %c0_40] : memref<9x32x3xf32, #tpu.memory_space<vmem>>, vector<1x32x3xf32>
    %58 = vector.shape_cast %57 : vector<1x32x3xf32> to vector<32x3xf32>
    %cst_41 = arith.constant dense<0.000000e+00> : vector<32x256xf32>
    %59 = tpu.matmul %58, %56, %cst_41 {dimension_numbers = #tpu.dot_dimension_numbers<[1], [0], [0], [1], [0, 0, 1, 1], [], []>} : vector<32x3xf32>, vector<3x256xf32>, vector<32x256xf32> -> vector<32x256xf32>
    %60 = arith.addf %51, %59 : vector<32x256xf32>
    %c240_i32 = arith.constant 240 : i32
    %61 = tpu.dynamic_rotate %1 by %c240_i32 dim 1 : vector<3x256xf32>, i32 -> vector<3x256xf32>
    %c7 = arith.constant 7 : index
    %c0_42 = arith.constant 0 : index
    %c0_43 = arith.constant 0 : index
    %62 = vector.load %arg2[%c7, %c0_42, %c0_43] : memref<9x1x256xf32, #tpu.memory_space<vmem>>, vector<1x1x256xf32>
    %63 = vector.shape_cast %62 : vector<1x1x256xf32> to vector<1x256xf32>
    %64 = vector.broadcast %63 : vector<1x256xf32> to vector<3x256xf32>
    %65 = arith.mulf %61, %64 : vector<3x256xf32>
    %c7_44 = arith.constant 7 : index
    %c0_45 = arith.constant 0 : index
    %c0_46 = arith.constant 0 : index
    %66 = vector.load %arg3[%c7_44, %c0_45, %c0_46] : memref<9x32x3xf32, #tpu.memory_space<vmem>>, vector<1x32x3xf32>
    %67 = vector.shape_cast %66 : vector<1x32x3xf32> to vector<32x3xf32>
    %cst_47 = arith.constant dense<0.000000e+00> : vector<32x256xf32>
    %68 = tpu.matmul %67, %65, %cst_47 {dimension_numbers = #tpu.dot_dimension_numbers<[1], [0], [0], [1], [0, 0, 1, 1], [], []>} : vector<32x3xf32>, vector<3x256xf32>, vector<32x256xf32> -> vector<32x256xf32>
    %69 = arith.addf %60, %68 : vector<32x256xf32>
    %c239_i32 = arith.constant 239 : i32
    %70 = tpu.dynamic_rotate %1 by %c239_i32 dim 1 : vector<3x256xf32>, i32 -> vector<3x256xf32>
    %c8 = arith.constant 8 : index
    %c0_48 = arith.constant 0 : index
    %c0_49 = arith.constant 0 : index
    %71 = vector.load %arg2[%c8, %c0_48, %c0_49] : memref<9x1x256xf32, #tpu.memory_space<vmem>>, vector<1x1x256xf32>
    %72 = vector.shape_cast %71 : vector<1x1x256xf32> to vector<1x256xf32>
    %73 = vector.broadcast %72 : vector<1x256xf32> to vector<3x256xf32>
    %74 = arith.mulf %70, %73 : vector<3x256xf32>
    %c8_50 = arith.constant 8 : index
    %c0_51 = arith.constant 0 : index
    %c0_52 = arith.constant 0 : index
    %75 = vector.load %arg3[%c8_50, %c0_51, %c0_52] : memref<9x32x3xf32, #tpu.memory_space<vmem>>, vector<1x32x3xf32>
    %76 = vector.shape_cast %75 : vector<1x32x3xf32> to vector<32x3xf32>
    %cst_53 = arith.constant dense<0.000000e+00> : vector<32x256xf32>
    %77 = tpu.matmul %76, %74, %cst_53 {dimension_numbers = #tpu.dot_dimension_numbers<[1], [0], [0], [1], [0, 0, 1, 1], [], []>} : vector<32x3xf32>, vector<3x256xf32>, vector<32x256xf32> -> vector<32x256xf32>
    %78 = arith.addf %69, %77 : vector<32x256xf32>
    %c0_54 = arith.constant 0 : index
    %c0_55 = arith.constant 0 : index
    %79 = vector.load %arg4[%c0_54, %c0_55] : memref<32x1xf32, #tpu.memory_space<vmem>>, vector<32x1xf32>
    %80 = vector.broadcast %79 : vector<32x1xf32> to vector<32x256xf32>
    %81 = arith.addf %78, %80 : vector<32x256xf32>
    %cst_56 = arith.constant 0.000000e+00 : f32
    %82 = vector.broadcast %cst_56 : f32 to vector<32x256xf32>
    %83 = arith.cmpf oge, %81, %82 : vector<32x256xf32>
    %cst_57 = arith.constant 0.00999999977 : f32
    %84 = vector.broadcast %cst_57 : f32 to vector<32x256xf32>
    %85 = arith.mulf %84, %81 : vector<32x256xf32>
    %86 = arith.select %83, %81, %85 : vector<32x256xi1>, vector<32x256xf32>
    %cst_58 = arith.constant 0.000000e+00 : f32
    %87 = vector.broadcast %cst_58 : f32 to vector<32x256xf32>
    %c17_i32_59 = arith.constant 17 : i32
    %88 = tpu.dynamic_rotate %86 by %c17_i32_59 dim 1 : vector<32x256xf32>, i32 -> vector<32x256xf32>
    %c0_60 = arith.constant 0 : index
    %c0_61 = arith.constant 0 : index
    %c0_62 = arith.constant 0 : index
    %89 = vector.load %arg2[%c0_60, %c0_61, %c0_62] : memref<9x1x256xf32, #tpu.memory_space<vmem>>, vector<1x1x256xf32>
    %90 = vector.shape_cast %89 : vector<1x1x256xf32> to vector<1x256xf32>
    %91 = vector.broadcast %90 : vector<1x256xf32> to vector<32x256xf32>
    %92 = arith.mulf %88, %91 : vector<32x256xf32>
    %c0_63 = arith.constant 0 : index
    %c0_64 = arith.constant 0 : index
    %c0_65 = arith.constant 0 : index
    %93 = vector.load %arg5[%c0_63, %c0_64, %c0_65] : memref<9x32x32xf32, #tpu.memory_space<vmem>>, vector<1x32x32xf32>
    %94 = vector.shape_cast %93 : vector<1x32x32xf32> to vector<32x32xf32>
    %cst_66 = arith.constant dense<0.000000e+00> : vector<32x256xf32>
    %95 = tpu.matmul %94, %92, %cst_66 {dimension_numbers = #tpu.dot_dimension_numbers<[1], [0], [0], [1], [0, 0, 1, 1], [], []>} : vector<32x32xf32>, vector<32x256xf32>, vector<32x256xf32> -> vector<32x256xf32>
    %96 = arith.addf %87, %95 : vector<32x256xf32>
    %c16_i32_67 = arith.constant 16 : i32
    %97 = tpu.dynamic_rotate %86 by %c16_i32_67 dim 1 : vector<32x256xf32>, i32 -> vector<32x256xf32>
    %c1_68 = arith.constant 1 : index
    %c0_69 = arith.constant 0 : index
    %c0_70 = arith.constant 0 : index
    %98 = vector.load %arg2[%c1_68, %c0_69, %c0_70] : memref<9x1x256xf32, #tpu.memory_space<vmem>>, vector<1x1x256xf32>
    %99 = vector.shape_cast %98 : vector<1x1x256xf32> to vector<1x256xf32>
    %100 = vector.broadcast %99 : vector<1x256xf32> to vector<32x256xf32>
    %101 = arith.mulf %97, %100 : vector<32x256xf32>
    %c1_71 = arith.constant 1 : index
    %c0_72 = arith.constant 0 : index
    %c0_73 = arith.constant 0 : index
    %102 = vector.load %arg5[%c1_71, %c0_72, %c0_73] : memref<9x32x32xf32, #tpu.memory_space<vmem>>, vector<1x32x32xf32>
    %103 = vector.shape_cast %102 : vector<1x32x32xf32> to vector<32x32xf32>
    %cst_74 = arith.constant dense<0.000000e+00> : vector<32x256xf32>
    %104 = tpu.matmul %103, %101, %cst_74 {dimension_numbers = #tpu.dot_dimension_numbers<[1], [0], [0], [1], [0, 0, 1, 1], [], []>} : vector<32x32xf32>, vector<32x256xf32>, vector<32x256xf32> -> vector<32x256xf32>
    %105 = arith.addf %96, %104 : vector<32x256xf32>
    %c15_i32_75 = arith.constant 15 : i32
    %106 = tpu.dynamic_rotate %86 by %c15_i32_75 dim 1 : vector<32x256xf32>, i32 -> vector<32x256xf32>
    %c2_76 = arith.constant 2 : index
    %c0_77 = arith.constant 0 : index
    %c0_78 = arith.constant 0 : index
    %107 = vector.load %arg2[%c2_76, %c0_77, %c0_78] : memref<9x1x256xf32, #tpu.memory_space<vmem>>, vector<1x1x256xf32>
    %108 = vector.shape_cast %107 : vector<1x1x256xf32> to vector<1x256xf32>
    %109 = vector.broadcast %108 : vector<1x256xf32> to vector<32x256xf32>
    %110 = arith.mulf %106, %109 : vector<32x256xf32>
    %c2_79 = arith.constant 2 : index
    %c0_80 = arith.constant 0 : index
    %c0_81 = arith.constant 0 : index
    %111 = vector.load %arg5[%c2_79, %c0_80, %c0_81] : memref<9x32x32xf32, #tpu.memory_space<vmem>>, vector<1x32x32xf32>
    %112 = vector.shape_cast %111 : vector<1x32x32xf32> to vector<32x32xf32>
    %cst_82 = arith.constant dense<0.000000e+00> : vector<32x256xf32>
    %113 = tpu.matmul %112, %110, %cst_82 {dimension_numbers = #tpu.dot_dimension_numbers<[1], [0], [0], [1], [0, 0, 1, 1], [], []>} : vector<32x32xf32>, vector<32x256xf32>, vector<32x256xf32> -> vector<32x256xf32>
    %114 = arith.addf %105, %113 : vector<32x256xf32>
    %c1_i32_83 = arith.constant 1 : i32
    %115 = tpu.dynamic_rotate %86 by %c1_i32_83 dim 1 : vector<32x256xf32>, i32 -> vector<32x256xf32>
    %c3_84 = arith.constant 3 : index
    %c0_85 = arith.constant 0 : index
    %c0_86 = arith.constant 0 : index
    %116 = vector.load %arg2[%c3_84, %c0_85, %c0_86] : memref<9x1x256xf32, #tpu.memory_space<vmem>>, vector<1x1x256xf32>
    %117 = vector.shape_cast %116 : vector<1x1x256xf32> to vector<1x256xf32>
    %118 = vector.broadcast %117 : vector<1x256xf32> to vector<32x256xf32>
    %119 = arith.mulf %115, %118 : vector<32x256xf32>
    %c3_87 = arith.constant 3 : index
    %c0_88 = arith.constant 0 : index
    %c0_89 = arith.constant 0 : index
    %120 = vector.load %arg5[%c3_87, %c0_88, %c0_89] : memref<9x32x32xf32, #tpu.memory_space<vmem>>, vector<1x32x32xf32>
    %121 = vector.shape_cast %120 : vector<1x32x32xf32> to vector<32x32xf32>
    %cst_90 = arith.constant dense<0.000000e+00> : vector<32x256xf32>
    %122 = tpu.matmul %121, %119, %cst_90 {dimension_numbers = #tpu.dot_dimension_numbers<[1], [0], [0], [1], [0, 0, 1, 1], [], []>} : vector<32x32xf32>, vector<32x256xf32>, vector<32x256xf32> -> vector<32x256xf32>
    %123 = arith.addf %114, %122 : vector<32x256xf32>
    %c4_91 = arith.constant 4 : index
    %c0_92 = arith.constant 0 : index
    %c0_93 = arith.constant 0 : index
    %124 = vector.load %arg5[%c4_91, %c0_92, %c0_93] : memref<9x32x32xf32, #tpu.memory_space<vmem>>, vector<1x32x32xf32>
    %125 = vector.shape_cast %124 : vector<1x32x32xf32> to vector<32x32xf32>
    %cst_94 = arith.constant dense<0.000000e+00> : vector<32x256xf32>
    %126 = tpu.matmul %125, %86, %cst_94 {dimension_numbers = #tpu.dot_dimension_numbers<[1], [0], [0], [1], [0, 0, 1, 1], [], []>} : vector<32x32xf32>, vector<32x256xf32>, vector<32x256xf32> -> vector<32x256xf32>
    %127 = arith.addf %123, %126 : vector<32x256xf32>
    %c255_i32_95 = arith.constant 255 : i32
    %128 = tpu.dynamic_rotate %86 by %c255_i32_95 dim 1 : vector<32x256xf32>, i32 -> vector<32x256xf32>
    %c5_96 = arith.constant 5 : index
    %c0_97 = arith.constant 0 : index
    %c0_98 = arith.constant 0 : index
    %129 = vector.load %arg2[%c5_96, %c0_97, %c0_98] : memref<9x1x256xf32, #tpu.memory_space<vmem>>, vector<1x1x256xf32>
    %130 = vector.shape_cast %129 : vector<1x1x256xf32> to vector<1x256xf32>
    %131 = vector.broadcast %130 : vector<1x256xf32> to vector<32x256xf32>
    %132 = arith.mulf %128, %131 : vector<32x256xf32>
    %c5_99 = arith.constant 5 : index
    %c0_100 = arith.constant 0 : index
    %c0_101 = arith.constant 0 : index
    %133 = vector.load %arg5[%c5_99, %c0_100, %c0_101] : memref<9x32x32xf32, #tpu.memory_space<vmem>>, vector<1x32x32xf32>
    %134 = vector.shape_cast %133 : vector<1x32x32xf32> to vector<32x32xf32>
    %cst_102 = arith.constant dense<0.000000e+00> : vector<32x256xf32>
    %135 = tpu.matmul %134, %132, %cst_102 {dimension_numbers = #tpu.dot_dimension_numbers<[1], [0], [0], [1], [0, 0, 1, 1], [], []>} : vector<32x32xf32>, vector<32x256xf32>, vector<32x256xf32> -> vector<32x256xf32>
    %136 = arith.addf %127, %135 : vector<32x256xf32>
    %c241_i32_103 = arith.constant 241 : i32
    %137 = tpu.dynamic_rotate %86 by %c241_i32_103 dim 1 : vector<32x256xf32>, i32 -> vector<32x256xf32>
    %c6_104 = arith.constant 6 : index
    %c0_105 = arith.constant 0 : index
    %c0_106 = arith.constant 0 : index
    %138 = vector.load %arg2[%c6_104, %c0_105, %c0_106] : memref<9x1x256xf32, #tpu.memory_space<vmem>>, vector<1x1x256xf32>
    %139 = vector.shape_cast %138 : vector<1x1x256xf32> to vector<1x256xf32>
    %140 = vector.broadcast %139 : vector<1x256xf32> to vector<32x256xf32>
    %141 = arith.mulf %137, %140 : vector<32x256xf32>
    %c6_107 = arith.constant 6 : index
    %c0_108 = arith.constant 0 : index
    %c0_109 = arith.constant 0 : index
    %142 = vector.load %arg5[%c6_107, %c0_108, %c0_109] : memref<9x32x32xf32, #tpu.memory_space<vmem>>, vector<1x32x32xf32>
    %143 = vector.shape_cast %142 : vector<1x32x32xf32> to vector<32x32xf32>
    %cst_110 = arith.constant dense<0.000000e+00> : vector<32x256xf32>
    %144 = tpu.matmul %143, %141, %cst_110 {dimension_numbers = #tpu.dot_dimension_numbers<[1], [0], [0], [1], [0, 0, 1, 1], [], []>} : vector<32x32xf32>, vector<32x256xf32>, vector<32x256xf32> -> vector<32x256xf32>
    %145 = arith.addf %136, %144 : vector<32x256xf32>
    %c240_i32_111 = arith.constant 240 : i32
    %146 = tpu.dynamic_rotate %86 by %c240_i32_111 dim 1 : vector<32x256xf32>, i32 -> vector<32x256xf32>
    %c7_112 = arith.constant 7 : index
    %c0_113 = arith.constant 0 : index
    %c0_114 = arith.constant 0 : index
    %147 = vector.load %arg2[%c7_112, %c0_113, %c0_114] : memref<9x1x256xf32, #tpu.memory_space<vmem>>, vector<1x1x256xf32>
    %148 = vector.shape_cast %147 : vector<1x1x256xf32> to vector<1x256xf32>
    %149 = vector.broadcast %148 : vector<1x256xf32> to vector<32x256xf32>
    %150 = arith.mulf %146, %149 : vector<32x256xf32>
    %c7_115 = arith.constant 7 : index
    %c0_116 = arith.constant 0 : index
    %c0_117 = arith.constant 0 : index
    %151 = vector.load %arg5[%c7_115, %c0_116, %c0_117] : memref<9x32x32xf32, #tpu.memory_space<vmem>>, vector<1x32x32xf32>
    %152 = vector.shape_cast %151 : vector<1x32x32xf32> to vector<32x32xf32>
    %cst_118 = arith.constant dense<0.000000e+00> : vector<32x256xf32>
    %153 = tpu.matmul %152, %150, %cst_118 {dimension_numbers = #tpu.dot_dimension_numbers<[1], [0], [0], [1], [0, 0, 1, 1], [], []>} : vector<32x32xf32>, vector<32x256xf32>, vector<32x256xf32> -> vector<32x256xf32>
    %154 = arith.addf %145, %153 : vector<32x256xf32>
    %c239_i32_119 = arith.constant 239 : i32
    %155 = tpu.dynamic_rotate %86 by %c239_i32_119 dim 1 : vector<32x256xf32>, i32 -> vector<32x256xf32>
    %c8_120 = arith.constant 8 : index
    %c0_121 = arith.constant 0 : index
    %c0_122 = arith.constant 0 : index
    %156 = vector.load %arg2[%c8_120, %c0_121, %c0_122] : memref<9x1x256xf32, #tpu.memory_space<vmem>>, vector<1x1x256xf32>
    %157 = vector.shape_cast %156 : vector<1x1x256xf32> to vector<1x256xf32>
    %158 = vector.broadcast %157 : vector<1x256xf32> to vector<32x256xf32>
    %159 = arith.mulf %155, %158 : vector<32x256xf32>
    %c8_123 = arith.constant 8 : index
    %c0_124 = arith.constant 0 : index
    %c0_125 = arith.constant 0 : index
    %160 = vector.load %arg5[%c8_123, %c0_124, %c0_125] : memref<9x32x32xf32, #tpu.memory_space<vmem>>, vector<1x32x32xf32>
    %161 = vector.shape_cast %160 : vector<1x32x32xf32> to vector<32x32xf32>
    %cst_126 = arith.constant dense<0.000000e+00> : vector<32x256xf32>
    %162 = tpu.matmul %161, %159, %cst_126 {dimension_numbers = #tpu.dot_dimension_numbers<[1], [0], [0], [1], [0, 0, 1, 1], [], []>} : vector<32x32xf32>, vector<32x256xf32>, vector<32x256xf32> -> vector<32x256xf32>
    %163 = arith.addf %154, %162 : vector<32x256xf32>
    %c0_127 = arith.constant 0 : index
    %c0_128 = arith.constant 0 : index
    %164 = vector.load %arg6[%c0_127, %c0_128] : memref<32x1xf32, #tpu.memory_space<vmem>>, vector<32x1xf32>
    %165 = vector.broadcast %164 : vector<32x1xf32> to vector<32x256xf32>
    %166 = arith.addf %163, %165 : vector<32x256xf32>
    %cst_129 = arith.constant 0.000000e+00 : f32
    %167 = vector.broadcast %cst_129 : f32 to vector<32x256xf32>
    %168 = arith.cmpf oge, %166, %167 : vector<32x256xf32>
    %cst_130 = arith.constant 0.00999999977 : f32
    %169 = vector.broadcast %cst_130 : f32 to vector<32x256xf32>
    %170 = arith.mulf %169, %166 : vector<32x256xf32>
    %171 = arith.select %168, %166, %170 : vector<32x256xi1>, vector<32x256xf32>
    %cst_131 = arith.constant 0.000000e+00 : f32
    %172 = vector.broadcast %cst_131 : f32 to vector<1x256xf32>
    %c17_i32_132 = arith.constant 17 : i32
    %173 = tpu.dynamic_rotate %171 by %c17_i32_132 dim 1 : vector<32x256xf32>, i32 -> vector<32x256xf32>
    %c0_133 = arith.constant 0 : index
    %c0_134 = arith.constant 0 : index
    %c0_135 = arith.constant 0 : index
    %174 = vector.load %arg2[%c0_133, %c0_134, %c0_135] : memref<9x1x256xf32, #tpu.memory_space<vmem>>, vector<1x1x256xf32>
    %175 = vector.shape_cast %174 : vector<1x1x256xf32> to vector<1x256xf32>
    %176 = vector.broadcast %175 : vector<1x256xf32> to vector<32x256xf32>
    %177 = arith.mulf %173, %176 : vector<32x256xf32>
    %c0_136 = arith.constant 0 : index
    %c0_137 = arith.constant 0 : index
    %c0_138 = arith.constant 0 : index
    %178 = vector.load %arg7[%c0_136, %c0_137, %c0_138] : memref<9x1x32xf32, #tpu.memory_space<vmem>>, vector<1x1x32xf32>
    %179 = vector.shape_cast %178 : vector<1x1x32xf32> to vector<1x32xf32>
    %cst_139 = arith.constant dense<0.000000e+00> : vector<1x256xf32>
    %180 = tpu.matmul %179, %177, %cst_139 {dimension_numbers = #tpu.dot_dimension_numbers<[1], [0], [0], [1], [0, 0, 1, 1], [], []>} : vector<1x32xf32>, vector<32x256xf32>, vector<1x256xf32> -> vector<1x256xf32>
    %181 = arith.addf %172, %180 : vector<1x256xf32>
    %c16_i32_140 = arith.constant 16 : i32
    %182 = tpu.dynamic_rotate %171 by %c16_i32_140 dim 1 : vector<32x256xf32>, i32 -> vector<32x256xf32>
    %c1_141 = arith.constant 1 : index
    %c0_142 = arith.constant 0 : index
    %c0_143 = arith.constant 0 : index
    %183 = vector.load %arg2[%c1_141, %c0_142, %c0_143] : memref<9x1x256xf32, #tpu.memory_space<vmem>>, vector<1x1x256xf32>
    %184 = vector.shape_cast %183 : vector<1x1x256xf32> to vector<1x256xf32>
    %185 = vector.broadcast %184 : vector<1x256xf32> to vector<32x256xf32>
    %186 = arith.mulf %182, %185 : vector<32x256xf32>
    %c1_144 = arith.constant 1 : index
    %c0_145 = arith.constant 0 : index
    %c0_146 = arith.constant 0 : index
    %187 = vector.load %arg7[%c1_144, %c0_145, %c0_146] : memref<9x1x32xf32, #tpu.memory_space<vmem>>, vector<1x1x32xf32>
    %188 = vector.shape_cast %187 : vector<1x1x32xf32> to vector<1x32xf32>
    %cst_147 = arith.constant dense<0.000000e+00> : vector<1x256xf32>
    %189 = tpu.matmul %188, %186, %cst_147 {dimension_numbers = #tpu.dot_dimension_numbers<[1], [0], [0], [1], [0, 0, 1, 1], [], []>} : vector<1x32xf32>, vector<32x256xf32>, vector<1x256xf32> -> vector<1x256xf32>
    %190 = arith.addf %181, %189 : vector<1x256xf32>
    %c15_i32_148 = arith.constant 15 : i32
    %191 = tpu.dynamic_rotate %171 by %c15_i32_148 dim 1 : vector<32x256xf32>, i32 -> vector<32x256xf32>
    %c2_149 = arith.constant 2 : index
    %c0_150 = arith.constant 0 : index
    %c0_151 = arith.constant 0 : index
    %192 = vector.load %arg2[%c2_149, %c0_150, %c0_151] : memref<9x1x256xf32, #tpu.memory_space<vmem>>, vector<1x1x256xf32>
    %193 = vector.shape_cast %192 : vector<1x1x256xf32> to vector<1x256xf32>
    %194 = vector.broadcast %193 : vector<1x256xf32> to vector<32x256xf32>
    %195 = arith.mulf %191, %194 : vector<32x256xf32>
    %c2_152 = arith.constant 2 : index
    %c0_153 = arith.constant 0 : index
    %c0_154 = arith.constant 0 : index
    %196 = vector.load %arg7[%c2_152, %c0_153, %c0_154] : memref<9x1x32xf32, #tpu.memory_space<vmem>>, vector<1x1x32xf32>
    %197 = vector.shape_cast %196 : vector<1x1x32xf32> to vector<1x32xf32>
    %cst_155 = arith.constant dense<0.000000e+00> : vector<1x256xf32>
    %198 = tpu.matmul %197, %195, %cst_155 {dimension_numbers = #tpu.dot_dimension_numbers<[1], [0], [0], [1], [0, 0, 1, 1], [], []>} : vector<1x32xf32>, vector<32x256xf32>, vector<1x256xf32> -> vector<1x256xf32>
    %199 = arith.addf %190, %198 : vector<1x256xf32>
    %c1_i32_156 = arith.constant 1 : i32
    %200 = tpu.dynamic_rotate %171 by %c1_i32_156 dim 1 : vector<32x256xf32>, i32 -> vector<32x256xf32>
    %c3_157 = arith.constant 3 : index
    %c0_158 = arith.constant 0 : index
    %c0_159 = arith.constant 0 : index
    %201 = vector.load %arg2[%c3_157, %c0_158, %c0_159] : memref<9x1x256xf32, #tpu.memory_space<vmem>>, vector<1x1x256xf32>
    %202 = vector.shape_cast %201 : vector<1x1x256xf32> to vector<1x256xf32>
    %203 = vector.broadcast %202 : vector<1x256xf32> to vector<32x256xf32>
    %204 = arith.mulf %200, %203 : vector<32x256xf32>
    %c3_160 = arith.constant 3 : index
    %c0_161 = arith.constant 0 : index
    %c0_162 = arith.constant 0 : index
    %205 = vector.load %arg7[%c3_160, %c0_161, %c0_162] : memref<9x1x32xf32, #tpu.memory_space<vmem>>, vector<1x1x32xf32>
    %206 = vector.shape_cast %205 : vector<1x1x32xf32> to vector<1x32xf32>
    %cst_163 = arith.constant dense<0.000000e+00> : vector<1x256xf32>
    %207 = tpu.matmul %206, %204, %cst_163 {dimension_numbers = #tpu.dot_dimension_numbers<[1], [0], [0], [1], [0, 0, 1, 1], [], []>} : vector<1x32xf32>, vector<32x256xf32>, vector<1x256xf32> -> vector<1x256xf32>
    %208 = arith.addf %199, %207 : vector<1x256xf32>
    %c4_164 = arith.constant 4 : index
    %c0_165 = arith.constant 0 : index
    %c0_166 = arith.constant 0 : index
    %209 = vector.load %arg7[%c4_164, %c0_165, %c0_166] : memref<9x1x32xf32, #tpu.memory_space<vmem>>, vector<1x1x32xf32>
    %210 = vector.shape_cast %209 : vector<1x1x32xf32> to vector<1x32xf32>
    %cst_167 = arith.constant dense<0.000000e+00> : vector<1x256xf32>
    %211 = tpu.matmul %210, %171, %cst_167 {dimension_numbers = #tpu.dot_dimension_numbers<[1], [0], [0], [1], [0, 0, 1, 1], [], []>} : vector<1x32xf32>, vector<32x256xf32>, vector<1x256xf32> -> vector<1x256xf32>
    %212 = arith.addf %208, %211 : vector<1x256xf32>
    %c255_i32_168 = arith.constant 255 : i32
    %213 = tpu.dynamic_rotate %171 by %c255_i32_168 dim 1 : vector<32x256xf32>, i32 -> vector<32x256xf32>
    %c5_169 = arith.constant 5 : index
    %c0_170 = arith.constant 0 : index
    %c0_171 = arith.constant 0 : index
    %214 = vector.load %arg2[%c5_169, %c0_170, %c0_171] : memref<9x1x256xf32, #tpu.memory_space<vmem>>, vector<1x1x256xf32>
    %215 = vector.shape_cast %214 : vector<1x1x256xf32> to vector<1x256xf32>
    %216 = vector.broadcast %215 : vector<1x256xf32> to vector<32x256xf32>
    %217 = arith.mulf %213, %216 : vector<32x256xf32>
    %c5_172 = arith.constant 5 : index
    %c0_173 = arith.constant 0 : index
    %c0_174 = arith.constant 0 : index
    %218 = vector.load %arg7[%c5_172, %c0_173, %c0_174] : memref<9x1x32xf32, #tpu.memory_space<vmem>>, vector<1x1x32xf32>
    %219 = vector.shape_cast %218 : vector<1x1x32xf32> to vector<1x32xf32>
    %cst_175 = arith.constant dense<0.000000e+00> : vector<1x256xf32>
    %220 = tpu.matmul %219, %217, %cst_175 {dimension_numbers = #tpu.dot_dimension_numbers<[1], [0], [0], [1], [0, 0, 1, 1], [], []>} : vector<1x32xf32>, vector<32x256xf32>, vector<1x256xf32> -> vector<1x256xf32>
    %221 = arith.addf %212, %220 : vector<1x256xf32>
    %c241_i32_176 = arith.constant 241 : i32
    %222 = tpu.dynamic_rotate %171 by %c241_i32_176 dim 1 : vector<32x256xf32>, i32 -> vector<32x256xf32>
    %c6_177 = arith.constant 6 : index
    %c0_178 = arith.constant 0 : index
    %c0_179 = arith.constant 0 : index
    %223 = vector.load %arg2[%c6_177, %c0_178, %c0_179] : memref<9x1x256xf32, #tpu.memory_space<vmem>>, vector<1x1x256xf32>
    %224 = vector.shape_cast %223 : vector<1x1x256xf32> to vector<1x256xf32>
    %225 = vector.broadcast %224 : vector<1x256xf32> to vector<32x256xf32>
    %226 = arith.mulf %222, %225 : vector<32x256xf32>
    %c6_180 = arith.constant 6 : index
    %c0_181 = arith.constant 0 : index
    %c0_182 = arith.constant 0 : index
    %227 = vector.load %arg7[%c6_180, %c0_181, %c0_182] : memref<9x1x32xf32, #tpu.memory_space<vmem>>, vector<1x1x32xf32>
    %228 = vector.shape_cast %227 : vector<1x1x32xf32> to vector<1x32xf32>
    %cst_183 = arith.constant dense<0.000000e+00> : vector<1x256xf32>
    %229 = tpu.matmul %228, %226, %cst_183 {dimension_numbers = #tpu.dot_dimension_numbers<[1], [0], [0], [1], [0, 0, 1, 1], [], []>} : vector<1x32xf32>, vector<32x256xf32>, vector<1x256xf32> -> vector<1x256xf32>
    %230 = arith.addf %221, %229 : vector<1x256xf32>
    %c240_i32_184 = arith.constant 240 : i32
    %231 = tpu.dynamic_rotate %171 by %c240_i32_184 dim 1 : vector<32x256xf32>, i32 -> vector<32x256xf32>
    %c7_185 = arith.constant 7 : index
    %c0_186 = arith.constant 0 : index
    %c0_187 = arith.constant 0 : index
    %232 = vector.load %arg2[%c7_185, %c0_186, %c0_187] : memref<9x1x256xf32, #tpu.memory_space<vmem>>, vector<1x1x256xf32>
    %233 = vector.shape_cast %232 : vector<1x1x256xf32> to vector<1x256xf32>
    %234 = vector.broadcast %233 : vector<1x256xf32> to vector<32x256xf32>
    %235 = arith.mulf %231, %234 : vector<32x256xf32>
    %c7_188 = arith.constant 7 : index
    %c0_189 = arith.constant 0 : index
    %c0_190 = arith.constant 0 : index
    %236 = vector.load %arg7[%c7_188, %c0_189, %c0_190] : memref<9x1x32xf32, #tpu.memory_space<vmem>>, vector<1x1x32xf32>
    %237 = vector.shape_cast %236 : vector<1x1x32xf32> to vector<1x32xf32>
    %cst_191 = arith.constant dense<0.000000e+00> : vector<1x256xf32>
    %238 = tpu.matmul %237, %235, %cst_191 {dimension_numbers = #tpu.dot_dimension_numbers<[1], [0], [0], [1], [0, 0, 1, 1], [], []>} : vector<1x32xf32>, vector<32x256xf32>, vector<1x256xf32> -> vector<1x256xf32>
    %239 = arith.addf %230, %238 : vector<1x256xf32>
    %c239_i32_192 = arith.constant 239 : i32
    %240 = tpu.dynamic_rotate %171 by %c239_i32_192 dim 1 : vector<32x256xf32>, i32 -> vector<32x256xf32>
    %c8_193 = arith.constant 8 : index
    %c0_194 = arith.constant 0 : index
    %c0_195 = arith.constant 0 : index
    %241 = vector.load %arg2[%c8_193, %c0_194, %c0_195] : memref<9x1x256xf32, #tpu.memory_space<vmem>>, vector<1x1x256xf32>
    %242 = vector.shape_cast %241 : vector<1x1x256xf32> to vector<1x256xf32>
    %243 = vector.broadcast %242 : vector<1x256xf32> to vector<32x256xf32>
    %244 = arith.mulf %240, %243 : vector<32x256xf32>
    %c8_196 = arith.constant 8 : index
    %c0_197 = arith.constant 0 : index
    %c0_198 = arith.constant 0 : index
    %245 = vector.load %arg7[%c8_196, %c0_197, %c0_198] : memref<9x1x32xf32, #tpu.memory_space<vmem>>, vector<1x1x32xf32>
    %246 = vector.shape_cast %245 : vector<1x1x32xf32> to vector<1x32xf32>
    %cst_199 = arith.constant dense<0.000000e+00> : vector<1x256xf32>
    %247 = tpu.matmul %246, %244, %cst_199 {dimension_numbers = #tpu.dot_dimension_numbers<[1], [0], [0], [1], [0, 0, 1, 1], [], []>} : vector<1x32xf32>, vector<32x256xf32>, vector<1x256xf32> -> vector<1x256xf32>
    %248 = arith.addf %239, %247 : vector<1x256xf32>
    %c0_200 = arith.constant 0 : index
    %c0_201 = arith.constant 0 : index
    %249 = vector.load %arg8[%c0_200, %c0_201] : memref<1x1xf32, #tpu.memory_space<vmem>>, vector<1x1xf32>
    %250 = vector.broadcast %249 : vector<1x1xf32> to vector<1x256xf32>
    %251 = arith.addf %248, %250 : vector<1x256xf32>
    %cst_202 = arith.constant -8.000000e-02 : f32
    %cst_203 = arith.constant 8.000000e-02 : f32
    %252 = vector.broadcast %cst_202 : f32 to vector<1x256xf32>
    %253 = arith.maximumf %252, %251 : vector<1x256xf32>
    %254 = vector.broadcast %cst_203 : f32 to vector<1x256xf32>
    %255 = arith.minimumf %254, %253 : vector<1x256xf32>
    %c0_204 = arith.constant 0 : index
    %c0_205 = arith.constant 0 : index
    %256 = vector.load %arg9[%c0_204, %c0_205] : memref<256x172xf32, #tpu.memory_space<vmem>>, vector<256x172xf32>
    %cst_206 = arith.constant dense<0.000000e+00> : vector<1x172xf32>
    %257 = tpu.matmul %255, %256, %cst_206 {dimension_numbers = #tpu.dot_dimension_numbers<[1], [0], [0], [1], [0, 0, 1, 1], [], []>} : vector<1x256xf32>, vector<256x172xf32>, vector<1x172xf32> -> vector<1x172xf32>
    %c0_207 = arith.constant 0 : index
    %c0_208 = arith.constant 0 : index
    %258 = vector.load %arg10[%c0_207, %c0_208] : memref<172x172xf32, #tpu.memory_space<vmem>>, vector<172x172xf32>
    %cst_209 = arith.constant dense<0.000000e+00> : vector<1x172xf32>
    %259 = tpu.matmul %257, %258, %cst_209 {dimension_numbers = #tpu.dot_dimension_numbers<[1], [0], [0], [1], [0, 0, 1, 1], [], []>} : vector<1x172xf32>, vector<172x172xf32>, vector<1x172xf32> -> vector<1x172xf32>
    %260 = arith.subf %259, %257 : vector<1x172xf32>
    %c0_210 = arith.constant 0 : index
    %c0_211 = arith.constant 0 : index
    %261 = vector.load %arg11[%c0_210, %c0_211] : memref<172x256xf32, #tpu.memory_space<vmem>>, vector<172x256xf32>
    %cst_212 = arith.constant dense<0.000000e+00> : vector<1x256xf32>
    %262 = tpu.matmul %260, %261, %cst_212 {dimension_numbers = #tpu.dot_dimension_numbers<[1], [0], [0], [1], [0, 0, 1, 1], [], []>} : vector<1x172xf32>, vector<172x256xf32>, vector<1x256xf32> -> vector<1x256xf32>
    %263 = arith.addf %255, %262 : vector<1x256xf32>
    %c0_213 = arith.constant 0 : index
    %c0_214 = arith.constant 0 : index
    %c0_215 = arith.constant 0 : index
    %264 = vector.load %arg12[%c0_213, %c0_214, %c0_215] : memref<1x1x256xf32, #tpu.memory_space<vmem>>, vector<1x1x256xf32>
    %265 = vector.shape_cast %264 : vector<1x1x256xf32> to vector<1x256xf32>
    %266 = vector.shape_cast %263 : vector<1x256xf32> to vector<1x1x256xf32>
    tpu.vector_store %arg12[%c0_213, %c0_214, %c0_215], %266 {strides = array<i32>} : memref<1x1x256xf32, #tpu.memory_space<vmem>>, vector<1x1x256xf32>,
    return
  }
  func.func @transform_0(%arg0: i32) -> (i32, i32, i32) {
    %c0_i32 = arith.constant 0 : i32
    %c0_i32_0 = arith.constant 0 : i32
    %c0_i32_1 = arith.constant 0 : i32
    return %arg0, %c0_i32, %c0_i32_0 : i32, i32, i32
  }
  func.func @transform_1(%arg0: i32) -> (i32, i32, i32) {
    %c0_i32 = arith.constant 0 : i32
    %c0_i32_0 = arith.constant 0 : i32
    %c0_i32_1 = arith.constant 0 : i32
    %c0_i32_2 = arith.constant 0 : i32
    return %c0_i32, %c0_i32_0, %c0_i32_1 : i32, i32, i32
  }
  func.func @transform_2(%arg0: i32) -> (i32, i32, i32) {
    %c0_i32 = arith.constant 0 : i32
    %c0_i32_0 = arith.constant 0 : i32
    %c0_i32_1 = arith.constant 0 : i32
    %c0_i32_2 = arith.constant 0 : i32
    return %c0_i32, %c0_i32_0, %c0_i32_1 : i32, i32, i32
  }
  func.func @transform_3(%arg0: i32) -> (i32, i32) {
    %c0_i32 = arith.constant 0 : i32
    %c0_i32_0 = arith.constant 0 : i32
    %c0_i32_1 = arith.constant 0 : i32
    return %c0_i32, %c0_i32_0 : i32, i32
  }
  func.func @transform_4(%arg0: i32) -> (i32, i32, i32) {
    %c0_i32 = arith.constant 0 : i32
    %c0_i32_0 = arith.constant 0 : i32
    %c0_i32_1 = arith.constant 0 : i32
    %c0_i32_2 = arith.constant 0 : i32
    return %c0_i32, %c0_i32_0, %c0_i32_1 : i32, i32, i32
  }
  func.func @transform_5(%arg0: i32) -> (i32, i32) {
    %c0_i32 = arith.constant 0 : i32
    %c0_i32_0 = arith.constant 0 : i32
    %c0_i32_1 = arith.constant 0 : i32
    return %c0_i32, %c0_i32_0 : i32, i32
  }
  func.func @transform_6(%arg0: i32) -> (i32, i32, i32) {
    %c0_i32 = arith.constant 0 : i32
    %c0_i32_0 = arith.constant 0 : i32
    %c0_i32_1 = arith.constant 0 : i32
    %c0_i32_2 = arith.constant 0 : i32
    return %c0_i32, %c0_i32_0, %c0_i32_1 : i32, i32, i32
  }
  func.func @transform_7(%arg0: i32) -> (i32, i32) {
    %c0_i32 = arith.constant 0 : i32
    %c0_i32_0 = arith.constant 0 : i32
    %c0_i32_1 = arith.constant 0 : i32
    return %c0_i32, %c0_i32_0 : i32, i32
  }
  func.func @transform_8(%arg0: i32) -> (i32, i32) {
    %c0_i32 = arith.constant 0 : i32
    %c0_i32_0 = arith.constant 0 : i32
    %c0_i32_1 = arith.constant 0 : i32
    return %c0_i32, %c0_i32_0 : i32, i32
  }
  func.func @transform_9(%arg0: i32) -> (i32, i32) {
    %c0_i32 = arith.constant 0 : i32
    %c0_i32_0 = arith.constant 0 : i32
    %c0_i32_1 = arith.constant 0 : i32
    return %c0_i32, %c0_i32_0 : i32, i32
  }
  func.func @transform_10(%arg0: i32) -> (i32, i32) {
    %c0_i32 = arith.constant 0 : i32
    %c0_i32_0 = arith.constant 0 : i32
    %c0_i32_1 = arith.constant 0 : i32
    return %c0_i32, %c0_i32_0 : i32, i32
  }
  func.func @transform_11(%arg0: i32) -> (i32, i32, i32) {
    %c0_i32 = arith.constant 0 : i32
    %c0_i32_0 = arith.constant 0 : i32
    %c0_i32_1 = arith.constant 0 : i32
    return %arg0, %c0_i32, %c0_i32_0 : i32, i32, i32
  }
}

</mosaic_0001>

<bundles_post_ra>
// kernel: conv_policy_fast_forward.1
= control target key start
LH: loop header
LB: loop body
LE: loop exit
PB: predicated region body
PF: predicated region fallthrough
CT: control target
= control target key end

     0   :  { %s5192_s19 = smov 0   ;;  %s7178_s0 = inlined_call_operand.vmem [shape: f32[2,3,256], index: 0, kind: input, shape index: {}]   ;;  %s7179_s1 = inlined_call_operand.vmem [shape: f32[9,1,256], index: 1, kind: input, shape index: {}]   ;;  %s7180_s2 = inlined_call_operand.vmem [shape: f32[9,32,3], index: 2, kind: input, shape index: {}]   ;;  %s7181_s3 = inlined_call_operand.vmem [shape: f32[32,1], index: 3, kind: input, shape index: {}]   ;;  %s7182_s4 = inlined_call_operand.vmem [shape: f32[9,32,32], index: 4, kind: input, shape index: {}]   ;;  %s7183_s5 = inlined_call_operand.vmem [shape: f32[32,1], index: 5, kind: input, shape index: {}]   ;;  %s7184_s6 = inlined_call_operand.vmem [shape: f32[9,1,32], index: 6, kind: input, shape index: {}]   ;;  %s7185_s7 = inlined_call_operand.<no memory space> [shape: f32[1,1], index: 7, kind: input, shape index: {}]   ;;  %s7186_s8 = inlined_call_operand.vmem [shape: f32[256,172], index: 8, kind: input, shape index: {}]   ;;  %s7187_s9 = inlined_call_operand.vmem [shape: f32[172,172], index: 9, kind: input, shape index: {}]   ;;  %s7188_s10 = inlined_call_operand.vmem [shape: f32[172,256], index: 10, kind: input, shape index: {}]   ;;  %s7189_s11 = inlined_call_operand.vmem [shape: f32[2,1,256], index: 11, kind: output, shape index: {}]  }
   0x1   :  { %v16_v0 = vstv %s7185_s7 }
   0x2   :  { %17 = vst [vmem:[#allocation2] sm:$0x1] %v16_v0 }
   0x3 LB: > { %s4443_s20 = sadd.s32 4294967295, %s5115_s19   ;;  %p4447_p0 = scmp.ge.s32.totalorder %s5115_s19, 1  ;;  %s5115_s19 = sphi %s5192_s19, %s23_s19  }
   0x4   : > { %p339_p1 = scmp.lt.s32.totalorder %s5115_s19, 3 }
   0x6   : > { %p340_p2 = pnand %p4447_p0, %p339_p1 }
   0x8   : > { %343 = sbr.rel (%p340_p2) target bundleno = 2091 (0x82b), region = 64 }
   0xf   : > { %p378_p3 = scmp.lt.s32.totalorder %s4443_s20, 1  ;;  %v7191_v1 = vmov 0.0   ;;  %s5118_s24 = smov 16   ;;  %v7190_v4 = vlaneseq  ;;  %v400_v9 = vld [vmem:[%s7179_s1] sm:$0x3]  ;;  %vm458_vm2 = vcmask 1042432  }
  0x10   : > { %529 = vmatprep.mubr.f32.mxu0 %v7191_v1  ;;  %541 = vmatprep.mubr.f32.mxu1 %v7191_v1  ;;  %s5119_s25 = smov 17   ;;  %s5120_s26 = smov 15   ;;  %v4451_v10 = vld [vmem:[%s7179_s1 + $0x2] sm:$0x3]  ;;  %v4468_v17 = vld [vmem:[%s7179_s1 + $0x4] sm:$0x3] }
  0x11   : > { %s7243_s20 = smov (!%p378_p3, %s4443_s20), 1  ;;  %s5121_s27 = smov 1   ;;  %v5247_v5 = vshrl.u32 %v7190_v4, 7  ;;  %v5250_v6 = vand.u32 127, %v7190_v4  ;;  %v4452_v29 = vld [vmem:[%s7180_s2 + $0x20] sm:$0xff]  ;;  %vm445_vm4 = vcmask 23552  }
  0x12   : > { %s4639_s7 = sshll.u32 %s7243_s20, 3  ;;  %s5122_s28 = smov 127   ;;  %v4479_v33 = vld [vmem:[%s7179_s1 + $0x6] sm:$0x3]  ;;  %v4454_v34 = vld [vmem:[%s7180_s2 + $0x30] sm:$0xff]  ;;  %v4453_v36 = vld [vmem:[%s7180_s2 + $0x28] sm:$0xff] }
  0x13   : > { %s382_s23 = scalar_lea.vmem %s7178_s0, %s4639_s7  ;;  %s5123_s29 = smov 113   ;;  %7211 = vst [vmem:[#allocation3_spill] sm:$0xff] %v5247_v5  ;;  %v5253_v7 = vsub.s32 0, %v5247_v5  ;;  %v5256_v8 = vsub.s32 1, %v5247_v5  ;;  %vm422_vm0 = vcmp.lt.s32.totalorder %v5250_v6, 16  ;;  %vm397_vm1 = vcmp.lt.s32.totalorder %v5250_v6, 17 }
  0x14   : > { %v5208_v2 = vld [vmem:[%s382_s23] sm:$0x77]  ;;  %s5124_s30 = smov 112   ;;  %s5125_s12 = smov 111   ;;  %vm665_vm3 = vcmp.lt.s32.totalorder %v5250_v6, 15  ;;  %vm807_vm5 = vcmp.lt.s32.totalorder %v5250_v6, 1 }
  0x15   : > { %418 = vrot.lane.b32.xlu0 %v5208_v2, %s5118_s24  ;;  %391 = vrot.lane.b32.xlu1 %v5208_v2, %s5119_s25  ;;  %v5216_v3 = vcombine.high %v5208_v2, %v5208_v2  ;;  %7212 = vst [vmem:[#allocation4_spill] sm:$0xff] %v5253_v7  ;;  %v5267_v13 = vrot.slane %v400_v9, %v5256_v8  ;;  %v4455_v43 = vld [vmem:[%s7180_s2 + $0x38] sm:$0xff]  ;;  %v1631_v44 = vld [vmem:[%s7181_s3] sm:$0xff]  ;;  %v5126_v47 = vmov 0   ;;  %vm1067_vm6 = vcmp.lt.s32.totalorder %v5250_v6, 127  ;;  %s4450_s17 = sshll.u32 %s7243_s20, 1 }
  0x16   : > { %v5270_v14 = vrot.slane %v4451_v10, %v5253_v7  ;;  %v5273_v15 = vrot.slane %v4451_v10, %v5256_v8  ;;  %v5276_v16 = vrot.slane %v400_v9, %v5253_v7  ;;  %v5294_v27 = vrot.slane %v4468_v17, %v5256_v8  ;;  %v414_v46 = vld [vmem:[%s7180_s2] sm:$0xff]  ;;  %5106 = vset.pattern.permute.xlu0 %v5126_v47  ;;  %v1632_v48 = vld [vmem:[%s7181_s3 + $0x8] sm:$0xff]  ;;  %v1634_v50 = vld [vmem:[%s7181_s3 + $0x18] sm:$0xff] }
  0x17   : > { %v5322_v37 = vrot.slane %v4468_v17, %v5253_v7  ;;  %v5328_v40 = vrot.slane %v4479_v33, %v5256_v8  ;;  %5107 = vset.pattern.permute.xlu1 %v5126_v47  ;;  %v415_v51 = vld [vmem:[%s7180_s2 + $0x8] sm:$0xff]  ;;  %v1633_v52 = vld [vmem:[%s7181_s3 + $0x10] sm:$0xff]  ;;  %v417_v54 = vld [vmem:[%s7180_s2 + $0x18] sm:$0xff]  ;;  %v5376_v55 = vrot.slane %v4479_v33, %v5253_v7  ;;  %vm1209_vm7 = vcmp.lt.s32.totalorder %v5250_v6, 113 }
  0x18   : > { %v416_v53 = vld [vmem:[%s7180_s2 + $0x10] sm:$0xff]  ;;  %v4469_v58 = vld [vmem:[%s7180_s2 + $0x40] sm:$0xff]  ;;  %v4470_v59 = vld [vmem:[%s7180_s2 + $0x48] sm:$0xff]  ;;  %vm1351_vm8 = vcmp.lt.s32.totalorder %v5250_v6, 112  ;;  %vm1493_vm9 = vcmp.lt.s32.totalorder %v5250_v6, 111 }
  0x19   : > { %420 = vrot.lane.b32.xlu0 %v5216_v3, %s5118_s24  ;;  %393 = vrot.lane.b32.xlu1 %v5216_v3, %s5119_s25  ;;  %v4471_v60 = vld [vmem:[%s7180_s2 + $0x50] sm:$0xff]  ;;  %v4500_v61 = vld [vmem:[%s7179_s1 + $0xa] sm:$0x3] }
  0x1a   : > { %v4472_v0 = vld [vmem:[%s7180_s2 + $0x58] sm:$0xff]  ;;  %v4480_v10 = vld [vmem:[%s7180_s2 + $0x60] sm:$0xff]  ;;  %v4482_v17 = vld [vmem:[%s7180_s2 + $0x70] sm:$0xff] }
  0x1b   : > { %v4027_v5 = vld [vmem:[%s7186_s8 + $0x188] sm:$0xff] }
  0x1c   : > { %v4627_v6 = vld [vmem:[%s7184_s6 + $0x8] sm:$0x1] }
  0x1d   : > { %663 = vrot.lane.b32.xlu1 %v5216_v3, %s5120_s26  ;;  %661 = vrot.lane.b32.xlu0 %v5208_v2, %s5120_s26 }
  0x21   : > { %805 = vrot.lane.b32.xlu1 %v5216_v3, %s5121_s27  ;;  %803 = vrot.lane.b32.xlu0 %v5208_v2, %s5121_s27 }
  0x25   : > { %1065 = vrot.lane.b32.xlu1 %v5216_v3, %s5122_s28  ;;  %1063 = vrot.lane.b32.xlu0 %v5208_v2, %s5122_s28 }
  0x29   : > { %1207 = vrot.lane.b32.xlu1 %v5216_v3, %s5123_s29  ;;  %1205 = vrot.lane.b32.xlu0 %v5208_v2, %s5123_s29 }
  0x2d   : > { %1349 = vrot.lane.b32.xlu1 %v5216_v3, %s5124_s30  ;;  %1347 = vrot.lane.b32.xlu0 %v5208_v2, %s5124_s30 }
  0x31   : > { %1491 = vrot.lane.b32.xlu1 %v5216_v3, %s5125_s12  ;;  %1489 = vrot.lane.b32.xlu0 %v5208_v2, %s5125_s12 }
  0x35   : > { %1637 = vperm.xlu0 %5106, %v1631_v44   ;;  %1642 = vperm.xlu1 %5107, %v1632_v48   ;;  %v4502_v44 = vld [vmem:[%s7180_s2 + $0xa8] sm:$0xff] }
  0x39   : > { %1652 = vperm.xlu0 %5106, %v1634_v50   ;;  %1647 = vperm.xlu1 %5107, %v1633_v52  }
  0x87   : > { %v419_v11 = vpop.permute.xlu0 %418  ;;  %v392_v12 = vpop.permute.xlu1 %391 }
  0x8b   : > { %v421_v18 = vpop.permute.xlu0 %420  ;;  %v394_v19 = vpop.permute.xlu1 %393 }
  0x8c   : > { %v424_v20 = vsel %vm422_vm0, %v421_v18, %v419_v11  ;;  %v398_v21 = vsel %vm397_vm1, %v392_v12, %v394_v19  ;;  %v399_v22 = vsel %vm397_vm1, %v394_v19, %v392_v12  ;;  %v423_v23 = vsel %vm422_vm0, %v419_v11, %v421_v18  ;;  %v4481_v12 = vld [vmem:[%s7180_s2 + $0x68] sm:$0xff] }
  0x8d   : > { %v413_v24 = vmul.f32 %v5267_v13, %v398_v21  ;;  %v439_v25 = vmul.f32 %v5273_v15, %v423_v23  ;;  %v438_v26 = vmul.f32 %v5270_v14, %v424_v20  ;;  %v412_v28 = vmul.f32 %v5276_v16, %v399_v22  ;;  %v4511_v18 = vld [vmem:[%s7179_s1 + $0xc] sm:$0x3]  ;;  %v4483_v20 = vld [vmem:[%s7180_s2 + $0x78] sm:$0xff] }
  0x8e   : > { %v5442_v21 = vrot.slane %v4500_v61, %v5253_v7  ;;  %v5447_v23 = vrot.slane %v4511_v18, %v5256_v8 }
  0x8f   : > { %4456 = vmatprep.subr.msk.mxu0 %vm458_vm2, %v439_v25  ;;  %4940 = vmatprep.subr.msk.mxu1 %vm458_vm2, %v439_v25  ;;  %v664_v30 = vpop.permute.xlu1 %663  ;;  %v662_v31 = vpop.permute.xlu0 %661 }
  0x90   : > { %4457 = vmatpush1.msk.msra.mxu0 %vm458_vm2, %v438_v26  ;;  %4941 = vmatpush1.msk.msra.mxu1 %vm458_vm2, %v438_v26  ;;  %v666_v32 = vsel %vm665_vm3, %v662_v31, %v664_v30  ;;  %v667_v38 = vsel %vm665_vm3, %v664_v30, %v662_v31  ;;  %7214 = vst [vmem:[#allocation6_spill] sm:$0xff] %v5447_v23  ;;  %v4490_v26 = vld [vmem:[%s7180_s2 + $0x80] sm:$0xff]  ;;  %v4492_v30 = vld [vmem:[%s7180_s2 + $0x90] sm:$0xff]  ;;  %v4522_v31 = vld [vmem:[%s7179_s1 + $0xe] sm:$0x3] }
  0x91   : > { %4458 = vmatmul.mubr.msk.f32.vlgmr.msra.gmra.mrb[0].mxu0 %vm445_vm4, %v4452_v29  ;;  %4462 = vmatprep.subr.msk.mxu0 %vm458_vm2, %v413_v24  ;;  %v682_v35 = vmul.f32 %v5294_v27, %v666_v32  ;;  %v681_v45 = vmul.f32 %v5322_v37, %v667_v38  ;;  %v4491_v29 = vld [vmem:[%s7180_s2 + $0x88] sm:$0xff]  ;;  %v5485_v38 = vrot.slane %v4522_v31, %v5256_v8 }
  0x92   : > { %4463 = vmatpush1.msk.msra.mxu0 %vm458_vm2, %v412_v28  ;;  %535 = vmatprep.mubr.f32.mxu0 %v7191_v1  ;;  %v5518_v50 = vrot.slane %v4522_v31, %v5253_v7 }
  0x93   : > { %4473 = vmatprep.subr.msk.mxu0 %vm458_vm2, %v682_v35  ;;  %v806_v39 = vpop.permute.xlu1 %805  ;;  %v804_v41 = vpop.permute.xlu0 %803  ;;  %4460 = vmatmul.mubr.msk.f32.vlgmr.msra.gmra.mrb[0].mxu1 %vm445_vm4, %v4454_v34  ;;  %v4493_v34 = vld [vmem:[%s7180_s2 + $0x98] sm:$0xff]  ;;  %v5480_v35 = vrot.slane %v4511_v18, %v5253_v7  ;;  %7216 = vst [vmem:[#allocation8_spill] sm:$0xff] %v5485_v38 }
  0x94   : > { %v808_v42 = vsel %vm807_vm5, %v804_v41, %v806_v39  ;;  %547 = vmatprep.mubr.f32.mxu1 %v7191_v1  ;;  %v809_v56 = vsel %vm807_vm5, %v806_v39, %v804_v41  ;;  %7217 = vst [vmem:[#allocation9_spill] sm:$0xff] %v5518_v50  ;;  %v4537_v18 = vld [vmem:[%s7180_s2 + $0x118] sm:$0xff] }
  0x95   : > { %4459 = vmatmul.mubr.msk.f32.gmra.mrb[2].mxu0 %vm445_vm4, %v4453_v36  ;;  %v824_v49 = vmul.f32 %v5328_v40, %v808_v42  ;;  %v823_v57 = vmul.f32 %v5376_v55, %v809_v56  ;;  %7215 = vst [vmem:[#allocation7_spill] sm:$0xff] %v5480_v35  ;;  %v4501_v42 = vld [vmem:[%s7180_s2 + $0xa0] sm:$0xff] }
  0x96   : > { %636 = vmatprep.mubr.f32.mxu0 %v7191_v1  ;;  %v4512_v56 = vld [vmem:[%s7180_s2 + $0xc0] sm:$0xff] }
  0x97   : > { %4461 = vmatmul.mubr.msk.f32.gmra.mrb[2].mxu1 %vm445_vm4, %v4455_v43  ;;  %v1066_v62 = vpop.permute.xlu1 %1065  ;;  %v1064_v63 = vpop.permute.xlu0 %1063 }
  0x98   : > { %1837 = vmatprep.mubr.f32.mxu1 %v7191_v1  ;;  %v1069_v9 = vsel %vm1067_vm6, %v1066_v62, %v1064_v63  ;;  %v1068_v22 = vsel %vm1067_vm6, %v1064_v63, %v1066_v62  ;;  %v4523_v63 = vld [vmem:[%s7180_s2 + $0xe0] sm:$0xff] }
  0x99   : > { %4464 = vmatmul.mubr.msk.f32.vlgmr.msra.gmra.mrb[0].mxu0 %vm445_vm4, %v414_v46  ;;  %v1083_v25 = vmul.f32 %v5442_v21, %v1068_v22  ;;  %v4533_v46 = vld [vmem:[%s7179_s1 + $0x10] sm:$0x3] }
  0x9a   : > { %642 = vmatprep.mubr.f32.mxu0 %v7191_v1  ;;  %4474 = vmatpush1.msk.msra.mxu0 %vm458_vm2, %v681_v45  ;;  %v4503_v45 = vld [vmem:[%s7180_s2 + $0xb0] sm:$0xff]  ;;  %v5523_v52 = vrot.slane %v4533_v46, %v5256_v8 }
  0x9b   : > { %4484 = vmatprep.subr.msk.mxu0 %vm458_vm2, %v824_v49  ;;  %v1208_v19 = vpop.permute.xlu1 %1207  ;;  %v4504_v49 = vld [vmem:[%s7180_s2 + $0xb8] sm:$0xff] }
  0x9c   : > { %7218 = vst [vmem:[#allocation10_spill] sm:$0xff] %v5523_v52 }
  0x9d   : > { %4465 = vmatmul.mubr.msk.f32.gmra.mrb[2].mxu0 %vm445_vm4, %v415_v51 }
  0x9e   : > { %648 = vmatprep.mubr.f32.mxu0 %v7191_v1 }
  0x9f   : > { %v1350_v32 = vpop.permute.xlu1 %1349 }
  0xa1   : > { %4466 = vmatmul.mubr.msk.f32.gmra.mrb[4].mxu0 %vm445_vm4, %v416_v53 }
  0xa2   : > { %654 = vmatprep.mubr.f32.mxu0 %v7191_v1 }
  0xa3   : > { %v1492_v47 = vpop.permute.xlu1 %1491 }
  0xa5   : > { %4467 = vmatmul.mubr.msk.f32.gmra.mrb[6].mxu0 %vm445_vm4, %v417_v54 }
  0xa6   : > { %770 = vmatprep.mubr.f32.mxu0 %v7191_v1 }
  0xa9   : > { %4475 = vmatmul.mubr.msk.f32.vlgmr.msra.gmra.mrb[0].mxu0 %vm445_vm4, %v4469_v58  ;;  %v4514_v58 = vld [vmem:[%s7180_s2 + $0xd0] sm:$0xff] }
  0xaa   : > { %776 = vmatprep.mubr.f32.mxu0 %v7191_v1  ;;  %4485 = vmatpush1.msk.msra.mxu0 %vm458_vm2, %v823_v57 }
  0xab   : > { %4494 = vmatprep.subr.msk.mxu0 %vm458_vm2, %v5216_v3  ;;  %v5409_v3 = vrot.slane %v4500_v61, %v5256_v8  ;;  %v4513_v8 = vld [vmem:[%s7180_s2 + $0xc8] sm:$0xff] }
  0xad   : > { %4476 = vmatmul.mubr.msk.f32.gmra.mrb[2].mxu0 %vm445_vm4, %v4470_v59  ;;  %7213 = vst [vmem:[#allocation5_spill] sm:$0xff] %v5409_v3  ;;  %v1084_v11 = vmul.f32 %v5409_v3, %v1069_v9  ;;  %v4515_v59 = vld [vmem:[%s7180_s2 + $0xd8] sm:$0xff]  ;;  %v4525_v9 = vld [vmem:[%s7180_s2 + $0xf0] sm:$0xff] }
  0xae   : > { %782 = vmatprep.mubr.f32.mxu0 %v7191_v1 }
  0xb1   : > { %4477 = vmatmul.mubr.msk.f32.gmra.mrb[4].mxu0 %vm445_vm4, %v4471_v60  ;;  %v5552_v60 = vrot.slane %v4533_v46, %v5253_v7  ;;  %v4028_v7 = vld [vmem:[%s7186_s8 + $0x190] sm:$0xff] }
  0xb2   : > { %788 = vmatprep.mubr.f32.mxu0 %v7191_v1 }
  0xb3   : > { %7219 = vst [vmem:[#allocation11_spill] sm:$0xff] %v5552_v60 }
  0xb4   : > { %v1643_v31 = vpop.permute.xlu1 %1642 }
  0xb5   : > { %4478 = vmatmul.mubr.msk.f32.gmra.mrb[6].mxu0 %vm445_vm4, %v4472_v0  ;;  %v4524_v0 = vld [vmem:[%s7180_s2 + $0xe8] sm:$0xff] }
  0xb6   : > { %912 = vmatprep.mubr.f32.mxu0 %v7191_v1 }
  0xb9   : > { %4486 = vmatmul.mubr.msk.f32.vlgmr.msra.gmra.mrb[0].mxu0 %vm445_vm4, %v4480_v10  ;;  %v4526_v10 = vld [vmem:[%s7180_s2 + $0xf8] sm:$0xff] }
  0xba   : > { %918 = vmatprep.mubr.f32.mxu0 %v7191_v1  ;;  %4495 = vmatpush1.msk.msra.mxu0 %vm458_vm2, %v5208_v2  ;;  %v1206_v2 = vpop.permute.xlu0 %1205 }
  0xbb   : > { %4505 = vmatprep.subr.msk.mxu0 %vm458_vm2, %v1084_v11  ;;  %v1211_v24 = vsel %vm1209_vm7, %v1208_v19, %v1206_v2  ;;  %v1210_v36 = vsel %vm1209_vm7, %v1206_v2, %v1208_v19  ;;  %v4534_v11 = vld [vmem:[%s7180_s2 + $0x100] sm:$0xff] }
  0xbc   : > { %v1226_v28 = vmul.f32 %v5447_v23, %v1211_v24  ;;  %v1225_v41 = vmul.f32 %v5480_v35, %v1210_v36 }
  0xbd   : > { %4487 = vmatmul.mubr.msk.f32.gmra.mrb[2].mxu0 %vm445_vm4, %v4481_v12  ;;  %v4535_v12 = vld [vmem:[%s7180_s2 + $0x108] sm:$0xff] }
  0xbe   : > { %924 = vmatprep.mubr.f32.mxu0 %v7191_v1  ;;  %v1348_v33 = vpop.permute.xlu0 %1347 }
  0xbf   : > { %v1353_v39 = vsel %vm1351_vm8, %v1350_v32, %v1348_v33  ;;  %v1352_v51 = vsel %vm1351_vm8, %v1348_v33, %v1350_v32 }
  0xc0   : > { %v1368_v43 = vmul.f32 %v5485_v38, %v1353_v39  ;;  %v1367_v54 = vmul.f32 %v5518_v50, %v1352_v51 }
  0xc1   : > { %4488 = vmatmul.mubr.msk.f32.gmra.mrb[4].mxu0 %vm445_vm4, %v4482_v17  ;;  %v4536_v17 = vld [vmem:[%s7180_s2 + $0x110] sm:$0xff] }
  0xc2   : > { %930 = vmatprep.mubr.f32.mxu0 %v7191_v1  ;;  %v1490_v48 = vpop.permute.xlu0 %1489 }
  0xc3   : > { %v1495_v53 = vsel %vm1493_vm9, %v1492_v47, %v1490_v48  ;;  %v1494_v61 = vsel %vm1493_vm9, %v1490_v48, %v1492_v47 }
  0xc4   : > { %v1510_v57 = vmul.f32 %v5523_v52, %v1495_v53  ;;  %v1509_v62 = vmul.f32 %v5552_v60, %v1494_v61 }
  0xc5   : > { %4489 = vmatmul.mubr.msk.f32.gmra.mrb[6].mxu0 %vm445_vm4, %v4483_v20 }
  0xc6   : > { %1030 = vmatprep.mubr.f32.mxu0 %v7191_v1  ;;  %v1638_v24 = vpop.permute.xlu0 %1637 }
  0xc9   : > { %4496 = vmatmul.mubr.msk.f32.vlgmr.msra.gmra.mrb[0].mxu0 %vm445_vm4, %v4490_v26 }
  0xca   : > { %1036 = vmatprep.mubr.f32.mxu0 %v7191_v1  ;;  %4506 = vmatpush1.msk.msra.mxu0 %vm458_vm2, %v1083_v25  ;;  %v1653_v61 = vpop.permute.xlu0 %1652 }
  0xcb   : > { %4516 = vmatprep.subr.msk.mxu0 %vm458_vm2, %v1226_v28 }
  0xcd   : > { %4497 = vmatmul.mubr.msk.f32.gmra.mrb[2].mxu0 %vm445_vm4, %v4491_v29 }
  0xce   : > { %1042 = vmatprep.mubr.f32.mxu0 %v7191_v1 }
  0xd1   : > { %4498 = vmatmul.mubr.msk.f32.gmra.mrb[4].mxu0 %vm445_vm4, %v4492_v30 }
  0xd2   : > { %1048 = vmatprep.mubr.f32.mxu0 %v7191_v1 }
  0xd5   : > { %4499 = vmatmul.mubr.msk.f32.gmra.mrb[6].mxu0 %vm445_vm4, %v4493_v34 }
  0xd6   : > { %1172 = vmatprep.mubr.f32.mxu0 %v7191_v1 }
  0xd9   : > { %4507 = vmatmul.mubr.msk.f32.vlgmr.msra.gmra.mrb[0].mxu0 %vm445_vm4, %v4501_v42 }
  0xda   : > { %1178 = vmatprep.mubr.f32.mxu0 %v7191_v1  ;;  %4517 = vmatpush1.msk.msra.mxu0 %vm458_vm2, %v1225_v41 }
  0xdb   : > { %4527 = vmatprep.subr.msk.mxu0 %vm458_vm2, %v1368_v43 }
  0xdd   : > { %4508 = vmatmul.mubr.msk.f32.gmra.mrb[2].mxu0 %vm445_vm4, %v4502_v44 }
  0xde   : > { %1184 = vmatprep.mubr.f32.mxu0 %v7191_v1 }
  0xe1   : > { %4509 = vmatmul.mubr.msk.f32.gmra.mrb[4].mxu0 %vm445_vm4, %v4503_v45 }
  0xe2   : > { %1190 = vmatprep.mubr.f32.mxu0 %v7191_v1 }
  0xe5   : > { %4510 = vmatmul.mubr.msk.f32.gmra.mrb[6].mxu0 %vm445_vm4, %v4504_v49  ;;  %v1648_v49 = vpop.permute.xlu1 %1647 }
  0xe6   : > { %1314 = vmatprep.mubr.f32.mxu0 %v7191_v1 }
  0xe9   : > { %4518 = vmatmul.mubr.msk.f32.vlgmr.msra.gmra.mrb[0].mxu0 %vm445_vm4, %v4512_v56 }
  0xea   : > { %1320 = vmatprep.mubr.f32.mxu0 %v7191_v1  ;;  %4528 = vmatpush1.msk.msra.mxu0 %vm458_vm2, %v1367_v54 }
  0xeb   : > { %4538 = vmatprep.subr.msk.mxu0 %vm458_vm2, %v1510_v57 }
  0xed   : > { %4519 = vmatmul.mubr.msk.f32.gmra.mrb[2].mxu0 %vm445_vm4, %v4513_v8 }
  0xee   : > { %1326 = vmatprep.mubr.f32.mxu0 %v7191_v1 }
  0xf1   : > { %4520 = vmatmul.mubr.msk.f32.gmra.mrb[4].mxu0 %vm445_vm4, %v4514_v58 }
  0xf2   : > { %1332 = vmatprep.mubr.f32.mxu0 %v7191_v1 }
  0xf5   : > { %4521 = vmatmul.mubr.msk.f32.gmra.mrb[6].mxu0 %vm445_vm4, %v4515_v59 }
  0xf6   : > { %1456 = vmatprep.mubr.f32.mxu0 %v7191_v1 }
  0xf9   : > { %4529 = vmatmul.mubr.msk.f32.vlgmr.msra.gmra.mrb[0].mxu0 %vm445_vm4, %v4523_v63 }
  0xfa   : > { %1462 = vmatprep.mubr.f32.mxu0 %v7191_v1  ;;  %4539 = vmatpush1.msk.msra.mxu0 %vm458_vm2, %v1509_v62 }
  0xfd   : > { %4530 = vmatmul.mubr.msk.f32.gmra.mrb[2].mxu0 %vm445_vm4, %v4524_v0 }
  0xfe   : > { %1468 = vmatprep.mubr.f32.mxu0 %v7191_v1 }
 0x101   : > { %4531 = vmatmul.mubr.msk.f32.gmra.mrb[4].mxu0 %vm445_vm4, %v4525_v9 }
 0x102   : > { %1474 = vmatprep.mubr.f32.mxu0 %v7191_v1 }
 0x105   : > { %4532 = vmatmul.mubr.msk.f32.gmra.mrb[6].mxu0 %vm445_vm4, %v4526_v10 }
 0x106   : > { %1598 = vmatprep.mubr.f32.mxu0 %v7191_v1 }
 0x109   : > { %4540 = vmatmul.mubr.msk.f32.vlgmr.msra.gmra.mrb[0].mxu0 %vm445_vm4, %v4534_v11 }
 0x10a   : > { %1604 = vmatprep.mubr.f32.mxu0 %v7191_v1 }
 0x10d   : > { %4541 = vmatmul.mubr.msk.f32.gmra.mrb[2].mxu0 %vm445_vm4, %v4535_v12 }
 0x10e   : > { %1610 = vmatprep.mubr.f32.mxu0 %v7191_v1 }
 0x111   : > { %4542 = vmatmul.mubr.msk.f32.gmra.mrb[4].mxu0 %vm445_vm4, %v4536_v17 }
 0x112   : > { %1616 = vmatprep.mubr.f32.mxu0 %v7191_v1 }
 0x115   : > { %4543 = vmatmul.mubr.msk.f32.gmra.mrb[6].mxu0 %vm445_vm4, %v4537_v18 }
 0x116   : > { %3143 = vmatprep.mubr.f32.mxu0 %v7191_v1 }
 0x166   : > { %v543_v19 = vpop.f32.mrb[0].mxu1 }
 0x167   : > { %v545_v2 = vpop.f32.mrb[1].mxu1 }
 0x16a   : > { %v549_v20 = vpop.f32.mrb[2].mxu1 }
 0x16b   : > { %v551_v22 = vpop.f32.mrb[3].mxu1 }
 0x1dc   : > { %v1600_v25 = vpop.f32.mrb[0].mxu0 }
 0x1dd   : > { %v1655_v26 = vadd.f32 %v1638_v24, %v1600_v25  ;;  %v1602_v28 = vpop.f32.mrb[1].mxu0 }
 0x1de   : > { %v1656_v29 = vadd.f32 %v1638_v24, %v1602_v28 }
 0x1df   : > { %vm1663_vm10 = vcmp.ge.f32.partialorder %v1655_v26, 0.0  ;;  %v1671_v30 = vmul.f32 0.01, %v1655_v26 }
 0x1e0   : > { %v1606_v32 = vpop.f32.mrb[2].mxu0  ;;  %v1672_v34 = vmul.f32 0.01, %v1656_v29  ;;  %vm1664_vm11 = vcmp.ge.f32.partialorder %v1656_v29, 0.0 }
 0x1e1   : > { %v5600_v33 = vsel %vm1663_vm10, %v1655_v26, %v1671_v30  ;;  %v1657_v36 = vadd.f32 %v1643_v31, %v1606_v32  ;;  %v1608_v39 = vpop.f32.mrb[3].mxu0  ;;  %vm1760_vm10 = vcmask 261120  }
 0x1e2   : > { %v1658_v41 = vadd.f32 %v1643_v31, %v1608_v39  ;;  %1723 = vrot.lane.b32.xlu1 %v5600_v33, %s5118_s24  ;;  %v5604_v44 = vsel %vm1664_vm11, %v1656_v29, %v1672_v34 }
 0x1e3   : > { %vm1665_vm12 = vcmp.ge.f32.partialorder %v1657_v36, 0.0  ;;  %v1673_v42 = vmul.f32 0.01, %v1657_v36 }
 0x1e4   : > { %v1612_v43 = vpop.f32.mrb[4].mxu0  ;;  %v1674_v46 = vmul.f32 0.01, %v1658_v41  ;;  %vm1666_vm13 = vcmp.ge.f32.partialorder %v1658_v41, 0.0 }
 0x1e5   : > { %v5606_v45 = vsel %vm1665_vm12, %v1657_v36, %v1673_v42  ;;  %v4942_v47 = vadd.f32 %v1612_v43, %v543_v19  ;;  %v1614_v48 = vpop.f32.mrb[5].mxu0  ;;  %v2953_v42 = vld [vmem:[%s7183_s5] sm:$0xff] }
 0x1e6   : > { %v4943_v51 = vadd.f32 %v1614_v48, %v545_v2  ;;  %1725 = vrot.lane.b32.xlu0 %v5606_v45, %s5118_s24  ;;  %1731 = vrot.lane.b32.xlu1 %v5604_v44, %s5118_s24  ;;  %v5612_v57 = vsel %vm1666_vm13, %v1658_v41, %v1674_v46 }
 0x1e7   : > { %v1659_v53 = vadd.f32 %v4942_v47, %v1648_v49 }
 0x1e8   : > { %v1660_v54 = vadd.f32 %v4943_v51, %v1648_v49  ;;  %v1618_v56 = vpop.f32.mrb[6].mxu0  ;;  %v2955_v49 = vld [vmem:[%s7183_s5 + $0x10] sm:$0xff]  ;;  %v2954_v51 = vld [vmem:[%s7183_s5 + $0x8] sm:$0xff] }
 0x1e9   : > { %vm1667_vm14 = vcmp.ge.f32.partialorder %v1659_v53, 0.0  ;;  %v1675_v8 = vmul.f32 0.01, %v1659_v53  ;;  %v4944_v58 = vadd.f32 %v1618_v56, %v549_v20  ;;  %v1620_v59 = vpop.f32.mrb[7].mxu0 }
 0x1ea   : > { %v4945_v62 = vadd.f32 %v1620_v59, %v551_v22  ;;  %1733 = vrot.lane.b32.xlu0 %v5612_v57, %s5118_s24  ;;  %v1676_v0 = vmul.f32 0.01, %v1660_v54  ;;  %vm1668_vm15 = vcmp.ge.f32.partialorder %v1660_v54, 0.0 }
 0x1eb   : > { %v5616_v63 = vsel %vm1667_vm14, %v1659_v53, %v1675_v8  ;;  %v1661_v9 = vadd.f32 %v4944_v58, %v1653_v61 }
 0x1ec   : > { %v1662_v10 = vadd.f32 %v4945_v62, %v1653_v61  ;;  %1727 = vrot.lane.b32.xlu1 %v5616_v63, %s5118_s24  ;;  %v5620_v12 = vsel %vm1668_vm15, %v1660_v54, %v1676_v0  ;;  %v2956_v0 = vld [vmem:[%s7183_s5 + $0x18] sm:$0xff] }
 0x1ed   : > { %vm1669_vm2 = vcmp.ge.f32.partialorder %v1661_v9, 0.0  ;;  %v1677_v11 = vmul.f32 0.01, %v1661_v9 }
 0x1ee   : > { %v1678_v18 = vmul.f32 0.01, %v1662_v10  ;;  %vm1670_vm4 = vcmp.ge.f32.partialorder %v1662_v10, 0.0 }
 0x1ef   : > { %v5622_v17 = vsel %vm1669_vm2, %v1661_v9, %v1677_v11 }
 0x1f0   : > { %1735 = vrot.lane.b32.xlu1 %v5620_v12, %s5118_s24  ;;  %1729 = vrot.lane.b32.xlu0 %v5622_v17, %s5118_s24  ;;  %v5628_v19 = vsel %vm1670_vm4, %v1662_v10, %v1678_v18 }
 0x1f4   : > { %1687 = vrot.lane.b32.xlu1 %v5600_v33, %s5119_s25  ;;  %1737 = vrot.lane.b32.xlu0 %v5628_v19, %s5118_s24 }
 0x1f8   : > { %1695 = vrot.lane.b32.xlu1 %v5604_v44, %s5119_s25  ;;  %1689 = vrot.lane.b32.xlu0 %v5606_v45, %s5119_s25 }
 0x1fc   : > { %1691 = vrot.lane.b32.xlu1 %v5616_v63, %s5119_s25  ;;  %1697 = vrot.lane.b32.xlu0 %v5612_v57, %s5119_s25 }
 0x200   : > { %1699 = vrot.lane.b32.xlu1 %v5620_v12, %s5119_s25  ;;  %1693 = vrot.lane.b32.xlu0 %v5622_v17, %s5119_s25 }
 0x204   : > { %1963 = vrot.lane.b32.xlu1 %v5600_v33, %s5120_s26  ;;  %1701 = vrot.lane.b32.xlu0 %v5628_v19, %s5119_s25 }
 0x208   : > { %1971 = vrot.lane.b32.xlu1 %v5604_v44, %s5120_s26  ;;  %1965 = vrot.lane.b32.xlu0 %v5606_v45, %s5120_s26 }
 0x20c   : > { %1967 = vrot.lane.b32.xlu1 %v5616_v63, %s5120_s26  ;;  %1973 = vrot.lane.b32.xlu0 %v5612_v57, %s5120_s26 }
 0x210   : > { %1975 = vrot.lane.b32.xlu1 %v5620_v12, %s5120_s26  ;;  %1969 = vrot.lane.b32.xlu0 %v5622_v17, %s5120_s26 }
 0x214   : > { %2109 = vrot.lane.b32.xlu1 %v5600_v33, %s5121_s27  ;;  %1977 = vrot.lane.b32.xlu0 %v5628_v19, %s5120_s26 }
 0x218   : > { %2117 = vrot.lane.b32.xlu1 %v5604_v44, %s5121_s27  ;;  %2111 = vrot.lane.b32.xlu0 %v5606_v45, %s5121_s27 }
 0x21c   : > { %2113 = vrot.lane.b32.xlu1 %v5616_v63, %s5121_s27  ;;  %2119 = vrot.lane.b32.xlu0 %v5612_v57, %s5121_s27 }
 0x220   : > { %2121 = vrot.lane.b32.xlu1 %v5620_v12, %s5121_s27  ;;  %2115 = vrot.lane.b32.xlu0 %v5622_v17, %s5121_s27 }
 0x224   : > { %2369 = vrot.lane.b32.xlu1 %v5600_v33, %s5122_s28  ;;  %2123 = vrot.lane.b32.xlu0 %v5628_v19, %s5121_s27 }
 0x228   : > { %2377 = vrot.lane.b32.xlu1 %v5604_v44, %s5122_s28  ;;  %2371 = vrot.lane.b32.xlu0 %v5606_v45, %s5122_s28 }
 0x22c   : > { %2373 = vrot.lane.b32.xlu1 %v5616_v63, %s5122_s28  ;;  %2379 = vrot.lane.b32.xlu0 %v5612_v57, %s5122_s28 }
 0x230   : > { %2381 = vrot.lane.b32.xlu1 %v5620_v12, %s5122_s28  ;;  %2375 = vrot.lane.b32.xlu0 %v5622_v17, %s5122_s28 }
 0x234   : > { %2515 = vrot.lane.b32.xlu1 %v5600_v33, %s5123_s29  ;;  %2383 = vrot.lane.b32.xlu0 %v5628_v19, %s5122_s28 }
 0x238   : > { %2523 = vrot.lane.b32.xlu1 %v5604_v44, %s5123_s29  ;;  %2517 = vrot.lane.b32.xlu0 %v5606_v45, %s5123_s29 }
 0x23c   : > { %2519 = vrot.lane.b32.xlu1 %v5616_v63, %s5123_s29  ;;  %2525 = vrot.lane.b32.xlu0 %v5612_v57, %s5123_s29 }
 0x240   : > { %2527 = vrot.lane.b32.xlu1 %v5620_v12, %s5123_s29  ;;  %2521 = vrot.lane.b32.xlu0 %v5622_v17, %s5123_s29 }
 0x244   : > { %2661 = vrot.lane.b32.xlu1 %v5600_v33, %s5124_s30  ;;  %2529 = vrot.lane.b32.xlu0 %v5628_v19, %s5123_s29 }
 0x248   : > { %2669 = vrot.lane.b32.xlu1 %v5604_v44, %s5124_s30  ;;  %2663 = vrot.lane.b32.xlu0 %v5606_v45, %s5124_s30 }
 0x24c   : > { %2665 = vrot.lane.b32.xlu1 %v5616_v63, %s5124_s30  ;;  %2671 = vrot.lane.b32.xlu0 %v5612_v57, %s5124_s30 }
 0x250   : > { %2673 = vrot.lane.b32.xlu1 %v5620_v12, %s5124_s30  ;;  %2667 = vrot.lane.b32.xlu0 %v5622_v17, %s5124_s30 }
 0x254   : > { %2807 = vrot.lane.b32.xlu1 %v5600_v33, %s5125_s12  ;;  %v1724_v2 = vpop.permute.xlu1 %1723  ;;  %2675 = vrot.lane.b32.xlu0 %v5628_v19, %s5124_s30 }
 0x258   : > { %2815 = vrot.lane.b32.xlu1 %v5604_v44, %s5125_s12  ;;  %v1732_v20 = vpop.permute.xlu1 %1731  ;;  %2809 = vrot.lane.b32.xlu0 %v5606_v45, %s5125_s12  ;;  %v1726_v22 = vpop.permute.xlu0 %1725 }
 0x259   : > { %v1739_v24 = vsel %vm422_vm0, %v1724_v2, %v1732_v20  ;;  %v1743_v25 = vsel %vm422_vm0, %v1732_v20, %v1724_v2 }
 0x25a   : > { %v1747_v30 = vmul.f32 %v1743_v25, %v5270_v14  ;;  %v1748_v31 = vmul.f32 %v1739_v24, %v5273_v15 }
 0x25c   : > { %2811 = vrot.lane.b32.xlu1 %v5616_v63, %s5125_s12  ;;  %2817 = vrot.lane.b32.xlu0 %v5612_v57, %s5125_s12  ;;  %v1734_v26 = vpop.permute.xlu0 %1733 }
 0x25d   : > { %v1740_v28 = vsel %vm422_vm0, %v1726_v22, %v1734_v26  ;;  %v1744_v29 = vsel %vm422_vm0, %v1734_v26, %v1726_v22  ;;  %v4544_v22 = vld [vmem:[%s7182_s4 + $0x20] sm:$0xff] }
 0x25e   : > { %v1749_v32 = vmul.f32 %v1744_v29, %v5270_v14  ;;  %v1750_v34 = vmul.f32 %v1740_v28, %v5273_v15  ;;  %v1728_v36 = vpop.permute.xlu1 %1727 }
 0x260   : > { %v4642_v39 = vpack.c.bf16 %v1749_v32, %v1747_v30  ;;  %2819 = vrot.lane.b32.xlu1 %v5620_v12, %s5125_s12  ;;  %2813 = vrot.lane.b32.xlu0 %v5622_v17, %s5125_s12  ;;  %v4640_v41 = vpack.c.bf16 %v1750_v34, %v1748_v31  ;;  %v4545_v34 = vld [vmem:[%s7182_s4 + $0x28] sm:$0xff] }
 0x262   : > { %v1736_v43 = vpop.permute.xlu1 %1735  ;;  %4641 = vmatprep.subr.bf16.mxu1 %v4640_v41  ;;  %v1730_v46 = vpop.permute.xlu0 %1729 }
 0x263   : > { %4643 = vmatpush1.bf16.msra.mxu1 %v4642_v39  ;;  %v1745_v47 = vsel %vm422_vm0, %v1736_v43, %v1728_v36  ;;  %v1741_v48 = vsel %vm422_vm0, %v1728_v36, %v1736_v43 }
 0x264   : > { %2959 = vperm.xlu1 %5107, %v2953_v42   ;;  %2821 = vrot.lane.b32.xlu0 %v5628_v19, %s5125_s12  ;;  %v1751_v56 = vmul.f32 %v1745_v47, %v5270_v14  ;;  %v1752_v59 = vmul.f32 %v1741_v48, %v5273_v15  ;;  %v4546_v47 = vld [vmem:[%s7182_s4 + $0x30] sm:$0xff] }
 0x266   : > { %v1688_v53 = vpop.permute.xlu1 %1687  ;;  %v1738_v54 = vpop.permute.xlu0 %1737 }
 0x267   : > { %v1742_v8 = vsel %vm422_vm0, %v1730_v46, %v1738_v54  ;;  %v1746_v58 = vsel %vm422_vm0, %v1738_v54, %v1730_v46 }
 0x268   : > { %v1753_v61 = vmul.f32 %v1746_v58, %v5270_v14  ;;  %v1754_v62 = vmul.f32 %v1742_v8, %v5273_v15  ;;  %2969 = vperm.xlu1 %5107, %v2955_v49   ;;  %2964 = vperm.xlu0 %5106, %v2954_v51  }
 0x26a   : > { %v4646_v9 = vpack.c.bf16 %v1753_v61, %v1751_v56  ;;  %v1696_v10 = vpop.permute.xlu1 %1695  ;;  %v1690_v11 = vpop.permute.xlu0 %1689  ;;  %v4644_v18 = vpack.c.bf16 %v1754_v62, %v1752_v59  ;;  %v4547_v59 = vld [vmem:[%s7182_s4 + $0x38] sm:$0xff] }
 0x26b   : > { %v1703_v2 = vsel %vm397_vm1, %v1688_v53, %v1696_v10  ;;  %v1707_v20 = vsel %vm397_vm1, %v1696_v10, %v1688_v53 }
 0x26c   : > { %2974 = vperm.xlu0 %5106, %v2956_v0   ;;  %4645 = vmatprep.subr.bf16.mxu1 %v4644_v18  ;;  %v1711_v29 = vmul.f32 %v1707_v20, %v5276_v16  ;;  %v1712_v30 = vmul.f32 %v1703_v2, %v5267_v13  ;;  %v1719_v18 = vld [vmem:[%s7182_s4] sm:$0xff] }
 0x26d   : > { %4647 = vmatpush1.bf16.msra.mxu1 %v4646_v9 }
 0x26e   : > { %v1692_v24 = vpop.permute.xlu1 %1691  ;;  %v1698_v25 = vpop.permute.xlu0 %1697 }
 0x26f   : > { %v1704_v26 = vsel %vm397_vm1, %v1690_v11, %v1698_v25  ;;  %v1708_v28 = vsel %vm397_vm1, %v1698_v25, %v1690_v11 }
 0x270   : > { %v1713_v31 = vmul.f32 %v1708_v28, %v5276_v16  ;;  %v1714_v32 = vmul.f32 %v1704_v26, %v5267_v13  ;;  %4548 = vmatmul.mubr.msk.f32.vlgmr.msra.gmra.mrb[4].mxu1 %vm1760_vm10, %v4544_v22 }
 0x271   : > { %1843 = vmatprep.mubr.f32.mxu1 %v7191_v1 }
 0x272   : > { %v4650_v36 = vpack.c.bf16 %v1713_v31, %v1711_v29  ;;  %v1700_v39 = vpop.permute.xlu1 %1699  ;;  %v1694_v41 = vpop.permute.xlu0 %1693  ;;  %v4648_v42 = vpack.c.bf16 %v1714_v32, %v1712_v30  ;;  %v1720_v30 = vld [vmem:[%s7182_s4 + $0x8] sm:$0xff] }
 0x273   : > { %v1705_v43 = vsel %vm397_vm1, %v1692_v24, %v1700_v39  ;;  %v1709_v46 = vsel %vm397_vm1, %v1700_v39, %v1692_v24 }
 0x274   : > { %4549 = vmatmul.mubr.msk.f32.gmra.mrb[6].mxu1 %vm1760_vm10, %v4545_v34  ;;  %4649 = vmatprep.subr.bf16.mxu1 %v4648_v42  ;;  %v1715_v54 = vmul.f32 %v1709_v46, %v5276_v16  ;;  %v1716_v56 = vmul.f32 %v1705_v43, %v5267_v13  ;;  %v1721_v42 = vld [vmem:[%s7182_s4 + $0x10] sm:$0xff] }
 0x275   : > { %4651 = vmatpush1.bf16.msra.mxu1 %v4650_v36  ;;  %1849 = vmatprep.mubr.f32.mxu1 %v7191_v1 }
 0x276   : > { %v1964_v48 = vpop.permute.xlu1 %1963  ;;  %v1702_v49 = vpop.permute.xlu0 %1701 }
 0x277   : > { %v1706_v51 = vsel %vm397_vm1, %v1694_v41, %v1702_v49  ;;  %v1710_v53 = vsel %vm397_vm1, %v1702_v49, %v1694_v41 }
 0x278   : > { %v1717_v8 = vmul.f32 %v1710_v53, %v5276_v16  ;;  %v1718_v58 = vmul.f32 %v1706_v51, %v5267_v13  ;;  %4550 = vmatmul.mubr.msk.f32.gmra.mrb[8].mxu1 %vm1760_vm10, %v4546_v47 }
 0x279   : > { %1855 = vmatprep.mubr.f32.mxu1 %v7191_v1 }
 0x27a   : > { %v4654_v61 = vpack.c.bf16 %v1717_v8, %v1715_v54  ;;  %v1972_v62 = vpop.permute.xlu1 %1971  ;;  %v1966_v0 = vpop.permute.xlu0 %1965  ;;  %v4652_v9 = vpack.c.bf16 %v1718_v58, %v1716_v56  ;;  %v1722_v56 = vld [vmem:[%s7182_s4 + $0x18] sm:$0xff] }
 0x27b   : > { %v1979_v10 = vsel %vm665_vm3, %v1964_v48, %v1972_v62  ;;  %v1983_v11 = vsel %vm665_vm3, %v1972_v62, %v1964_v48 }
 0x27c   : > { %4551 = vmatmul.mubr.msk.f32.gmra.mrb[10].mxu1 %vm1760_vm10, %v4547_v59  ;;  %4653 = vmatprep.subr.bf16.mxu1 %v4652_v9  ;;  %v1987_v25 = vmul.f32 %v1983_v11, %v5322_v37  ;;  %v1988_v26 = vmul.f32 %v1979_v10, %v5294_v27  ;;  %v4556_v9 = vld [vmem:[%s7182_s4 + $0x40] sm:$0xff] }
 0x27d   : > { %4655 = vmatpush1.bf16.msra.mxu1 %v4654_v61  ;;  %1938 = vmatprep.mubr.f32.mxu1 %v7191_v1 }
 0x27e   : > { %v1968_v2 = vpop.permute.xlu1 %1967  ;;  %v1974_v20 = vpop.permute.xlu0 %1973 }
 0x27f   : > { %v1980_v22 = vsel %vm665_vm3, %v1966_v0, %v1974_v20  ;;  %v1984_v24 = vsel %vm665_vm3, %v1974_v20, %v1966_v0 }
 0x280   : > { %v1989_v28 = vmul.f32 %v1984_v24, %v5322_v37  ;;  %v1990_v29 = vmul.f32 %v1980_v22, %v5294_v27  ;;  %4552 = vmatmul.mubr.msk.f32.vlgmr.msra.gmra.mrb[4].mxu1 %vm1760_vm10, %v1719_v18 }
 0x281   : > { %1944 = vmatprep.mubr.f32.mxu1 %v7191_v1 }
 0x282   : > { %v4658_v31 = vpack.c.bf16 %v1989_v28, %v1987_v25  ;;  %v1976_v32 = vpop.permute.xlu1 %1975  ;;  %v1970_v34 = vpop.permute.xlu0 %1969  ;;  %v4656_v36 = vpack.c.bf16 %v1990_v29, %v1988_v26  ;;  %v4557_v26 = vld [vmem:[%s7182_s4 + $0x48] sm:$0xff] }
 0x283   : > { %v1981_v39 = vsel %vm665_vm3, %v1968_v2, %v1976_v32  ;;  %v1985_v41 = vsel %vm665_vm3, %v1976_v32, %v1968_v2 }
 0x284   : > { %4553 = vmatmul.mubr.msk.f32.gmra.mrb[6].mxu1 %vm1760_vm10, %v1720_v30  ;;  %4657 = vmatprep.subr.bf16.mxu1 %v4656_v36  ;;  %v1991_v49 = vmul.f32 %v1985_v41, %v5322_v37  ;;  %v1992_v51 = vmul.f32 %v1981_v39, %v5294_v27  ;;  %v4558_v36 = vld [vmem:[%s7182_s4 + $0x50] sm:$0xff] }
 0x285   : > { %4659 = vmatpush1.bf16.msra.mxu1 %v4658_v31  ;;  %1950 = vmatprep.mubr.f32.mxu1 %v7191_v1 }
 0x286   : > { %v2110_v43 = vpop.permute.xlu1 %2109  ;;  %v1978_v46 = vpop.permute.xlu0 %1977 }
 0x287   : > { %v1982_v47 = vsel %vm665_vm3, %v1970_v34, %v1978_v46  ;;  %v1986_v48 = vsel %vm665_vm3, %v1978_v46, %v1970_v34 }
 0x288   : > { %v1993_v53 = vmul.f32 %v1986_v48, %v5322_v37  ;;  %v1994_v54 = vmul.f32 %v1982_v47, %v5294_v27  ;;  %4554 = vmatmul.mubr.msk.f32.gmra.mrb[8].mxu1 %vm1760_vm10, %v1721_v42 }
 0x289   : > { %1956 = vmatprep.mubr.f32.mxu1 %v7191_v1 }
 0x28a   : > { %v4662_v8 = vpack.c.bf16 %v1993_v53, %v1991_v49  ;;  %v2118_v58 = vpop.permute.xlu1 %2117  ;;  %v2112_v59 = vpop.permute.xlu0 %2111  ;;  %v4660_v61 = vpack.c.bf16 %v1994_v54, %v1992_v51  ;;  %v4559_v51 = vld [vmem:[%s7182_s4 + $0x58] sm:$0xff] }
 0x28b   : > { %v2125_v62 = vsel %vm807_vm5, %v2110_v43, %v2118_v58  ;;  %v2129_v0 = vsel %vm807_vm5, %v2118_v58, %v2110_v43  ;;  %v4672_v58 = vpack.c.bf16 %v5612_v57, %v5604_v44  ;;  %v4676_v57 = vpack.c.bf16 %v5628_v19, %v5620_v12  ;;  %v4566_v12 = vld [vmem:[%s7182_s4 + $0x70] sm:$0xff] }
 0x28c   : > { %4555 = vmatmul.mubr.msk.f32.gmra.mrb[10].mxu1 %vm1760_vm10, %v1722_v56  ;;  %4661 = vmatprep.subr.bf16.mxu1 %v4660_v61  ;;  %v2133_v20 = vmul.f32 %v2129_v0, %v5376_v55  ;;  %v2134_v22 = vmul.f32 %v2125_v62, %v5328_v40 }
 0x28d   : > { %4663 = vmatpush1.bf16.msra.mxu1 %v4662_v8  ;;  %2076 = vmatprep.mubr.f32.mxu1 %v7191_v1 }
 0x28e   : > { %v2114_v10 = vpop.permute.xlu1 %2113  ;;  %v2120_v11 = vpop.permute.xlu0 %2119 }
 0x28f   : > { %v2126_v18 = vsel %vm807_vm5, %v2112_v59, %v2120_v11  ;;  %v2130_v2 = vsel %vm807_vm5, %v2120_v11, %v2112_v59  ;;  %v4564_v59 = vld [vmem:[%s7182_s4 + $0x60] sm:$0xff]  ;;  %v4565_v11 = vld [vmem:[%s7182_s4 + $0x68] sm:$0xff] }
 0x290   : > { %v2135_v24 = vmul.f32 %v2130_v2, %v5376_v55  ;;  %v2136_v25 = vmul.f32 %v2126_v18, %v5328_v40  ;;  %4560 = vmatmul.mubr.msk.f32.vlgmr.msra.gmra.mrb[4].mxu1 %vm1760_vm10, %v4556_v9 }
 0x291   : > { %2082 = vmatprep.mubr.f32.mxu1 %v7191_v1 }
 0x292   : > { %v4666_v28 = vpack.c.bf16 %v2135_v24, %v2133_v20  ;;  %v2122_v29 = vpop.permute.xlu1 %2121  ;;  %v2116_v30 = vpop.permute.xlu0 %2115  ;;  %v4664_v31 = vpack.c.bf16 %v2136_v25, %v2134_v22 }
 0x293   : > { %v2127_v32 = vsel %vm807_vm5, %v2114_v10, %v2122_v29  ;;  %v2131_v34 = vsel %vm807_vm5, %v2122_v29, %v2114_v10  ;;  %v4674_v10 = vpack.c.bf16 %v5606_v45, %v5600_v33  ;;  %v4678_v33 = vpack.c.bf16 %v5622_v17, %v5616_v63  ;;  %v4567_v17 = vld [vmem:[%s7182_s4 + $0x78] sm:$0xff] }
 0x294   : > { %4561 = vmatmul.mubr.msk.f32.gmra.mrb[6].mxu1 %vm1760_vm10, %v4557_v26  ;;  %4665 = vmatprep.subr.bf16.mxu1 %v4664_v31  ;;  %v2137_v46 = vmul.f32 %v2131_v34, %v5376_v55  ;;  %v2138_v47 = vmul.f32 %v2127_v32, %v5328_v40 }
 0x295   : > { %4667 = vmatpush1.bf16.msra.mxu1 %v4666_v28  ;;  %2088 = vmatprep.mubr.f32.mxu1 %v7191_v1 }
 0x296   : > { %v2370_v39 = vpop.permute.xlu1 %2369  ;;  %v2124_v41 = vpop.permute.xlu0 %2123 }
 0x297   : > { %v2128_v42 = vsel %vm807_vm5, %v2116_v30, %v2124_v41  ;;  %v2132_v43 = vsel %vm807_vm5, %v2124_v41, %v2116_v30 }
 0x298   : > { %v2139_v48 = vmul.f32 %v2132_v43, %v5376_v55  ;;  %v2140_v49 = vmul.f32 %v2128_v42, %v5328_v40  ;;  %4562 = vmatmul.mubr.msk.f32.gmra.mrb[8].mxu1 %vm1760_vm10, %v4558_v36 }
 0x299   : > { %2094 = vmatprep.mubr.f32.mxu1 %v7191_v1 }
 0x29a   : > { %v4670_v53 = vpack.c.bf16 %v2139_v48, %v2137_v46  ;;  %v2378_v54 = vpop.permute.xlu1 %2377  ;;  %v2372_v56 = vpop.permute.xlu0 %2371  ;;  %v4668_v8 = vpack.c.bf16 %v2140_v49, %v2138_v47 }
 0x29b   : > { %v2389_v0 = vsel %vm1067_vm6, %v2378_v54, %v2370_v39  ;;  %v2385_v25 = vsel %vm1067_vm6, %v2370_v39, %v2378_v54  ;;  %v4572_v39 = vld [vmem:[%s7182_s4 + $0x80] sm:$0xff] }
 0x29c   : > { %4563 = vmatmul.mubr.msk.f32.gmra.mrb[10].mxu1 %vm1760_vm10, %v4559_v51  ;;  %4669 = vmatprep.subr.bf16.mxu1 %v4668_v8  ;;  %v2394_v18 = vmul.f32 %v2389_v0, %v5409_v3  ;;  %v2393_v34 = vmul.f32 %v2385_v25, %v5442_v21  ;;  %v4573_v8 = vld [vmem:[%s7182_s4 + $0x88] sm:$0xff]  ;;  %v4574_v0 = vld [vmem:[%s7182_s4 + $0x90] sm:$0xff] }
 0x29d   : > { %4671 = vmatpush1.bf16.msra.mxu1 %v4670_v53  ;;  %2222 = vmatprep.mubr.f32.mxu1 %v7191_v1 }
 0x29e   : > { %v2374_v61 = vpop.permute.xlu1 %2373  ;;  %4673 = vmatprep.subr.bf16.mxu1 %v4672_v58  ;;  %v2380_v62 = vpop.permute.xlu0 %2379 }
 0x29f   : > { %v2390_v9 = vsel %vm1067_vm6, %v2380_v62, %v2372_v56  ;;  %v2386_v24 = vsel %vm1067_vm6, %v2372_v56, %v2380_v62 }
 0x2a0   : > { %v2396_v44 = vmul.f32 %v2390_v9, %v5409_v3  ;;  %4568 = vmatmul.mubr.msk.f32.vlgmr.msra.gmra.mrb[4].mxu1 %vm1760_vm10, %v4564_v59  ;;  %v2395_v29 = vmul.f32 %v2386_v24, %v5442_v21 }
 0x2a1   : > { %4675 = vmatpush1.bf16.msra.mxu1 %v4674_v10  ;;  %2228 = vmatprep.mubr.f32.mxu1 %v7191_v1 }
 0x2a2   : > { %v2382_v2 = vpop.permute.xlu1 %2381  ;;  %4677 = vmatprep.subr.bf16.mxu1 %v4676_v57  ;;  %v2376_v20 = vpop.permute.xlu0 %2375  ;;  %v4680_v45 = vpack.c.bf16 %v2396_v44, %v2394_v18  ;;  %v4682_v47 = vpack.c.bf16 %v2395_v29, %v2393_v34 }
 0x2a3   : > { %v2391_v30 = vsel %vm1067_vm6, %v2382_v2, %v2374_v61  ;;  %v2387_v41 = vsel %vm1067_vm6, %v2374_v61, %v2382_v2 }
 0x2a4   : > { %4569 = vmatmul.mubr.msk.f32.gmra.mrb[6].mxu1 %vm1760_vm10, %v4565_v11  ;;  %v2398_v42 = vmul.f32 %v2391_v30, %v5409_v3  ;;  %v2397_v56 = vmul.f32 %v2387_v41, %v5442_v21  ;;  %v4575_v11 = vld [vmem:[%s7182_s4 + $0x98] sm:$0xff]  ;;  %v4581_v41 = vld [vmem:[%s7182_s4 + $0xa8] sm:$0xff] }
 0x2a5   : > { %4679 = vmatpush1.bf16.msra.mxu1 %v4678_v33  ;;  %2234 = vmatprep.mubr.f32.mxu1 %v7191_v1 }
 0x2a6   : > { %v2516_v19 = vpop.permute.xlu1 %2515  ;;  %4681 = vmatprep.subr.bf16.mxu1 %v4680_v45  ;;  %v2384_v22 = vpop.permute.xlu0 %2383 }
 0x2a7   : > { %v2392_v63 = vsel %vm1067_vm6, %v2384_v22, %v2376_v20  ;;  %v2388_v31 = vsel %vm1067_vm6, %v2376_v20, %v2384_v22 }
 0x2a8   : > { %4570 = vmatmul.mubr.msk.f32.gmra.mrb[8].mxu1 %vm1760_vm10, %v4566_v12  ;;  %v2400_v32 = vmul.f32 %v2392_v63, %v5409_v3  ;;  %v2399_v48 = vmul.f32 %v2388_v31, %v5442_v21 }
 0x2a9   : > { %2240 = vmatprep.mubr.f32.mxu1 %v7191_v1 }
 0x2aa   : > { %v2524_v26 = vpop.permute.xlu1 %2523  ;;  %v2518_v28 = vpop.permute.xlu0 %2517  ;;  %v4684_v54 = vpack.c.bf16 %v2400_v32, %v2398_v42  ;;  %v4686_v62 = vpack.c.bf16 %v2399_v48, %v2397_v56  ;;  %v4582_v48 = vld [vmem:[%s7182_s4 + $0xb0] sm:$0xff]  ;;  %v4583_v56 = vld [vmem:[%s7182_s4 + $0xb8] sm:$0xff] }
 0x2ab   : > { %v2535_v36 = vsel %vm1209_vm7, %v2524_v26, %v2516_v19  ;;  %v2531_v18 = vsel %vm1209_vm7, %v2516_v19, %v2524_v26  ;;  %v4580_v19 = vld [vmem:[%s7182_s4 + $0xa0] sm:$0xff] }
 0x2ac   : > { %4571 = vmatmul.mubr.msk.f32.gmra.mrb[10].mxu1 %vm1760_vm10, %v4567_v17  ;;  %v2540_v51 = vmul.f32 %v2535_v36, %v5447_v23  ;;  %v2539_v24 = vmul.f32 %v2531_v18, %v5480_v35 }
 0x2ad   : > { %2336 = vmatprep.mubr.f32.mxu1 %v7191_v1 }
 0x2ae   : > { %v2520_v43 = vpop.permute.xlu1 %2519  ;;  %v2526_v46 = vpop.permute.xlu0 %2525 }
 0x2af   : > { %v2536_v49 = vsel %vm1209_vm7, %v2526_v46, %v2518_v28  ;;  %v2532_v44 = vsel %vm1209_vm7, %v2518_v28, %v2526_v46 }
 0x2b0   : > { %v2542_v53 = vmul.f32 %v2536_v49, %v5447_v23  ;;  %4576 = vmatmul.mubr.msk.f32.vlgmr.msra.gmra.mrb[4].mxu1 %vm1760_vm10, %v4572_v39  ;;  %v2541_v33 = vmul.f32 %v2532_v44, %v5480_v35 }
 0x2b1   : > { %4683 = vmatpush1.bf16.msra.mxu1 %v4682_v47  ;;  %2342 = vmatprep.mubr.f32.mxu1 %v7191_v1 }
 0x2b2   : > { %4685 = vmatprep.subr.bf16.mxu1 %v4684_v54  ;;  %v2528_v58 = vpop.permute.xlu1 %2527  ;;  %v2522_v59 = vpop.permute.xlu0 %2521  ;;  %v4688_v61 = vpack.c.bf16 %v2542_v53, %v2540_v51  ;;  %v4690_v29 = vpack.c.bf16 %v2541_v33, %v2539_v24 }
 0x2b3   : > { %v2537_v45 = vsel %vm1209_vm7, %v2528_v58, %v2520_v43  ;;  %v2533_v17 = vsel %vm1209_vm7, %v2520_v43, %v2528_v58 }
 0x2b4   : > { %4577 = vmatmul.mubr.msk.f32.gmra.mrb[6].mxu1 %vm1760_vm10, %v4573_v8  ;;  %v2544_v25 = vmul.f32 %v2537_v45, %v5447_v23  ;;  %v2543_v39 = vmul.f32 %v2533_v17, %v5480_v35 }
 0x2b5   : > { %4687 = vmatpush1.bf16.msra.mxu1 %v4686_v62  ;;  %2348 = vmatprep.mubr.f32.mxu1 %v7191_v1 }
 0x2b6   : > { %4689 = vmatprep.subr.bf16.mxu1 %v4688_v61  ;;  %v2662_v9 = vpop.permute.xlu1 %2661  ;;  %v2530_v10 = vpop.permute.xlu0 %2529 }
 0x2b7   : > { %v2538_v57 = vsel %vm1209_vm7, %v2530_v10, %v2522_v59  ;;  %v2534_v12 = vsel %vm1209_vm7, %v2522_v59, %v2530_v10 }
 0x2b8   : > { %4578 = vmatmul.mubr.msk.f32.gmra.mrb[8].mxu1 %vm1760_vm10, %v4574_v0  ;;  %v2546_v22 = vmul.f32 %v2538_v57, %v5447_v23  ;;  %v2545_v30 = vmul.f32 %v2534_v12, %v5480_v35  ;;  %v4030_v35 = vld [vmem:[%s7186_s8 + $0x1a0] sm:$0xff] }
 0x2b9   : > { %2354 = vmatprep.mubr.f32.mxu1 %v7191_v1 }
 0x2ba   : > { %v2670_v2 = vpop.permute.xlu1 %2669  ;;  %v2664_v20 = vpop.permute.xlu0 %2663  ;;  %v4692_v36 = vpack.c.bf16 %v2546_v22, %v2544_v25  ;;  %v4694_v47 = vpack.c.bf16 %v2545_v30, %v2543_v39 }
 0x2bb   : > { %v2681_v63 = vsel %vm1351_vm8, %v2670_v2, %v2662_v9  ;;  %v2677_v8 = vsel %vm1351_vm8, %v2662_v9, %v2670_v2  ;;  %v4588_v9 = vld [vmem:[%s7182_s4 + $0xc0] sm:$0xff] }
 0x2bc   : > { %4579 = vmatmul.mubr.msk.f32.gmra.mrb[10].mxu1 %vm1760_vm10, %v4575_v11  ;;  %v2686_v32 = vmul.f32 %v2681_v63, %v5485_v38  ;;  %v2685_v44 = vmul.f32 %v2677_v8, %v5518_v50 }
 0x2bd   : > { %2482 = vmatprep.mubr.f32.mxu1 %v7191_v1 }
 0x2be   : > { %v2666_v26 = vpop.permute.xlu1 %2665  ;;  %v2672_v28 = vpop.permute.xlu0 %2671 }
 0x2bf   : > { %v2682_v31 = vsel %vm1351_vm8, %v2672_v28, %v2664_v20  ;;  %v2678_v53 = vsel %vm1351_vm8, %v2664_v20, %v2672_v28 }
 0x2c0   : > { %v2688_v34 = vmul.f32 %v2682_v31, %v5485_v38  ;;  %4584 = vmatmul.mubr.msk.f32.vlgmr.msra.gmra.mrb[4].mxu1 %vm1760_vm10, %v4580_v19  ;;  %v2687_v61 = vmul.f32 %v2678_v53, %v5518_v50  ;;  %v4589_v19 = vld [vmem:[%s7182_s4 + $0xc8] sm:$0xff] }
 0x2c1   : > { %4691 = vmatpush1.bf16.msra.mxu1 %v4690_v29  ;;  %2488 = vmatprep.mubr.f32.mxu1 %v7191_v1  ;;  %v4590_v29 = vld [vmem:[%s7182_s4 + $0xd0] sm:$0xff] }
 0x2c2   : > { %4693 = vmatprep.subr.bf16.mxu1 %v4692_v36  ;;  %v2674_v42 = vpop.permute.xlu1 %2673  ;;  %v2668_v43 = vpop.permute.xlu0 %2667  ;;  %v4696_v46 = vpack.c.bf16 %v2688_v34, %v2686_v32  ;;  %v4698_v20 = vpack.c.bf16 %v2687_v61, %v2685_v44  ;;  %v4591_v36 = vld [vmem:[%s7182_s4 + $0xd8] sm:$0xff]  ;;  %v4598_v61 = vld [vmem:[%s7182_s4 + $0xf0] sm:$0xff] }
 0x2c3   : > { %v2683_v62 = vsel %vm1351_vm8, %v2674_v42, %v2666_v26  ;;  %v2679_v11 = vsel %vm1351_vm8, %v2666_v26, %v2674_v42  ;;  %v4606_v44 = vld [vmem:[%s7182_s4 + $0x110] sm:$0xff] }
 0x2c4   : > { %4585 = vmatmul.mubr.msk.f32.gmra.mrb[6].mxu1 %vm1760_vm10, %v4581_v41  ;;  %v2690_v18 = vmul.f32 %v2683_v62, %v5485_v38  ;;  %v2689_v63 = vmul.f32 %v2679_v11, %v5518_v50  ;;  %v4599_v62 = vld [vmem:[%s7182_s4 + $0xf8] sm:$0xff] }
 0x2c5   : > { %4695 = vmatpush1.bf16.msra.mxu1 %v4694_v47  ;;  %2494 = vmatprep.mubr.f32.mxu1 %v7191_v1 }
 0x2c6   : > { %4697 = vmatprep.subr.bf16.mxu1 %v4696_v46  ;;  %v2808_v49 = vpop.permute.xlu1 %2807  ;;  %v2676_v51 = vpop.permute.xlu0 %2675 }
 0x2c7   : > { %v2684_v54 = vsel %vm1351_vm8, %v2676_v51, %v2668_v43  ;;  %v2680_v0 = vsel %vm1351_vm8, %v2668_v43, %v2676_v51 }
 0x2c8   : > { %4586 = vmatmul.mubr.msk.f32.gmra.mrb[8].mxu1 %vm1760_vm10, %v4582_v48  ;;  %v2692_v10 = vmul.f32 %v2684_v54, %v5485_v38  ;;  %v2691_v33 = vmul.f32 %v2680_v0, %v5518_v50  ;;  %v4596_v48 = vld [vmem:[%s7182_s4 + $0xe0] sm:$0xff] }
 0x2c9   : > { %2500 = vmatprep.mubr.f32.mxu1 %v7191_v1  ;;  %v4604_v0 = vld [vmem:[%s7182_s4 + $0x100] sm:$0xff] }
 0x2ca   : > { %v2816_v58 = vpop.permute.xlu1 %2815  ;;  %v2810_v59 = vpop.permute.xlu0 %2809  ;;  %v4700_v24 = vpack.c.bf16 %v2692_v10, %v2690_v18  ;;  %v4702_v28 = vpack.c.bf16 %v2691_v33, %v2689_v63  ;;  %v4605_v10 = vld [vmem:[%s7182_s4 + $0x108] sm:$0xff] }
 0x2cb   : > { %v2827_v57 = vsel %vm1493_vm9, %v2816_v58, %v2808_v49  ;;  %v2823_v39 = vsel %vm1493_vm9, %v2808_v49, %v2816_v58  ;;  %v4597_v58 = vld [vmem:[%s7182_s4 + $0xe8] sm:$0xff] }
 0x2cc   : > { %4587 = vmatmul.mubr.msk.f32.gmra.mrb[10].mxu1 %vm1760_vm10, %v4583_v56  ;;  %v2832_v12 = vmul.f32 %v2827_v57, %v5523_v52  ;;  %v2831_v47 = vmul.f32 %v2823_v39, %v5552_v60  ;;  %v4607_v57 = vld [vmem:[%s7182_s4 + $0x118] sm:$0xff] }
 0x2cd   : > { %2628 = vmatprep.mubr.f32.mxu1 %v7191_v1 }
 0x2ce   : > { %v2818_v2 = vpop.permute.xlu0 %2817  ;;  %v2812_v17 = vpop.permute.xlu1 %2811 }
 0x2cf   : > { %v2828_v45 = vsel %vm1493_vm9, %v2818_v2, %v2810_v59  ;;  %v2824_v31 = vsel %vm1493_vm9, %v2810_v59, %v2818_v2 }
 0x2d0   : > { %v2834_v22 = vmul.f32 %v2828_v45, %v5523_v52  ;;  %4592 = vmatmul.mubr.msk.f32.vlgmr.msra.gmra.mrb[4].mxu1 %vm1760_vm10, %v4588_v9  ;;  %v2833_v41 = vmul.f32 %v2824_v31, %v5552_v60 }
 0x2d1   : > { %4699 = vmatpush1.bf16.msra.mxu1 %v4698_v20  ;;  %2634 = vmatprep.mubr.f32.mxu1 %v7191_v1 }
 0x2d2   : > { %4701 = vmatprep.subr.bf16.mxu1 %v4700_v24  ;;  %v2814_v25 = vpop.permute.xlu0 %2813  ;;  %v4704_v26 = vpack.c.bf16 %v2834_v22, %v2832_v12  ;;  %v2820_v32 = vpop.permute.xlu1 %2819  ;;  %v4706_v53 = vpack.c.bf16 %v2833_v41, %v2831_v47 }
 0x2d3   : > { %v2829_v42 = vsel %vm1493_vm9, %v2820_v32, %v2812_v17  ;;  %v2825_v49 = vsel %vm1493_vm9, %v2812_v17, %v2820_v32 }
 0x2d4   : > { %4593 = vmatmul.mubr.msk.f32.gmra.mrb[6].mxu1 %vm1760_vm10, %v4589_v19  ;;  %v2836_v51 = vmul.f32 %v2829_v42, %v5523_v52  ;;  %v2835_v8 = vmul.f32 %v2825_v49, %v5552_v60 }
 0x2d5   : > { %4703 = vmatpush1.bf16.msra.mxu1 %v4702_v28  ;;  %2640 = vmatprep.mubr.f32.mxu1 %v7191_v1 }
 0x2d6   : > { %4705 = vmatprep.subr.bf16.mxu1 %v4704_v26  ;;  %v2822_v30 = vpop.permute.xlu0 %2821 }
 0x2d7   : > { %v2830_v34 = vsel %vm1493_vm9, %v2822_v30, %v2814_v25  ;;  %v2826_v43 = vsel %vm1493_vm9, %v2814_v25, %v2822_v30 }
 0x2d8   : > { %4594 = vmatmul.mubr.msk.f32.gmra.mrb[8].mxu1 %vm1760_vm10, %v4590_v29  ;;  %v2838_v46 = vmul.f32 %v2830_v34, %v5523_v52  ;;  %v2837_v54 = vmul.f32 %v2826_v43, %v5552_v60  ;;  %v4031_v60 = vld [vmem:[%s7186_s8 + $0x1a8] sm:$0xff] }
 0x2d9   : > { %2646 = vmatprep.mubr.f32.mxu1 %v7191_v1 }
 0x2da   : > { %v4708_v56 = vpack.c.bf16 %v2838_v46, %v2836_v51  ;;  %v4710_v59 = vpack.c.bf16 %v2837_v54, %v2835_v8 }
 0x2dc   : > { %4595 = vmatmul.mubr.msk.f32.gmra.mrb[10].mxu1 %vm1760_vm10, %v4591_v36 }
 0x2dd   : > { %2774 = vmatprep.mubr.f32.mxu1 %v7191_v1 }
 0x2e0   : > { %4600 = vmatmul.mubr.msk.f32.vlgmr.msra.gmra.mrb[4].mxu1 %vm1760_vm10, %v4596_v48 }
 0x2e1   : > { %4707 = vmatpush1.bf16.msra.mxu1 %v4706_v53  ;;  %2780 = vmatprep.mubr.f32.mxu1 %v7191_v1 }
 0x2e2   : > { %4709 = vmatprep.subr.bf16.mxu1 %v4708_v56 }
 0x2e3   : > { %v2960_v9 = vpop.permute.xlu1 %2959 }
 0x2e4   : > { %4601 = vmatmul.mubr.msk.f32.gmra.mrb[6].mxu1 %vm1760_vm10, %v4597_v58 }
 0x2e5   : > { %4711 = vmatpush1.bf16.msra.mxu1 %v4710_v59  ;;  %2786 = vmatprep.mubr.f32.mxu1 %v7191_v1 }
 0x2e7   : > { %v2965_v33 = vpop.permute.xlu0 %2964  ;;  %v2970_v39 = vpop.permute.xlu1 %2969 }
 0x2e8   : > { %4602 = vmatmul.mubr.msk.f32.gmra.mrb[8].mxu1 %vm1760_vm10, %v4598_v61 }
 0x2e9   : > { %2792 = vmatprep.mubr.f32.mxu1 %v7191_v1 }
 0x2eb   : > { %v2975_v42 = vpop.permute.xlu0 %2974 }
 0x2ec   : > { %4603 = vmatmul.mubr.msk.f32.gmra.mrb[10].mxu1 %vm1760_vm10, %v4599_v62 }
 0x2ed   : > { %2920 = vmatprep.mubr.f32.mxu1 %v7191_v1 }
 0x2f0   : > { %4608 = vmatmul.mubr.msk.f32.vlgmr.msra.gmra.mrb[4].mxu1 %vm1760_vm10, %v4604_v0 }
 0x2f1   : > { %2926 = vmatprep.mubr.f32.mxu1 %v7191_v1 }
 0x2f4   : > { %4609 = vmatmul.mubr.msk.f32.gmra.mrb[6].mxu1 %vm1760_vm10, %v4605_v10 }
 0x2f5   : > { %2932 = vmatprep.mubr.f32.mxu1 %v7191_v1 }
 0x2f8   : > { %4610 = vmatmul.mubr.msk.f32.gmra.mrb[8].mxu1 %vm1760_vm10, %v4606_v44  ;;  %v3962_v44 = vld [vmem:[#allocation2] sm:$0x1] }
 0x2f9   : > { %2938 = vmatprep.mubr.f32.mxu1 %v7191_v1  ;;  %v4024_v1 = vld [vmem:[%s7186_s8 + $0x170] sm:$0xff] }
 0x2fc   : > { %4611 = vmatmul.mubr.msk.f32.gmra.mrb[10].mxu1 %vm1760_vm10, %v4607_v57 }
 0x3c3   : > { %v2922_v11 = vpop.f32.mrb[4].mxu1 }
 0x3c4   : > { %v2977_v18 = vadd.f32 %v2960_v9, %v2922_v11  ;;  %v2924_v2 = vpop.f32.mrb[5].mxu1  ;;  %v3979_v11 = vld [vmem:[%s7186_s8 + $0x8] sm:$0xff] }
 0x3c5   : > { %v2978_v29 = vadd.f32 %v2960_v9, %v2924_v2  ;;  %v3978_v2 = vld [vmem:[%s7186_s8] sm:$0xff] }
 0x3c6   : > { %vm2985_vm11 = vcmp.ge.f32.partialorder %v2977_v18, 0.0  ;;  %v2993_v20 = vmul.f32 0.01, %v2977_v18 }
 0x3c7   : > { %v2928_v45 = vpop.f32.mrb[6].mxu1  ;;  %v2994_v30 = vmul.f32 0.01, %v2978_v29  ;;  %vm2986_vm13 = vcmp.ge.f32.partialorder %v2978_v29, 0.0 }
 0x3c8   : > { %v6135_v12 = vsel %vm2985_vm11, %v2977_v18, %v2993_v20  ;;  %v2979_v22 = vadd.f32 %v2965_v33, %v2928_v45  ;;  %v2930_v24 = vpop.f32.mrb[7].mxu1  ;;  %v3981_v18 = vld [vmem:[%s7186_s8 + $0x18] sm:$0xff]  ;;  %v3983_v45 = vld [vmem:[%s7186_s8 + $0x28] sm:$0xff] }
 0x3c9   : > { %3042 = vrot.lane.b32.xlu1 %v6135_v12, %s5118_s24  ;;  %v2980_v31 = vadd.f32 %v2965_v33, %v2930_v24  ;;  %v6157_v32 = vsel %vm2986_vm13, %v2978_v29, %v2994_v30  ;;  %v4784_v20 = vpack.c.bf16 %v3981_v18, %v3979_v11  ;;  %v3980_v33 = vld [vmem:[%s7186_s8 + $0x10] sm:$0xff]  ;;  %v3987_v29 = vld [vmem:[%s7186_s8 + $0x48] sm:$0xff]  ;;  %v3989_v30 = vld [vmem:[%s7186_s8 + $0x58] sm:$0xff] }
 0x3ca   : > { %vm2987_vm12 = vcmp.ge.f32.partialorder %v2979_v22, 0.0  ;;  %v2995_v63 = vmul.f32 0.01, %v2979_v22  ;;  %v3990_v18 = vld [vmem:[%s7186_s8 + $0x60] sm:$0xff] }
 0x3cb   : > { %v2934_v19 = vpop.f32.mrb[8].mxu1  ;;  %v2996_v34 = vmul.f32 0.01, %v2980_v31  ;;  %vm2988_vm14 = vcmp.ge.f32.partialorder %v2980_v31, 0.0  ;;  %4785 = vmatprep.subr.bf16.mxu1 %v4784_v20 }
 0x3cc   : > { %v6139_v17 = vsel %vm2987_vm12, %v2979_v22, %v2995_v63  ;;  %v2936_v25 = vpop.f32.mrb[9].mxu1  ;;  %v2981_v41 = vadd.f32 %v2970_v39, %v2934_v19  ;;  %v3985_v22 = vld [vmem:[%s7186_s8 + $0x38] sm:$0xff]  ;;  %v4786_v19 = vpack.c.bf16 %v3980_v33, %v3978_v2  ;;  %v3992_v2 = vld [vmem:[%s7186_s8 + $0x70] sm:$0xff] }
 0x3cd   : > { %3009 = vrot.lane.b32.xlu1 %v6135_v12, %s5119_s25  ;;  %3044 = vrot.lane.b32.xlu0 %v6139_v17, %s5118_s24  ;;  %v6163_v36 = vsel %vm2988_vm14, %v2980_v31, %v2996_v34  ;;  %v2982_v51 = vadd.f32 %v2970_v39, %v2936_v25  ;;  %v4788_v25 = vpack.c.bf16 %v3985_v22, %v3983_v45  ;;  %v3986_v39 = vld [vmem:[%s7186_s8 + $0x40] sm:$0xff]  ;;  %v3997_v45 = vld [vmem:[%s7186_s8 + $0x98] sm:$0xff] }
 0x3ce   : > { %v2997_v43 = vmul.f32 0.01, %v2981_v41  ;;  %vm2989_vm15 = vcmp.ge.f32.partialorder %v2981_v41, 0.0  ;;  %4787 = vmatpush1.bf16.msra.mxu1 %v4786_v19  ;;  %v4792_v34 = vpack.c.bf16 %v3989_v30, %v3987_v29 }
 0x3cf   : > { %v2940_v26 = vpop.f32.mrb[10].mxu1  ;;  %v2998_v53 = vmul.f32 0.01, %v2982_v51  ;;  %vm2990_vm4 = vcmp.ge.f32.partialorder %v2982_v51, 0.0  ;;  %4789 = vmatprep.subr.bf16.mxu1 %v4788_v25 }
 0x3d0   : > { %v2942_v28 = vpop.f32.mrb[11].mxu1  ;;  %v2983_v46 = vadd.f32 %v2975_v42, %v2940_v26  ;;  %v6181_v47 = vsel %vm2989_vm15, %v2981_v41, %v2997_v43  ;;  %v3982_v26 = vld [vmem:[%s7186_s8 + $0x20] sm:$0xff]  ;;  %v3988_v41 = vld [vmem:[%s7186_s8 + $0x50] sm:$0xff] }
 0x3d1   : > { %3224 = vrot.lane.b32.xlu1 %v6135_v12, %s5120_s26  ;;  %3011 = vrot.lane.b32.xlu0 %v6139_v17, %s5119_s25  ;;  %v2984_v54 = vadd.f32 %v2975_v42, %v2942_v28  ;;  %v6205_v56 = vsel %vm2990_vm4, %v2982_v51, %v2998_v53  ;;  %v3984_v28 = vld [vmem:[%s7186_s8 + $0x30] sm:$0xff]  ;;  %v4794_v51 = vpack.c.bf16 %v3988_v41, %v3986_v39  ;;  %v3994_v39 = vld [vmem:[%s7186_s8 + $0x80] sm:$0xff] }
 0x3d2   : > { %v2999_v48 = vmul.f32 0.01, %v2983_v46  ;;  %vm2991_vm2 = vcmp.ge.f32.partialorder %v2983_v46, 0.0  ;;  %v4790_v31 = vpack.c.bf16 %v3984_v28, %v3982_v26  ;;  %v4798_v28 = vpack.c.bf16 %v3992_v2, %v3990_v18  ;;  %v3996_v41 = vld [vmem:[%s7186_s8 + $0x90] sm:$0xff] }
 0x3d3   : > { %v3000_v8 = vmul.f32 0.01, %v2984_v54  ;;  %vm2992_vm11 = vcmp.ge.f32.partialorder %v2984_v54, 0.0  ;;  %v4000_v18 = vld [vmem:[%s7186_s8 + $0xb0] sm:$0xff] }
 0x3d4   : > { %v6187_v49 = vsel %vm2991_vm2, %v2983_v46, %v2999_v48  ;;  %v3991_v46 = vld [vmem:[%s7186_s8 + $0x68] sm:$0xff]  ;;  %v3993_v48 = vld [vmem:[%s7186_s8 + $0x78] sm:$0xff]  ;;  %4791 = vmatpush1.bf16.msra.mxu1 %v4790_v31 }
 0x3d5   : > { %3334 = vrot.lane.b32.xlu1 %v6135_v12, %s5121_s27  ;;  %3226 = vrot.lane.b32.xlu0 %v6139_v17, %s5120_s26  ;;  %v6211_v58 = vsel %vm2992_vm11, %v2984_v54, %v3000_v8  ;;  %v4796_v8 = vpack.c.bf16 %v3993_v48, %v3991_v46  ;;  %v4001_v46 = vld [vmem:[%s7186_s8 + $0xb8] sm:$0xff] }
 0x3d6   : > { %4793 = vmatprep.subr.bf16.mxu1 %v4792_v34 }
 0x3d8   : > { %4795 = vmatpush1.bf16.msra.mxu1 %v4794_v51  ;;  %v4802_v51 = vpack.c.bf16 %v3996_v41, %v3994_v39  ;;  %v4004_v39 = vld [vmem:[%s7186_s8 + $0xd0] sm:$0xff] }
 0x3d9   : > { %3522 = vrot.lane.b32.xlu1 %v6135_v12, %s5122_s28  ;;  %3336 = vrot.lane.b32.xlu0 %v6139_v17, %s5121_s27 }
 0x3da   : > { %4797 = vmatprep.subr.bf16.mxu1 %v4796_v8 }
 0x3dc   : > { %4799 = vmatpush1.bf16.msra.mxu1 %v4798_v28 }
 0x3dd   : > { %3050 = vrot.lane.b32.xlu1 %v6157_v32, %s5118_s24  ;;  %3524 = vrot.lane.b32.xlu0 %v6139_v17, %s5122_s28 }
 0x3e1   : > { %3017 = vrot.lane.b32.xlu1 %v6157_v32, %s5119_s25  ;;  %3052 = vrot.lane.b32.xlu0 %v6163_v36, %s5118_s24 }
 0x3e5   : > { %3232 = vrot.lane.b32.xlu1 %v6157_v32, %s5120_s26  ;;  %3019 = vrot.lane.b32.xlu0 %v6163_v36, %s5119_s25 }
 0x3e9   : > { %3342 = vrot.lane.b32.xlu1 %v6157_v32, %s5121_s27  ;;  %3234 = vrot.lane.b32.xlu0 %v6163_v36, %s5120_s26 }
 0x3ed   : > { %3530 = vrot.lane.b32.xlu1 %v6157_v32, %s5122_s28  ;;  %3344 = vrot.lane.b32.xlu0 %v6163_v36, %s5121_s27 }
 0x3f1   : > { %3046 = vrot.lane.b32.xlu1 %v6181_v47, %s5118_s24  ;;  %3532 = vrot.lane.b32.xlu0 %v6163_v36, %s5122_s28 }
 0x3f5   : > { %3013 = vrot.lane.b32.xlu1 %v6181_v47, %s5119_s25  ;;  %3048 = vrot.lane.b32.xlu0 %v6187_v49, %s5118_s24 }
 0x3f9   : > { %3228 = vrot.lane.b32.xlu1 %v6181_v47, %s5120_s26  ;;  %3015 = vrot.lane.b32.xlu0 %v6187_v49, %s5119_s25 }
 0x3fd   : > { %3338 = vrot.lane.b32.xlu1 %v6181_v47, %s5121_s27  ;;  %3230 = vrot.lane.b32.xlu0 %v6187_v49, %s5120_s26 }
 0x401   : > { %3526 = vrot.lane.b32.xlu1 %v6181_v47, %s5122_s28  ;;  %3340 = vrot.lane.b32.xlu0 %v6187_v49, %s5121_s27 }
 0x405   : > { %3054 = vrot.lane.b32.xlu1 %v6205_v56, %s5118_s24  ;;  %3528 = vrot.lane.b32.xlu0 %v6187_v49, %s5122_s28 }
 0x409   : > { %3632 = vrot.lane.b32.xlu1 %v6135_v12, %s5123_s29  ;;  %3056 = vrot.lane.b32.xlu0 %v6211_v58, %s5118_s24 }
 0x40d   : > { %3021 = vrot.lane.b32.xlu1 %v6205_v56, %s5119_s25  ;;  %3634 = vrot.lane.b32.xlu0 %v6139_v17, %s5123_s29 }
 0x411   : > { %3236 = vrot.lane.b32.xlu1 %v6205_v56, %s5120_s26  ;;  %3023 = vrot.lane.b32.xlu0 %v6211_v58, %s5119_s25  ;;  %s386_s25 = scalar_lea.vmem %s7189_s11, %s4450_s17 }
 0x415   : > { %3346 = vrot.lane.b32.xlu1 %v6205_v56, %s5121_s27  ;;  %3642 = vrot.lane.b32.xlu0 %v6163_v36, %s5123_s29 }
 0x419   : > { %3534 = vrot.lane.b32.xlu1 %v6205_v56, %s5122_s28  ;;  %3238 = vrot.lane.b32.xlu0 %v6211_v58, %s5120_s26 }
 0x41d   : > { %3640 = vrot.lane.b32.xlu1 %v6157_v32, %s5123_s29  ;;  %3638 = vrot.lane.b32.xlu0 %v6187_v49, %s5123_s29 }
 0x421   : > { %3636 = vrot.lane.b32.xlu1 %v6181_v47, %s5123_s29  ;;  %3348 = vrot.lane.b32.xlu0 %v6211_v58, %s5121_s27 }
 0x425   : > { %3644 = vrot.lane.b32.xlu1 %v6205_v56, %s5123_s29  ;;  %3744 = vrot.lane.b32.xlu0 %v6139_v17, %s5124_s30 }
 0x429   : > { %3742 = vrot.lane.b32.xlu1 %v6135_v12, %s5124_s30  ;;  %3752 = vrot.lane.b32.xlu0 %v6163_v36, %s5124_s30 }
 0x42d   : > { %3750 = vrot.lane.b32.xlu1 %v6157_v32, %s5124_s30  ;;  %3748 = vrot.lane.b32.xlu0 %v6187_v49, %s5124_s30 }
 0x431   : > { %3746 = vrot.lane.b32.xlu1 %v6181_v47, %s5124_s30  ;;  %3536 = vrot.lane.b32.xlu0 %v6211_v58, %s5122_s28 }
 0x435   : > { %3754 = vrot.lane.b32.xlu1 %v6205_v56, %s5124_s30  ;;  %3854 = vrot.lane.b32.xlu0 %v6139_v17, %s5125_s12 }
 0x439   : > { %3852 = vrot.lane.b32.xlu1 %v6135_v12, %s5125_s12  ;;  %3646 = vrot.lane.b32.xlu0 %v6211_v58, %s5123_s29 }
 0x43b   : > { %v3043_v59 = vpop.permute.xlu1 %3042 }
 0x43d   : > { %3860 = vrot.lane.b32.xlu1 %v6157_v32, %s5125_s12  ;;  %3862 = vrot.lane.b32.xlu0 %v6163_v36, %s5125_s12 }
 0x43f   : > { %v6269_v61 = vpop.permute.xlu1 %3009  ;;  %v3045_v62 = vpop.permute.xlu0 %3044 }
 0x441   : > { %3856 = vrot.lane.b32.xlu1 %v6181_v47, %s5125_s12  ;;  %3756 = vrot.lane.b32.xlu0 %v6211_v58, %s5124_s30 }
 0x443   : > { %v6275_v0 = vpop.permute.xlu1 %3224  ;;  %v6277_v10 = vpop.permute.xlu0 %3011 }
 0x445   : > { %3864 = vrot.lane.b32.xlu1 %v6205_v56, %s5125_s12  ;;  %3858 = vrot.lane.b32.xlu0 %v6187_v49, %s5125_s12 }
 0x447   : > { %v6283_v57 = vpop.permute.xlu1 %3334  ;;  %v6285_v9 = vpop.permute.xlu0 %3226 }
 0x449   : > { %3965 = vperm.xlu1 %5107, %v3962_v44   ;;  %3866 = vrot.lane.b32.xlu0 %v6211_v58, %s5125_s12 }
 0x44b   : > { %v6307_v24 = vpop.permute.xlu1 %3522  ;;  %v6309_v63 = vpop.permute.xlu0 %3336 }
 0x44f   : > { %v3051_v42 = vpop.permute.xlu1 %3050  ;;  %v6329_v43 = vpop.permute.xlu0 %3524 }
 0x450   : > { %v3058_v53 = vsel %vm422_vm0, %v3043_v59, %v3051_v42  ;;  %v3062_v54 = vsel %vm422_vm0, %v3051_v42, %v3043_v59  ;;  %v3995_v59 = vld [vmem:[%s7186_s8 + $0x88] sm:$0xff] }
 0x451   : > { %v3066_v22 = vmul.f32 %v3062_v54, %v5270_v14  ;;  %v3067_v19 = vmul.f32 %v3058_v53, %v5273_v15  ;;  %v4800_v34 = vpack.c.bf16 %v3997_v45, %v3995_v59  ;;  %v3999_v42 = vld [vmem:[%s7186_s8 + $0xa8] sm:$0xff] }
 0x452   : > { %v4804_v8 = vpack.c.bf16 %v4001_v46, %v3999_v42  ;;  %v4007_v42 = vld [vmem:[%s7186_s8 + $0xe8] sm:$0xff]  ;;  %v4009_v46 = vld [vmem:[%s7186_s8 + $0xf8] sm:$0xff] }
 0x453   : > { %v6341_v44 = vpop.permute.xlu1 %3017  ;;  %v3053_v11 = vpop.permute.xlu0 %3052  ;;  %4801 = vmatprep.subr.bf16.mxu1 %v4800_v34  ;;  %v4002_v34 = vld [vmem:[%s7186_s8 + $0xc0] sm:$0xff] }
 0x454   : > { %v3059_v20 = vsel %vm422_vm0, %v3045_v62, %v3053_v11  ;;  %v3063_v33 = vsel %vm422_vm0, %v3053_v11, %v3045_v62  ;;  %v3998_v11 = vld [vmem:[%s7186_s8 + $0xa0] sm:$0xff]  ;;  %4803 = vmatpush1.bf16.msra.mxu1 %v4802_v51 }
 0x455   : > { %v3068_v25 = vmul.f32 %v3063_v33, %v5270_v14  ;;  %v3069_v26 = vmul.f32 %v3059_v20, %v5273_v15  ;;  %v4003_v20 = vld [vmem:[%s7186_s8 + $0xc8] sm:$0xff]  ;;  %v4005_v33 = vld [vmem:[%s7186_s8 + $0xd8] sm:$0xff]  ;;  %4805 = vmatprep.subr.bf16.mxu1 %v4804_v8 }
 0x457   : > { %v4714_v62 = vpack.c.bf16 %v3068_v25, %v3066_v22  ;;  %v6363_v29 = vpop.permute.xlu1 %3232  ;;  %v6365_v30 = vpop.permute.xlu0 %3019  ;;  %v4712_v31 = vpack.c.bf16 %v3069_v26, %v3067_v19  ;;  %v4806_v25 = vpack.c.bf16 %v4000_v18, %v3998_v11  ;;  %v4810_v18 = vpack.c.bf16 %v4004_v39, %v4002_v34  ;;  %v4013_v34 = vld [vmem:[%s7186_s8 + $0x118] sm:$0xff]  ;;  %v4023_v26 = vld [vmem:[%s7186_s8 + $0x168] sm:$0xff] }
 0x458   : > { %v3244_v48 = vsel %vm665_vm3, %v6363_v29, %v6275_v0 }
 0x459   : > { %4713 = vmatprep.subr.bf16.mxu0 %v4712_v31  ;;  %v6402_v59 = vmul.f32 %v3244_v48, %v5322_v37  ;;  %v4808_v31 = vpack.c.bf16 %v4005_v33, %v4003_v20  ;;  %4807 = vmatpush1.bf16.msra.mxu1 %v4806_v25 }
 0x45a   : > { %4715 = vmatpush1.bf16.msra.mxu0 %v4714_v62 }
 0x45b   : > { %v3343_v53 = vpop.permute.xlu1 %3342  ;;  %v6383_v54 = vpop.permute.xlu0 %3234  ;;  %4809 = vmatprep.subr.bf16.mxu1 %v4808_v31  ;;  %v4011_v31 = vld [vmem:[%s7186_s8 + $0x108] sm:$0xff] }
 0x45c   : > { %v3245_v2 = vsel %vm665_vm3, %v6383_v54, %v6285_v9  ;;  %v3350_v22 = vsel %vm807_vm5, %v6283_v57, %v3343_v53  ;;  %v3354_v19 = vsel %vm807_vm5, %v3343_v53, %v6283_v57 }
 0x45d   : > { %v6405_v45 = vmul.f32 %v3245_v2, %v5322_v37  ;;  %v6434_v48 = vmul.f32 %v3354_v19, %v5376_v55  ;;  %v6437_v51 = vmul.f32 %v3350_v22, %v5328_v40  ;;  %v4812_v19 = vpack.c.bf16 %v4009_v46, %v4007_v42  ;;  %4811 = vmatpush1.bf16.msra.mxu1 %v4810_v18  ;;  %v4012_v18 = vld [vmem:[%s7186_s8 + $0x110] sm:$0xff]  ;;  %v4014_v46 = vld [vmem:[%s7186_s8 + $0x120] sm:$0xff]  ;;  %v4019_v2 = vld [vmem:[%s7186_s8 + $0x148] sm:$0xff] }
 0x45e   : > { %v4020_v22 = vld [vmem:[%s7186_s8 + $0x150] sm:$0xff] }
 0x45f   : > { %v3531_v28 = vpop.permute.xlu1 %3530  ;;  %v3345_v62 = vpop.permute.xlu0 %3344  ;;  %4813 = vmatprep.subr.bf16.mxu1 %v4812_v19 }
 0x460   : > { %v3351_v57 = vsel %vm807_vm5, %v6309_v63, %v3345_v62  ;;  %v3355_v41 = vsel %vm807_vm5, %v3345_v62, %v6309_v63  ;;  %v3538_v63 = vsel %vm1067_vm6, %v6307_v24, %v3531_v28  ;;  %v3542_v11 = vsel %vm1067_vm6, %v3531_v28, %v6307_v24  ;;  %v4006_v62 = vld [vmem:[%s7186_s8 + $0xe0] sm:$0xff]  ;;  %v4008_v24 = vld [vmem:[%s7186_s8 + $0xf0] sm:$0xff] }
 0x461   : > { %v6440_v53 = vmul.f32 %v3355_v41, %v5376_v55  ;;  %v6443_v8 = vmul.f32 %v3351_v57, %v5328_v40  ;;  %v6476_v39 = vmul.f32 %v3538_v63, %v5442_v21  ;;  %v6479_v57 = vmul.f32 %v3542_v11, %v5409_v3  ;;  %v4016_v63 = vld [vmem:[%s7186_s8 + $0x130] sm:$0xff] }
 0x462   : > { %v4816_v11 = vpack.c.bf16 %v4013_v34, %v4011_v31 }
 0x463   : > { %v6453_v20 = vpop.permute.xlu1 %3046  ;;  %v3533_v33 = vpop.permute.xlu0 %3532  ;;  %7220 = vst [vmem:[#allocation12_spill] sm:$0xff] %v6476_v39 }
 0x464   : > { %v3539_v25 = vsel %vm1067_vm6, %v6329_v43, %v3533_v33  ;;  %v3543_v28 = vsel %vm1067_vm6, %v3533_v33, %v6329_v43  ;;  %v4814_v43 = vpack.c.bf16 %v4008_v24, %v4006_v62  ;;  %v4015_v62 = vld [vmem:[%s7186_s8 + $0x128] sm:$0xff]  ;;  %v4017_v24 = vld [vmem:[%s7186_s8 + $0x138] sm:$0xff] }
 0x465   : > { %v6482_v41 = vmul.f32 %v3539_v25, %v5442_v21  ;;  %v6485_v42 = vmul.f32 %v3543_v28, %v5409_v3  ;;  %v4010_v25 = vld [vmem:[%s7186_s8 + $0x100] sm:$0xff]  ;;  %v4820_v34 = vpack.c.bf16 %v4017_v24, %v4015_v62 }
 0x466   : > { %4815 = vmatpush1.bf16.msra.mxu1 %v4814_v43  ;;  %v4818_v28 = vpack.c.bf16 %v4012_v18, %v4010_v25  ;;  %v4021_v43 = vld [vmem:[%s7186_s8 + $0x158] sm:$0xff]  ;;  %v4822_v25 = vpack.c.bf16 %v4016_v63, %v4014_v46  ;;  %v4018_v24 = vld [vmem:[%s7186_s8 + $0x140] sm:$0xff] }
 0x467   : > { %7221 = vst [vmem:[#allocation13_spill] sm:$0xff] %v6482_v41  ;;  %v6489_v33 = vpop.permute.xlu1 %3013  ;;  %v6491_v4 = vpop.permute.xlu0 %3048  ;;  %4817 = vmatprep.subr.bf16.mxu1 %v4816_v11  ;;  %v4824_v62 = vpack.c.bf16 %v4021_v43, %v4019_v2  ;;  %v4025_v46 = vld [vmem:[%s7186_s8 + $0x178] sm:$0xff]  ;;  %v4826_v63 = vpack.c.bf16 %v4020_v22, %v4018_v24  ;;  %v4022_v43 = vld [vmem:[%s7186_s8 + $0x160] sm:$0xff] }
 0x468   : > { %v4029_v22 = vld [vmem:[%s7186_s8 + $0x198] sm:$0xff] }
 0x469   : > { %v4832_v24 = vpack.c.bf16 %v4029_v22, %v4027_v5  ;;  %v3026_v5 = vsel %vm397_vm1, %v6277_v10, %v6365_v30  ;;  %v3025_v22 = vsel %vm397_vm1, %v6269_v61, %v6341_v44 }
 0x46a   : > { %4819 = vmatpush1.bf16.msra.mxu1 %v4818_v28  ;;  %v3034_v39 = vmul.f32 %v3025_v22, %v5267_v13 }
 0x46b   : > { %v6507_v19 = vpop.permute.xlu1 %3228  ;;  %v6509_v31 = vpop.permute.xlu0 %3015  ;;  %4821 = vmatprep.subr.bf16.mxu1 %v4820_v34  ;;  %v4828_v34 = vpack.c.bf16 %v4025_v46, %v4023_v26  ;;  %v4026_v46 = vld [vmem:[%s7186_s8 + $0x180] sm:$0xff] }
 0x46e   : > { %4823 = vmatpush1.bf16.msra.mxu1 %v4822_v25  ;;  %v4830_v25 = vpack.c.bf16 %v4024_v1, %v4022_v43  ;;  %v4033_v1 = vld [vmem:[%s7186_s8 + $0x1b8] sm:$0xff]  ;;  %v4834_v43 = vpack.c.bf16 %v4028_v7, %v4026_v46  ;;  %v3030_v7 = vsel %vm397_vm1, %v6365_v30, %v6277_v10 }
 0x46f   : > { %v6523_v11 = vpop.permute.xlu1 %3338  ;;  %v6525_v18 = vpop.permute.xlu0 %3230  ;;  %4825 = vmatprep.subr.bf16.mxu1 %v4824_v62  ;;  %v4836_v38 = vpack.c.bf16 %v4033_v1, %v4031_v60  ;;  %v4037_v46 = vld [vmem:[%s7186_s8 + $0x1d8] sm:$0xff] }
 0x472   : > { %4827 = vmatpush1.bf16.msra.mxu1 %v4826_v63 }
 0x473   : > { %v6539_v28 = vpop.permute.xlu1 %3526  ;;  %v6541_v2 = vpop.permute.xlu0 %3340  ;;  %4829 = vmatprep.subr.bf16.mxu1 %v4828_v34 }
 0x476   : > { %4831 = vmatpush1.bf16.msra.mxu1 %v4830_v25  ;;  %v3036_v25 = vmul.f32 %v3026_v5, %v5267_v13 }
 0x477   : > { %v3055_v62 = vpop.permute.xlu1 %3054  ;;  %v6555_v26 = vpop.permute.xlu0 %3528  ;;  %4833 = vmatprep.subr.bf16.mxu1 %v4832_v24  ;;  %v4035_v24 = vld [vmem:[%s7186_s8 + $0x1c8] sm:$0xff] }
 0x478   : > { %v3060_v63 = vsel %vm422_vm0, %v6453_v20, %v3055_v62  ;;  %v3064_v34 = vsel %vm422_vm0, %v3055_v62, %v6453_v20  ;;  %v4032_v20 = vld [vmem:[%s7186_s8 + $0x1b0] sm:$0xff] }
 0x479   : > { %v3070_v10 = vmul.f32 %v3064_v34, %v5270_v14  ;;  %v3071_v30 = vmul.f32 %v3060_v63, %v5273_v15  ;;  %v4840_v63 = vpack.c.bf16 %v4037_v46, %v4035_v24 }
 0x47a   : > { %4835 = vmatpush1.bf16.msra.mxu1 %v4834_v43  ;;  %v4612_v43 = vld [vmem:[%s7184_s6 + $0x1] sm:$0x1] }
 0x47b   : > { %v6583_v52 = vpop.permute.xlu1 %3632  ;;  %v3057_v50 = vpop.permute.xlu0 %3056  ;;  %4837 = vmatprep.subr.bf16.mxu1 %v4836_v38 }
 0x47c   : > { %v3061_v62 = vsel %vm422_vm0, %v6491_v4, %v3057_v50  ;;  %v3065_v60 = vsel %vm422_vm0, %v3057_v50, %v6491_v4  ;;  %v3029_v4 = vsel %vm397_vm1, %v6341_v44, %v6269_v61  ;;  %v4838_v50 = vpack.c.bf16 %v4032_v20, %v4030_v35 }
 0x47d   : > { %v3072_v1 = vmul.f32 %v3065_v60, %v5270_v14  ;;  %v3073_v5 = vmul.f32 %v3061_v62, %v5273_v15  ;;  %v3035_v14 = vmul.f32 %v3030_v7, %v5276_v16  ;;  %v3241_v15 = vsel %vm665_vm3, %v6285_v9, %v6383_v54 }
 0x47e   : > { %v4720_v61 = vpack.c.bf16 %v3036_v25, %v3034_v39  ;;  %v3033_v35 = vmul.f32 %v3029_v4, %v5276_v16  ;;  %4839 = vmatpush1.bf16.msra.mxu1 %v4838_v50  ;;  %v3240_v9 = vsel %vm665_vm3, %v6275_v0, %v6363_v29  ;;  %v3251_v20 = vmul.f32 %v3241_v15, %v5294_v27 }
 0x47f   : > { %v4718_v41 = vpack.c.bf16 %v3072_v1, %v3070_v10  ;;  %v3022_v23 = vpop.permute.xlu1 %3021  ;;  %v6617_v3 = vpop.permute.xlu0 %3634  ;;  %v4716_v34 = vpack.c.bf16 %v3073_v5, %v3071_v30  ;;  %4841 = vmatprep.subr.bf16.mxu1 %v4840_v63  ;;  %v7222_v25 = vmov 0.0   ;;  %v3249_v62 = vmul.f32 %v3240_v9, %v5294_v27  ;;  %v3041_v30 = vld [vmem:[%s7184_s6] sm:$0x1] }
 0x480   : > { %v3027_v44 = vsel %vm397_vm1, %v6489_v33, %v3022_v23  ;;  %v3031_v38 = vsel %vm397_vm1, %v3022_v23, %v6489_v33  ;;  %v4722_v22 = vpack.c.bf16 %v3035_v14, %v3033_v35  ;;  %v7223_v15 = vpack.c.bf16 %v6405_v45, %v6402_v59  ;;  %v4615_v59 = vld [vmem:[%s7184_s6 + $0x2] sm:$0x1] }
 0x481   : > { %4717 = vmatprep.subr.bf16.mxu0 %v4716_v34  ;;  %v3037_v33 = vmul.f32 %v3031_v38, %v5276_v16  ;;  %v3038_v7 = vmul.f32 %v3027_v44, %v5267_v13  ;;  %v4728_v10 = vpack.c.bf16 %v3251_v20, %v3249_v62  ;;  %v7224_v38 = vpack.c.bf16 %v6443_v8, %v6437_v51 }
 0x482   : > { %4719 = vmatpush1.bf16.msra.mxu0 %v4718_v41  ;;  %v7225_v51 = vpack.c.bf16 %v6440_v53, %v6434_v48  ;;  %v4746_v53 = vpack.c.bf16 %v6139_v17, %v6135_v12  ;;  %vm4161_vm0 = vcmask 1043456  }
 0x483   : > { %v3237_v54 = vpop.permute.xlu1 %3236  ;;  %4721 = vmatprep.subr.bf16.mxu0 %v4720_v61  ;;  %v3024_v39 = vpop.permute.xlu0 %3023 }
 0x484   : > { %v3028_v23 = vsel %vm397_vm1, %v6509_v31, %v3024_v39  ;;  %v3032_v41 = vsel %vm397_vm1, %v3024_v39, %v6509_v31  ;;  %vm5127_vm1 = vmmov 1  }
 0x485   : > { %v3039_v0 = vmul.f32 %v3032_v41, %v5276_v16  ;;  %v3040_v29 = vmul.f32 %v3028_v23, %v5267_v13  ;;  %4613 = vmatmul.mubr.msk.f32.vlgmr.msra.gmra.mrb[8].mxu0 %vm1760_vm10, %v4612_v43  ;;  %v3242_v16 = vsel %vm665_vm3, %v6507_v19, %v3237_v54  ;;  %v3246_v13 = vsel %vm665_vm3, %v3237_v54, %v6507_v19 }
 0x486   : > { %4723 = vmatpush1.bf16.msra.mxu0 %v4722_v22  ;;  %3217 = vmatprep.mubr.f32.mxu0 %v7222_v25  ;;  %v3252_v34 = vmul.f32 %v3246_v13, %v5322_v37  ;;  %v3253_v19 = vmul.f32 %v3242_v16, %v5294_v27  ;;  %v7228_v13 = vld [vmem:[#allocation6_spill] sm:$0xff] }
 0x487   : > { %v4726_v60 = vpack.c.bf16 %v3039_v0, %v3037_v33  ;;  %v3347_v24 = vpop.permute.xlu1 %3346  ;;  %v6652_v46 = vpop.permute.xlu0 %3642  ;;  %v4724_v31 = vpack.c.bf16 %v3040_v29, %v3038_v7  ;;  %v4744_v33 = vpack.c.bf16 %v6163_v36, %v6157_v32  ;;  %v4748_v7 = vpack.c.bf16 %v6211_v58, %v6205_v56  ;;  %v4619_v56 = vld [vmem:[%s7184_s6 + $0x4] sm:$0x1] }
 0x488   : > { %v4750_v0 = vpack.c.bf16 %v6187_v49, %v6181_v47  ;;  %v3653_v47 = vsel %vm1209_vm7, %v6652_v46, %v6617_v3  ;;  %v7226_v58 = vpack.c.bf16 %v6485_v42, %v6479_v57 }
 0x489   : > { %4725 = vmatprep.subr.bf16.mxu0 %v4724_v31 }
 0x48a   : > { %4727 = vmatpush1.bf16.msra.mxu0 %v4726_v60 }
 0x48b   : > { %v3535_v1 = vpop.permute.xlu1 %3534  ;;  %4729 = vmatprep.subr.bf16.mxu0 %v4728_v10  ;;  %v3239_v5 = vpop.permute.xlu0 %3238  ;;  %v7227_v10 = vld [vmem:[#allocation5_spill] sm:$0xff] }
 0x48c   : > { %v3243_v4 = vsel %vm665_vm3, %v6525_v18, %v3239_v5  ;;  %v3247_v50 = vsel %vm665_vm3, %v3239_v5, %v6525_v18  ;;  %v3540_v29 = vsel %vm1067_vm6, %v6539_v28, %v3535_v1  ;;  %v3544_v12 = vsel %vm1067_vm6, %v3535_v1, %v6539_v28  ;;  %v7229_v1 = vld [vmem:[#allocation13_spill] sm:$0xff]  ;;  %v7230_v5 = vld [vmem:[#allocation12_spill] sm:$0xff]  ;;  %vm7013_vm3 = vmpackc.low %vm4161_vm0, %vm5127_vm1 }
 0x48d   : > { %v3254_v63 = vmul.f32 %v3247_v50, %v5322_v37  ;;  %v3255_v14 = vmul.f32 %v3243_v4, %v5294_v27  ;;  %4614 = vmatmul.mubr.msk.f32.vlgmr.msra.gmra.mrb[8].mxu0 %vm1760_vm10, %v3041_v30  ;;  %v3352_v37 = vsel %vm807_vm5, %v6523_v11, %v3347_v24  ;;  %v3356_v27 = vsel %vm807_vm5, %v3347_v24, %v6523_v11  ;;  %v7232_v50 = vld [vmem:[#allocation7_spill] sm:$0xff] }
 0x48e   : > { %4731 = vmatpush1.bf16.msra.mxu0 %v7223_v15  ;;  %3325 = vmatprep.mubr.f32.mxu0 %v7222_v25  ;;  %v3362_v54 = vmul.f32 %v3356_v27, %v5376_v55  ;;  %v3363_v39 = vmul.f32 %v3352_v37, %v5328_v40  ;;  %v3550_v62 = vmul.f32 %v3540_v29, %v5442_v21 }
 0x48f   : > { %v4734_v61 = vpack.c.bf16 %v3254_v63, %v3252_v34  ;;  %v3641_v35 = vpop.permute.xlu1 %3640  ;;  %v6678_v44 = vpop.permute.xlu0 %3638  ;;  %v4732_v18 = vpack.c.bf16 %v3255_v14, %v3253_v19  ;;  %v3551_v16 = vmul.f32 %v3544_v12, %v7227_v10  ;;  %v7231_v4 = vpack.c.bf16 %v7229_v1, %v7230_v5  ;;  %v4623_v12 = vld [vmem:[%s7184_s6 + $0x6] sm:$0x1] }
 0x490   : > { %v3652_v17 = vsel %vm1209_vm7, %v3641_v35, %v6583_v52  ;;  %v3648_v60 = vsel %vm1209_vm7, %v6583_v52, %v3641_v35  ;;  %v3649_v52 = vsel %vm1209_vm7, %v6617_v3, %v6652_v46  ;;  %v7236_v5 = vld [vmem:[#allocation11_spill] sm:$0xff] }
 0x491   : > { %4733 = vmatprep.subr.bf16.mxu0 %v4732_v18  ;;  %v3657_v57 = vmul.f32 %v3652_v17, %v7228_v13  ;;  %v3656_v34 = vmul.f32 %v3648_v60, %v7232_v50  ;;  %v3658_v3 = vmul.f32 %v3649_v52, %v7232_v50  ;;  %v4621_v18 = vld [vmem:[%s7184_s6 + $0x5] sm:$0x1] }
 0x492   : > { %4735 = vmatpush1.bf16.msra.mxu0 %v4734_v61 }
 0x493   : > { %v6689_v45 = vpop.permute.xlu1 %3636  ;;  %4737 = vmatprep.subr.bf16.mxu0 %v7224_v38  ;;  %v3349_v43 = vpop.permute.xlu0 %3348  ;;  %v4762_v37 = vpack.c.bf16 %v3658_v3, %v3656_v34 }
 0x494   : > { %v3353_v9 = vsel %vm807_vm5, %v6541_v2, %v3349_v43  ;;  %v3357_v11 = vsel %vm807_vm5, %v3349_v43, %v6541_v2  ;;  %vm4157_vm5 = vcmask 359424  }
 0x495   : > { %v3364_v22 = vmul.f32 %v3357_v11, %v5376_v55  ;;  %v3365_v20 = vmul.f32 %v3353_v9, %v5328_v40  ;;  %4616 = vmatmul.mubr.msk.f32.vlgmr.msra.gmra.mrb[8].mxu0 %vm1760_vm10, %v4615_v59  ;;  %v4617_v40 = vld [vmem:[%s7184_s6 + $0x3] sm:$0x1] }
 0x496   : > { %4739 = vmatpush1.bf16.msra.mxu0 %v7225_v51  ;;  %3435 = vmatprep.mubr.f32.mxu0 %v7222_v25 }
 0x497   : > { %v4742_v8 = vpack.c.bf16 %v3364_v22, %v3362_v54  ;;  %v3645_v23 = vpop.permute.xlu1 %3644  ;;  %v6709_v41 = vpop.permute.xlu0 %3744  ;;  %v4740_v2 = vpack.c.bf16 %v3365_v20, %v3363_v39  ;;  %v7233_v39 = vld [vmem:[#allocation8_spill] sm:$0xff] }
 0x498   : > { %v3650_v15 = vsel %vm1209_vm7, %v6689_v45, %v3645_v23  ;;  %v3654_v61 = vsel %vm1209_vm7, %v3645_v23, %v6689_v45 }
 0x499   : > { %4741 = vmatprep.subr.bf16.mxu0 %v4740_v2  ;;  %v3660_v27 = vmul.f32 %v3650_v15, %v7232_v50  ;;  %v3661_v54 = vmul.f32 %v3654_v61, %v7228_v13 }
 0x49a   : > { %4743 = vmatpush1.bf16.msra.mxu0 %v4742_v8 }
 0x49b   : > { %v3743_v55 = vpop.permute.xlu1 %3742  ;;  %4745 = vmatprep.subr.bf16.mxu0 %v4744_v33  ;;  %v3753_v48 = vpop.permute.xlu0 %3752 }
 0x49c   : > { %v3763_v43 = vsel %vm1351_vm8, %v3753_v48, %v6709_v41  ;;  %v3759_v8 = vsel %vm1351_vm8, %v6709_v41, %v3753_v48 }
 0x49d   : > { %4618 = vmatmul.mubr.msk.f32.vlgmr.msra.gmra.mrb[8].mxu0 %vm1760_vm10, %v4617_v40  ;;  %v3769_v23 = vmul.f32 %v3763_v43, %v7233_v39  ;;  %v4041_v43 = vld [vmem:[%s7186_s8 + $0x1f8] sm:$0xff] }
 0x49e   : > { %4747 = vmatpush1.bf16.msra.mxu0 %v4746_v53  ;;  %3513 = vmatprep.mubr.f32.mxu0 %v7222_v25 }
 0x49f   : > { %v3751_v32 = vpop.permute.xlu1 %3750  ;;  %4749 = vmatprep.subr.bf16.mxu0 %v4748_v7  ;;  %v6722_v36 = vpop.permute.xlu0 %3748 }
 0x4a0   : > { %v3762_v35 = vsel %vm1351_vm8, %v3751_v32, %v3743_v55  ;;  %v3758_v45 = vsel %vm1351_vm8, %v3743_v55, %v3751_v32 }
 0x4a1   : > { %v3767_v22 = vmul.f32 %v3762_v35, %v7233_v39 }
 0x4a2   : > { %4751 = vmatpush1.bf16.msra.mxu0 %v4750_v0 }
 0x4a3   : > { %v3747_v49 = vpop.permute.xlu1 %3746  ;;  %4753 = vmatprep.subr.bf16.mxu0 %v7226_v58  ;;  %v3537_v28 = vpop.permute.xlu0 %3536  ;;  %v4768_v41 = vpack.c.bf16 %v3769_v23, %v3767_v22  ;;  %v4116_v22 = vld [vmem:[%s7187_s9 + $0x18] sm:$0xff] }
 0x4a4   : > { %v3541_v24 = vsel %vm1067_vm6, %v6555_v26, %v3537_v28  ;;  %v3545_v31 = vsel %vm1067_vm6, %v3537_v28, %v6555_v26  ;;  %v3659_v26 = vmul.f32 %v3653_v47, %v7228_v13 }
 0x4a5   : > { %v3552_v42 = vmul.f32 %v3541_v24, %v5442_v21  ;;  %v3553_v30 = vmul.f32 %v3545_v31, %v7227_v10  ;;  %4620 = vmatmul.mubr.msk.f32.vlgmr.msra.gmra.mrb[8].mxu0 %vm1760_vm10, %v4619_v56  ;;  %v7235_v31 = vld [vmem:[#allocation10_spill] sm:$0xff] }
 0x4a6   : > { %4755 = vmatpush1.bf16.msra.mxu0 %v7231_v4  ;;  %3623 = vmatprep.mubr.f32.mxu0 %v7222_v25  ;;  %v4760_v46 = vpack.c.bf16 %v3659_v26, %v3657_v57 }
 0x4a7   : > { %v4758_v21 = vpack.c.bf16 %v3552_v42, %v3550_v62  ;;  %v3755_v19 = vpop.permute.xlu1 %3754  ;;  %v3855_v63 = vpop.permute.xlu0 %3854  ;;  %v4756_v14 = vpack.c.bf16 %v3553_v30, %v3551_v16 }
 0x4a8   : > { %v3760_v7 = vsel %vm1351_vm8, %v3747_v49, %v3755_v19  ;;  %v3764_v32 = vsel %vm1351_vm8, %v3755_v19, %v3747_v49 }
 0x4a9   : > { %4757 = vmatprep.subr.bf16.mxu0 %v4756_v14  ;;  %v3771_v47 = vmul.f32 %v3764_v32, %v7233_v39  ;;  %v4120_v32 = vld [vmem:[%s7187_s9 + $0x38] sm:$0xff] }
 0x4aa   : > { %4759 = vmatpush1.bf16.msra.mxu0 %v4758_v21  ;;  %v4625_v21 = vld [vmem:[%s7184_s6 + $0x7] sm:$0x1] }
 0x4ab   : > { %v3853_v59 = vpop.permute.xlu1 %3852  ;;  %4761 = vmatprep.subr.bf16.mxu0 %v4760_v46  ;;  %v3647_v38 = vpop.permute.xlu0 %3646 }
 0x4ac   : > { %v3651_v9 = vsel %vm1209_vm7, %v6678_v44, %v3647_v38  ;;  %v3655_v11 = vsel %vm1209_vm7, %v3647_v38, %v6678_v44  ;;  %v7234_v44 = vld [vmem:[#allocation9_spill] sm:$0xff] }
 0x4ad   : > { %v3662_v20 = vmul.f32 %v3651_v9, %v7232_v50  ;;  %v3663_v51 = vmul.f32 %v3655_v11, %v7228_v13  ;;  %4622 = vmatmul.mubr.msk.f32.vlgmr.msra.gmra.mrb[8].mxu0 %vm1760_vm10, %v4621_v18  ;;  %v3766_v2 = vmul.f32 %v3758_v45, %v7234_v44  ;;  %v3768_v0 = vmul.f32 %v3759_v8, %v7234_v44  ;;  %v4038_v9 = vld [vmem:[%s7186_s8 + $0x1e0] sm:$0xff]  ;;  %v4040_v11 = vld [vmem:[%s7186_s8 + $0x1f0] sm:$0xff] }
 0x4ae   : > { %4763 = vmatpush1.bf16.msra.mxu0 %v4762_v37  ;;  %3733 = vmatprep.mubr.f32.mxu0 %v7222_v25  ;;  %v3770_v56 = vmul.f32 %v3760_v7, %v7234_v44  ;;  %v7237_v8 = vld [vmem:[#allocation4_spill] sm:$0xff] }
 0x4af   : > { %v4766_v33 = vpack.c.bf16 %v3662_v20, %v3660_v27  ;;  %v3861_v40 = vpop.permute.xlu1 %3860  ;;  %v3863_v55 = vpop.permute.xlu0 %3862  ;;  %v4764_v53 = vpack.c.bf16 %v3663_v51, %v3661_v54  ;;  %v4770_v17 = vpack.c.bf16 %v3768_v0, %v3766_v2  ;;  %v4034_v27 = vld [vmem:[%s7186_s8 + $0x1c0] sm:$0xff]  ;;  %v4846_v54 = vpack.c.bf16 %v4040_v11, %v4038_v9  ;;  %v4118_v7 = vld [vmem:[%s7187_s9 + $0x28] sm:$0xff]  ;;  %v4147_v9 = vld [vmem:[%s7187_s9 + $0x110] sm:$0xff] }
 0x4b0   : > { %v3872_v48 = vsel %vm1493_vm9, %v3861_v40, %v3853_v59  ;;  %v3873_v29 = vsel %vm1493_vm9, %v3863_v55, %v3855_v63  ;;  %v3868_v28 = vsel %vm1493_vm9, %v3853_v59, %v3861_v40  ;;  %v3869_v62 = vsel %vm1493_vm9, %v3855_v63, %v3863_v55  ;;  %v4036_v59 = vld [vmem:[%s7186_s8 + $0x1d0] sm:$0xff]  ;;  %v4113_v40 = vld [vmem:[%s7187_s9] sm:$0xff]  ;;  %v4150_v11 = vld [vmem:[%s7187_s9 + $0x128] sm:$0xff] }
 0x4b1   : > { %4765 = vmatprep.subr.bf16.mxu0 %v4764_v53  ;;  %v3877_v10 = vmul.f32 %v3872_v48, %v7235_v31  ;;  %v3879_v16 = vmul.f32 %v3873_v29, %v7235_v31  ;;  %v3876_v4 = vmul.f32 %v3868_v28, %v7236_v5  ;;  %v4842_v38 = vpack.c.bf16 %v4036_v59, %v4034_v27  ;;  %v4115_v55 = vld [vmem:[%s7187_s9 + $0x10] sm:$0xff]  ;;  %v4121_v28 = vld [vmem:[%s7187_s9 + $0x40] sm:$0xff]  ;;  %v4146_v59 = vld [vmem:[%s7187_s9 + $0x108] sm:$0xff] }
 0x4b2   : > { %4767 = vmatpush1.bf16.msra.mxu0 %v4766_v33  ;;  %v4852_v29 = vpack.c.bf16 %v4120_v32, %v4118_v7  ;;  %v4143_v27 = vld [vmem:[%s7187_s9 + $0xf0] sm:$0xff] }
 0x4b3   : > { %v3857_v49 = vpop.permute.xlu1 %3856  ;;  %4769 = vmatprep.subr.bf16.mxu0 %v4768_v41  ;;  %v3757_v58 = vpop.permute.xlu0 %3756  ;;  %v4776_v26 = vpack.c.bf16 %v3879_v16, %v3877_v10  ;;  %4843 = vmatpush1.bf16.msra.mxu1 %v4842_v38  ;;  %v4850_v41 = vpack.c.bf16 %v4115_v55, %v4113_v40  ;;  %v4125_v16 = vld [vmem:[%s7187_s9 + $0x60] sm:$0xff]  ;;  %v4148_v38 = vld [vmem:[%s7187_s9 + $0x118] sm:$0xff]  ;;  %v4155_v7 = vld [vmem:[%s7187_s9 + $0x150] sm:$0xf] }
 0x4b4   : > { %v3761_v60 = vsel %vm1351_vm8, %v6722_v36, %v3757_v58  ;;  %v3765_v24 = vsel %vm1351_vm8, %v3757_v58, %v6722_v36  ;;  %v3878_v36 = vmul.f32 %v3869_v62, %v7236_v5  ;;  %v4123_v62 = vld [vmem:[%s7187_s9 + $0x50] sm:$0xff]  ;;  %v4153_v55 = vld [vmem:[%s7187_s9 + $0x140] sm:$0xff] }
 0x4b5   : > { %v3772_v13 = vmul.f32 %v3761_v60, %v7234_v44  ;;  %v3773_v57 = vmul.f32 %v3765_v24, %v7233_v39  ;;  %4624 = vmatmul.mubr.msk.f32.vlgmr.msra.gmra.mrb[8].mxu0 %vm1760_vm10, %v4623_v12  ;;  %v4114_v39 = vld [vmem:[%s7187_s9 + $0x8] sm:$0xff]  ;;  %v4117_v12 = vld [vmem:[%s7187_s9 + $0x20] sm:$0xff]  ;;  %v4128_v24 = vld [vmem:[%s7187_s9 + $0x78] sm:$0xff]  ;;  %v4891_v32 = vpack.c.bf16 %v4155_v7, %v4153_v55 }
 0x4b6   : > { %4771 = vmatpush1.bf16.msra.mxu0 %v4770_v17  ;;  %3843 = vmatprep.mubr.f32.mxu0 %v7222_v25  ;;  %v4778_v63 = vpack.c.bf16 %v3878_v36, %v3876_v4  ;;  %v4848_v20 = vpack.c.bf16 %v4116_v22, %v4114_v39  ;;  %v4119_v17 = vld [vmem:[%s7187_s9 + $0x30] sm:$0xff]  ;;  %v4126_v60 = vld [vmem:[%s7187_s9 + $0x68] sm:$0xff]  ;;  %v4136_v36 = vld [vmem:[%s7187_s9 + $0xb8] sm:$0xff] }
 0x4b7   : > { %v4774_v42 = vpack.c.bf16 %v3772_v13, %v3770_v56  ;;  %v3865_v30 = vpop.permute.xlu1 %3864  ;;  %v3859_v52 = vpop.permute.xlu0 %3858  ;;  %v4772_v1 = vpack.c.bf16 %v3773_v57, %v3771_v47  ;;  %v4122_v56 = vld [vmem:[%s7187_s9 + $0x48] sm:$0xff]  ;;  %v4124_v47 = vld [vmem:[%s7187_s9 + $0x58] sm:$0xff]  ;;  %v4860_v10 = vpack.c.bf16 %v4128_v24, %v4126_v60  ;;  %v4127_v13 = vld [vmem:[%s7187_s9 + $0x70] sm:$0xff] }
 0x4b8   : > { %v3870_v50 = vsel %vm1493_vm9, %v3857_v49, %v3865_v30  ;;  %v3874_v34 = vsel %vm1493_vm9, %v3865_v30, %v3857_v49  ;;  %v4854_v49 = vpack.c.bf16 %v4119_v17, %v4117_v12  ;;  %v4856_v58 = vpack.c.bf16 %v4124_v47, %v4122_v56  ;;  %v4130_v57 = vld [vmem:[%s7187_s9 + $0x88] sm:$0xff]  ;;  %v4241_v12 = vld [vmem:[%s7188_s10] sm:$0xff]  ;;  %v4243_v56 = vld [vmem:[%s7188_s10 + $0x10] sm:$0xff] }
 0x4b9   : > { %4773 = vmatprep.subr.bf16.mxu0 %v4772_v1  ;;  %v3880_v3 = vmul.f32 %v3870_v50, %v7236_v5  ;;  %v3881_v46 = vmul.f32 %v3874_v34, %v7235_v31  ;;  %v4862_v30 = vpack.c.bf16 %v4127_v13, %v4125_v16  ;;  %v4129_v1 = vld [vmem:[%s7187_s9 + $0x80] sm:$0xff]  ;;  %v4134_v4 = vld [vmem:[%s7187_s9 + $0xa8] sm:$0xff]  ;;  %v4247_v60 = vld [vmem:[%s7188_s10 + $0x30] sm:$0xff] }
 0x4ba   : > { %4775 = vmatpush1.bf16.msra.mxu0 %v4774_v42  ;;  %v4132_v42 = vld [vmem:[%s7187_s9 + $0x98] sm:$0xff]  ;;  %v4868_v50 = vpack.c.bf16 %v4136_v36, %v4134_v4  ;;  %v4133_v34 = vld [vmem:[%s7187_s9 + $0xa0] sm:$0xff]  ;;  %v4246_v47 = vld [vmem:[%s7188_s10 + $0x28] sm:$0xff] }
 0x4bb   : > { %4777 = vmatprep.subr.bf16.mxu0 %v4776_v26  ;;  %v3867_v19 = vpop.permute.xlu0 %3866  ;;  %v4250_v24 = vld [vmem:[%s7188_s10 + $0x48] sm:$0xff]  ;;  %v4249_v13 = vld [vmem:[%s7188_s10 + $0x40] sm:$0xff]  ;;  %v4255_v4 = vld [vmem:[%s7188_s10 + $0x70] sm:$0xff] }
 0x4bc   : > { %v3871_v14 = vsel %vm1493_vm9, %v3859_v52, %v3867_v19  ;;  %v3875_v15 = vsel %vm1493_vm9, %v3867_v19, %v3859_v52  ;;  %v4864_v52 = vpack.c.bf16 %v4132_v42, %v4130_v57  ;;  %v4138_v19 = vld [vmem:[%s7187_s9 + $0xc8] sm:$0xff]  ;;  %v4251_v57 = vld [vmem:[%s7188_s10 + $0x50] sm:$0xff]  ;;  %v4277_v7 = vld [vmem:[%s7188_s10 + $0x120] sm:$0xff] }
 0x4bd   : > { %v3882_v61 = vmul.f32 %v3871_v14, %v7236_v5  ;;  %v3883_v35 = vmul.f32 %v3875_v15, %v7235_v31  ;;  %4626 = vmatmul.mubr.msk.f32.vlgmr.msra.gmra.mrb[8].mxu0 %vm1760_vm10, %v4625_v21  ;;  %v4858_v31 = vpack.c.bf16 %v4123_v62, %v4121_v28  ;;  %v4131_v5 = vld [vmem:[%s7187_s9 + $0x90] sm:$0xff]  ;;  %v4245_v62 = vld [vmem:[%s7188_s10 + $0x20] sm:$0xff]  ;;  %v4254_v42 = vld [vmem:[%s7188_s10 + $0x68] sm:$0xff] }
 0x4be   : > { %4779 = vmatpush1.bf16.msra.mxu0 %v4778_v63  ;;  %3953 = vmatprep.mubr.f32.mxu0 %v7222_v25  ;;  %v4039_v25 = vld [vmem:[%s7186_s8 + $0x1e8] sm:$0xff]  ;;  %v4866_v26 = vpack.c.bf16 %v4131_v5, %v4129_v1  ;;  %v4135_v21 = vld [vmem:[%s7187_s9 + $0xb0] sm:$0xff]  ;;  %v4140_v63 = vld [vmem:[%s7187_s9 + $0xd8] sm:$0xff] }
 0x4bf   : > { %v4782_v18 = vpack.c.bf16 %v3882_v61, %v3880_v3  ;;  %v4780_v37 = vpack.c.bf16 %v3883_v35, %v3881_v46  ;;  %v4844_v45 = vpack.c.bf16 %v4041_v43, %v4039_v25  ;;  %v4870_v14 = vpack.c.bf16 %v4135_v21, %v4133_v34  ;;  %v4137_v3 = vld [vmem:[%s7187_s9 + $0xc0] sm:$0xff]  ;;  %v4139_v46 = vld [vmem:[%s7187_s9 + $0xd0] sm:$0xff]  ;;  %v4142_v61 = vld [vmem:[%s7187_s9 + $0xe8] sm:$0xff] }
 0x4c0   : > { %v4872_v15 = vpack.c.bf16 %v4140_v63, %v4138_v19  ;;  %v4144_v35 = vld [vmem:[%s7187_s9 + $0xf8] sm:$0xff]  ;;  %v4880_v43 = vpack.c.bf16 %v4148_v38, %v4146_v59  ;;  %v4253_v5 = vld [vmem:[%s7188_s10 + $0x60] sm:$0xff]  ;;  %v4258_v36 = vld [vmem:[%s7188_s10 + $0x88] sm:$0xff] }
 0x4c1   : > { %4781 = vmatprep.subr.bf16.mxu0 %v4780_v37  ;;  %4845 = vmatprep.subr.bf16.mxu1 %v4844_v45  ;;  %v4876_v37 = vpack.c.bf16 %v4144_v35, %v4142_v61  ;;  %v4145_v45 = vld [vmem:[%s7187_s9 + $0x100] sm:$0xff]  ;;  %v4259_v19 = vld [vmem:[%s7188_s10 + $0x90] sm:$0xff]  ;;  %v4262_v63 = vld [vmem:[%s7188_s10 + $0xa8] sm:$0xff] }
 0x4c2   : > { %4783 = vmatpush1.bf16.msra.mxu0 %v4782_v18  ;;  %4847 = vmatpush1.bf16.msra.mxu1 %v4846_v54  ;;  %v4874_v18 = vpack.c.bf16 %v4139_v46, %v4137_v3  ;;  %v4152_v54 = vld [vmem:[%s7187_s9 + $0x138] sm:$0xff]  ;;  %v4882_v39 = vpack.c.bf16 %v4147_v9, %v4145_v45  ;;  %v4257_v21 = vld [vmem:[%s7188_s10 + $0x80] sm:$0xff]  ;;  %v4263_v61 = vld [vmem:[%s7188_s10 + $0xb0] sm:$0xff] }
 0x4c3   : > { %4849 = vmatprep.subr.bf16.mxu1 %v4848_v20  ;;  %v4884_v22 = vpack.c.bf16 %v4152_v54, %v4150_v11  ;;  %v4149_v20 = vld [vmem:[%s7187_s9 + $0x120] sm:$0xff]  ;;  %v4266_v35 = vld [vmem:[%s7188_s10 + $0xc8] sm:$0xff]  ;;  %v4267_v59 = vld [vmem:[%s7188_s10 + $0xd0] sm:$0xff] }
 0x4c4   : > { %v4261_v46 = vld [vmem:[%s7188_s10 + $0xa0] sm:$0xff]  ;;  %v4270_v38 = vld [vmem:[%s7188_s10 + $0xe8] sm:$0xff]  ;;  %v4271_v11 = vld [vmem:[%s7188_s10 + $0xf0] sm:$0xff] }
 0x4c5   : > { %4628 = vmatmul.mubr.msk.f32.vlgmr.msra.gmra.mrb[8].mxu0 %vm1760_vm10, %v4627_v6  ;;  %v4141_v6 = vld [vmem:[%s7187_s9 + $0xe0] sm:$0xff]  ;;  %v4274_v54 = vld [vmem:[%s7188_s10 + $0x108] sm:$0xff] }
 0x4c6   : > { %v4878_v25 = vpack.c.bf16 %v4143_v27, %v4141_v6  ;;  %v4265_v27 = vld [vmem:[%s7188_s10 + $0xc0] sm:$0xff] }
 0x4c7   : > { %v4269_v9 = vld [vmem:[%s7188_s10 + $0xe0] sm:$0xff] }
 0x4c8   : > { %v3966_v51 = vpop.permute.xlu1 %3965 }
 0x4c9   : > { %v3971_v23 = vrot.slane %v3966_v51, %v7237_v8  ;;  %v4151_v51 = vld [vmem:[%s7187_s9 + $0x130] sm:$0xff]  ;;  %v4154_v8 = vld [vmem:[%s7187_s9 + $0x148] sm:$0xff] }
 0x598   : > { %v3955_v44 = vpop.f32.mrb[8].mxu0 }
 0x599   : > { %v6883_v2 = vadd.f32 %v3971_v23, %v3955_v44  ;;  %v3957_v33 = vpop.f32.mrb[9].mxu0  ;;  %v4886_v44 = vpack.c.bf16 %v4151_v51, %v4149_v20  ;;  %v4273_v51 = vld [vmem:[%s7188_s10 + $0x100] sm:$0xff] }
 0x59a   : > { %v6891_v53 = vadd.f32 %v3971_v23, %v3957_v33  ;;  %v4156_v23 = vld [vmem:[%s7187_s9 + $0x158] sm:$0xf] }
 0x59b   : > { %v4629_v48 = vclamps-f32 %v6883_v2, 0.08  ;;  %v4888_v33 = vpack.c.bf16 %v4156_v23, %v4154_v8  ;;  %v4275_v8 = vld [vmem:[%s7188_s10 + $0x110] sm:$0xff]  ;;  %v4278_v23 = vld [vmem:[%s7188_s10 + $0x128] sm:$0xff] }
 0x59c   : > { %v4630_v0 = vclamps-f32 %v6891_v53, 0.08 }
 0x59e   : > { %4106 = vmatprep.mubr.f32.mxu1 %v4630_v0 }
 0x59f   : > { %4107 = vmatmul.mubr.f32.vlgmr.msra.gmra.mrb[12].mxu1 %v4629_v48 }
 0x5a0   : > { %4851 = vmatpush1.bf16.msra.mxu1 %v4850_v41  ;;  %v4242_v41 = vld [vmem:[%s7188_s10 + $0x8] sm:$0xff] }
 0x5a1   : > { %4853 = vmatprep.subr.bf16.mxu1 %v4852_v29  ;;  %v4244_v29 = vld [vmem:[%s7188_s10 + $0x18] sm:$0xff] }
 0x5a2   : > { %v4894_v17 = vpack.c.bf16 %v4244_v29, %v4242_v41 }
 0x5a4   : > { %4855 = vmatpush1.bf16.msra.mxu1 %v4854_v49  ;;  %v4248_v49 = vld [vmem:[%s7188_s10 + $0x38] sm:$0xff]  ;;  %4895 = vmatprep.subr.bf16.mxu0 %v4894_v17  ;;  %v4282_v17 = vld [vmem:[%s7188_s10 + $0x148] sm:$0xff] }
 0x5a5   : > { %4857 = vmatprep.subr.bf16.mxu1 %v4856_v58  ;;  %v4896_v58 = vpack.c.bf16 %v4243_v56, %v4241_v12  ;;  %v4898_v28 = vpack.c.bf16 %v4248_v49, %v4246_v47  ;;  %v4284_v56 = vld [vmem:[%s7188_s10 + $0x158] sm:$0xf]  ;;  %v4281_v49 = vld [vmem:[%s7188_s10 + $0x140] sm:$0xff] }
 0x5a6   : > { %v4934_v47 = vpack.c.bf16 %v4284_v56, %v4282_v17 }
 0x5a7   : > { %4897 = vmatpush1.bf16.msra.mxu0 %v4896_v58  ;;  %v4283_v58 = vld [vmem:[%s7188_s10 + $0x150] sm:$0xf] }
 0x5a8   : > { %4859 = vmatpush1.bf16.msra.mxu1 %v4858_v31  ;;  %v4252_v31 = vld [vmem:[%s7188_s10 + $0x58] sm:$0xff]  ;;  %4899 = vmatprep.subr.bf16.mxu0 %v4898_v28  ;;  %v4937_v28 = vpack.c.bf16 %v4283_v58, %v4281_v49 }
 0x5a9   : > { %4861 = vmatprep.subr.bf16.mxu1 %v4860_v10  ;;  %v4900_v10 = vpack.c.bf16 %v4247_v60, %v4245_v62  ;;  %v4902_v16 = vpack.c.bf16 %v4252_v31, %v4250_v24 }
 0x5ab   : > { %4901 = vmatpush1.bf16.msra.mxu0 %v4900_v10  ;;  %v5128_v10 = vmov 1966171168  }
 0x5ac   : > { %4863 = vmatpush1.bf16.msra.mxu1 %v4862_v30  ;;  %v4256_v30 = vld [vmem:[%s7188_s10 + $0x78] sm:$0xff]  ;;  %4903 = vmatprep.subr.bf16.mxu0 %v4902_v16  ;;  %v4371_v16 = vunpack.c.l.s4 %v5128_v10 }
 0x5ad   : > { %4865 = vmatprep.subr.bf16.mxu1 %v4864_v52  ;;  %v4904_v52 = vpack.c.bf16 %v4251_v57, %v4249_v13  ;;  %v4906_v1 = vpack.c.bf16 %v4256_v30, %v4254_v42 }
 0x5ae   : > { %v4372_v13 = vunpack.c.0.s8 %v4371_v16 }
 0x5af   : > { %4905 = vmatpush1.bf16.msra.mxu0 %v4904_v52  ;;  %v7240_v52 = vld [vmem:[#allocation3_spill] sm:$0xff] }
 0x5b0   : > { %4867 = vmatpush1.bf16.msra.mxu1 %v4866_v26  ;;  %v4260_v26 = vld [vmem:[%s7188_s10 + $0x98] sm:$0xff]  ;;  %4907 = vmatprep.subr.bf16.mxu0 %v4906_v1  ;;  %v4375_v1 = vsub.s32 %v4372_v13, %v7240_v52 }
 0x5b1   : > { %4869 = vmatprep.subr.bf16.mxu1 %v4868_v50  ;;  %v4908_v50 = vpack.c.bf16 %v4255_v4, %v4253_v5  ;;  %v4910_v34 = vpack.c.bf16 %v4260_v26, %v4258_v36  ;;  %v7241_v36 = vlaneseq }
 0x5b3   : > { %4909 = vmatpush1.bf16.msra.mxu0 %v4908_v50  ;;  %vm4387_vm6 = vcmp.lt.s32.totalorder %v7241_v36, 256 }
 0x5b4   : > { %4871 = vmatpush1.bf16.msra.mxu1 %v4870_v14  ;;  %v4264_v14 = vld [vmem:[%s7188_s10 + $0xb8] sm:$0xff]  ;;  %4911 = vmatprep.subr.bf16.mxu0 %v4910_v34 }
 0x5b5   : > { %4873 = vmatprep.subr.bf16.mxu1 %v4872_v15  ;;  %v4912_v15 = vpack.c.bf16 %v4259_v19, %v4257_v21  ;;  %v4914_v3 = vpack.c.bf16 %v4264_v14, %v4262_v63 }
 0x5b7   : > { %4913 = vmatpush1.bf16.msra.mxu0 %v4912_v15 }
 0x5b8   : > { %4875 = vmatpush1.bf16.msra.mxu1 %v4874_v18  ;;  %v4268_v18 = vld [vmem:[%s7188_s10 + $0xd8] sm:$0xff]  ;;  %4915 = vmatprep.subr.bf16.mxu0 %v4914_v3 }
 0x5b9   : > { %4877 = vmatprep.subr.bf16.mxu1 %v4876_v37  ;;  %v4916_v37 = vpack.c.bf16 %v4263_v61, %v4261_v46  ;;  %v4918_v6 = vpack.c.bf16 %v4268_v18, %v4266_v35 }
 0x5bb   : > { %4917 = vmatpush1.bf16.msra.mxu0 %v4916_v37 }
 0x5bc   : > { %4879 = vmatpush1.bf16.msra.mxu1 %v4878_v25  ;;  %v4272_v25 = vld [vmem:[%s7188_s10 + $0xf8] sm:$0xff]  ;;  %4919 = vmatprep.subr.bf16.mxu0 %v4918_v6 }
 0x5bd   : > { %4881 = vmatprep.subr.bf16.mxu1 %v4880_v43  ;;  %v4920_v43 = vpack.c.bf16 %v4267_v59, %v4265_v27  ;;  %v4922_v45 = vpack.c.bf16 %v4272_v25, %v4270_v38 }
 0x5bf   : > { %4921 = vmatpush1.bf16.msra.mxu0 %v4920_v43 }
 0x5c0   : > { %4883 = vmatpush1.bf16.msra.mxu1 %v4882_v39  ;;  %v4276_v39 = vld [vmem:[%s7188_s10 + $0x118] sm:$0xff]  ;;  %4923 = vmatprep.subr.bf16.mxu0 %v4922_v45 }
 0x5c1   : > { %4885 = vmatprep.subr.bf16.mxu1 %v4884_v22  ;;  %v4924_v22 = vpack.c.bf16 %v4271_v11, %v4269_v9  ;;  %v4926_v20 = vpack.c.bf16 %v4276_v39, %v4274_v54 }
 0x5c3   : > { %4925 = vmatpush1.bf16.msra.mxu0 %v4924_v22 }
 0x5c4   : > { %4887 = vmatpush1.bf16.msra.mxu1 %v4886_v44  ;;  %v4280_v44 = vld [vmem:[%s7188_s10 + $0x138] sm:$0xff]  ;;  %4927 = vmatprep.subr.bf16.mxu0 %v4926_v20 }
 0x5c5   : > { %4890 = vmatprep.subr.msk.bf16.mxu1 %vm7013_vm3, %v4888_v33  ;;  %v4928_v33 = vpack.c.bf16 %v4275_v8, %v4273_v51  ;;  %v4930_v55 = vpack.c.bf16 %v4280_v44, %v4278_v23 }
 0x5c7   : > { %4929 = vmatpush1.bf16.msra.mxu0 %v4928_v33 }
 0x5c8   : > { %4893 = vmatpush1.bf16.msk.msra.mxu1 %vm7013_vm3, %v4891_v32  ;;  %v4279_v32 = vld [vmem:[%s7188_s10 + $0x130] sm:$0xff]  ;;  %4931 = vmatprep.subr.bf16.mxu0 %v4930_v55 }
 0x5c9   : > { %v4932_v41 = vpack.c.bf16 %v4279_v32, %v4277_v7 }
 0x5cb   : > { %4933 = vmatpush1.bf16.msra.mxu0 %v4932_v41 }
 0x5cc   : > { %4936 = vmatprep.subr.msk.bf16.mxu0 %vm7013_vm3, %v4934_v47 }
 0x5cf   : > { %4939 = vmatpush1.bf16.msk.msra.mxu0 %vm7013_vm3, %v4937_v28 }
 0x672   : > { %v4108_v29 = vpop.f32.mrb[12].mxu1 }
 0x673   : > { %v4110_v12 = vpop.f32.mrb[13].mxu1 }
 0x674   : > { %4633 = vmatprep.mubr.msk.f32.mxu1 %vm4157_vm5, %v4110_v12 }
 0x675   : > { %4233 = vmatmul.mubr.f32.vlgmr.msra.gmra.mrb[14].mxu1 %v4108_v29 }
 0x748   : > { %v4234_v62 = vpop.f32.mrb[14].mxu1 }
 0x749   : > { %v4239_v60 = vsub.f32 %v4234_v62, %v4108_v29  ;;  %v4236_v24 = vpop.f32.mrb[15].mxu1 }
 0x74a   : > { %v4240_v31 = vsub.f32 %v4236_v24, %v4110_v12 }
 0x74c   : > { %4636 = vmatprep.mubr.msk.f32.mxu0 %vm4157_vm5, %v4240_v31 }
 0x74d   : > { %4359 = vmatmul.mubr.f32.vlgmr.msra.gmra.mrb[10].mxu0 %v4239_v60 }
 0x820   : > { %v4360_v57 = vpop.f32.mrb[10].mxu0 }
 0x821   : > { %v4365_v42 = vadd.f32 %v4629_v48, %v4360_v57  ;;  %v4362_v30 = vpop.f32.mrb[11].mxu0 }
 0x822   : > { %v4366_v40 = vadd.f32 %v4630_v0, %v4362_v30 }
 0x824   : > { %v4369_v5 = vcombine.low %v4365_v42, %v4366_v40 }
 0x826   : > { %v4376_v4 = vrot.slane %v4369_v5, %v4375_v1 }
 0x828   : > { %v4383_v26 = vrot.slane %v4376_v4, %v4375_v1 }
 0x82a   : > { %4389 = vst.msk [vmem:[%s386_s25] sm:$0x3] %vm4387_vm6, %v4383_v26 }
 0x82b PF: > { %s23_s19 = sadd.s32 1, %s5115_s19  }
 0x82c   : > { %p20_p4 = scmp.ge.s32.totalorder %s23_s19, 4  }
 0x82e   :  { %22 = sbr.rel (!%p20_p4) target bundleno = 3 (0x3), region = 125 }

</bundles_post_ra>
